<compile_context>
chip_gen: v7x
topology: tpu7x:2x2x1
jax: 0.10.0
libtpu: 0.0.40
codegen_flags: <defaults>
</compile_context>

<pallas_src>
from functools import partial

import numpy as np
import jax
import jax.numpy as jnp
from jax import lax
from jax.experimental import pallas as pl
from jax.experimental.pallas import tpu as pltpu


# --------------------------------- kernel ------------------------------------

def _net_kernel(x_ref, w1_ref, b1_ref, w2_ref, b2_ref,
                w1l_ref, b1l_ref, w2l_ref, b2l_ref, o_ref, y_ref):
    """Fused conv1+pool+relu -> conv2+pool+relu -> linear1 -> linear2 -> log_softmax.

    x_ref:   (28, TB, 28)  bf16  rows-major input: x_ref[row, b, w]
    w1_ref:  (5, 28, 256)  bf16  banded conv1 weights per row tap kh;
                                 lane = dq*128 + pc*10 + c  (dq = pool col phase)
    b1_ref:  (1, 128)      f32   conv1 bias tiled over the 12 pooled columns
    w2_ref:  (5, 128, 256) bf16  banded conv2 weights per row tap kh;
                                 lane = dq*128 + pc2*20 + co
    b2_ref:  (1, 128)      f32   conv2 bias tiled over the 4 pooled columns
    w1l_ref: (4, 128, 128) bf16  linear1 weights split by pooled row (NCHW flatten folded in)
    b1l_ref: (1, 128)      f32   linear1 bias (zero padded 50 -> 128)
    w2l_ref: (128, 128)    bf16  linear2 weights (zero padded)
    b2l_ref: (1, 128)      f32   linear2 bias; lanes >= 10 hold -1e30 (masked pad classes)
    o_ref:   (TB, 128)     f32   log-probabilities in lanes 0..9
    y_ref:   (12, TB, 128) bf16  VMEM scratch: relu(maxpool(conv1)) pooled rows
    """
    TB = o_ref.shape[0]

    # ---- stage 1: conv1 + bias + 2x2 maxpool + ReLU, one pooled row per step ----
    @pl.loop(0, 12)
    def _(pr):
        best = None
        for dp in range(2):                       # pool phase over conv rows
            acc = jnp.zeros((TB, 256), jnp.float32)
            for kh in range(5):                   # conv row taps
                acc = acc + jnp.dot(x_ref[2 * pr + dp + kh], w1_ref[kh],
                                    preferred_element_type=jnp.float32)
            cand = jnp.maximum(acc[:, :128], acc[:, 128:])   # pool over col phase
            best = cand if dp == 0 else jnp.maximum(best, cand)
        y_ref[pr] = jnp.maximum(best + b1_ref[...], 0.0).astype(y_ref.dtype)

    # ---- stage 2: conv2 + bias + pool + ReLU + flatten + linear1 (accumulated) ----
    # TODO(synk): nn.Dropout2d(p=0.1) is applied as identity (eval-mode semantics).
    h = jnp.broadcast_to(b1l_ref[...], (TB, 128)).astype(jnp.float32)
    for pr2 in range(4):
        best = None
        for dp2 in range(2):
            acc = jnp.zeros((TB, 256), jnp.float32)
            for kh in range(5):
                acc = acc + jnp.dot(y_ref[2 * pr2 + dp2 + kh], w2_ref[kh],
                                    preferred_element_type=jnp.float32)
            cand = jnp.maximum(acc[:, :128], acc[:, 128:])
            best = cand if dp2 == 0 else jnp.maximum(best, cand)
        r2 = jnp.maximum(best + b2_ref[...], 0.0)            # (TB, 128)
        h = h + jnp.dot(r2.astype(w1l_ref.dtype), w1l_ref[pr2],
                        preferred_element_type=jnp.float32)
    # NOTE: the reference module applies NO ReLU after linear1 -- kept as-is.

    # ---- linear2 + log_softmax (pad class lanes carry -1e30 bias -> exp == 0) ----
    logits = jnp.dot(h.astype(w2l_ref.dtype), w2l_ref[...],
                     preferred_element_type=jnp.float32) + b2l_ref[...]
    m = jnp.max(logits, axis=-1, keepdims=True)
    s = logits - m
    lse = jnp.log(jnp.sum(jnp.exp(s), axis=-1, keepdims=True))
    o_ref[...] = s - lse


# ------------------------------ pallas_call glue ------------------------------

def _round_up(n, m):
    return ((n + m - 1) // m) * m


@partial(jax.jit, static_argnames=("block_b",))
def net_forward(x_nchw, prep, block_b=256):
    """Forward pass. x_nchw: (B, 1, 28, 28) float -> (B, 10) log-probs."""
    B = x_nchw.shape[0]
    cdt = prep["w1m"].dtype
    x = x_nchw.reshape(B, 28, 28).astype(cdt)

    TB = min(block_b, _round_up(B, 8))            # batch tile (>= 8 for sublanes)
    Bp = _round_up(B, TB)
    if Bp != B:
        x = jnp.pad(x, ((0, Bp - B), (0, 0), (0, 0)))
    # Rows-major layout: batch on the sublane dim so every conv LHS slab
    # x_t[row] is a contiguous (TB, 28) block.  XLA fuses this transpose with
    # the bf16 cast of the input.
    x_t = jnp.transpose(x, (1, 0, 2))             # (28, Bp, 28)

    out = pl.pallas_call(
        _net_kernel,
        grid=(Bp // TB,),
        in_specs=[
            pl.BlockSpec((28, TB, 28), lambda i: (0, i, 0)),
            pl.BlockSpec((5, 28, 256), lambda i: (0, 0, 0)),
            pl.BlockSpec((1, 128), lambda i: (0, 0)),
            pl.BlockSpec((5, 128, 256), lambda i: (0, 0, 0)),
            pl.BlockSpec((1, 128), lambda i: (0, 0)),
            pl.BlockSpec((4, 128, 128), lambda i: (0, 0, 0)),
            pl.BlockSpec((1, 128), lambda i: (0, 0)),
            pl.BlockSpec((128, 128), lambda i: (0, 0)),
            pl.BlockSpec((1, 128), lambda i: (0, 0)),
        ],
        out_specs=pl.BlockSpec((TB, 128), lambda i: (i, 0)),
        out_shape=jax.ShapeDtypeStruct((Bp, 128), jnp.float32),
        scratch_shapes=[pltpu.VMEM((12, TB, 128), cdt)],
        compiler_params=pltpu.CompilerParams(
            dimension_semantics=("parallel",)),
    )(x_t, prep["w1m"], prep["b1row"], prep["w2m"], prep["b2row"],
      prep["w1l"], prep["b1l"], prep["w2l"], prep["b2l"])

    return out[:B, :10]


# --------------------------- one-time parameter prep ---------------------------

def prepare_params(raw, compute_dtype=jnp.bfloat16):
    """Repack PyTorch-layout weights into the layouts the Pallas kernel consumes."""
    w1 = np.asarray(raw["conv1_w"], np.float32)   # (10, 1, 5, 5)
    b1 = np.asarray(raw["conv1_b"], np.float32)   # (10,)
    w2 = np.asarray(raw["conv2_w"], np.float32)   # (20, 10, 5, 5)
    b2 = np.asarray(raw["conv2_b"], np.float32)   # (20,)
    l1w = np.asarray(raw["lin1_w"], np.float32)   # (50, 320)
    l1b = np.asarray(raw["lin1_b"], np.float32)   # (50,)
    l2w = np.asarray(raw["lin2_w"], np.float32)   # (10, 50)
    l2b = np.asarray(raw["lin2_b"], np.float32)   # (10,)

    # conv1 banded weights; pool col phase dq folded into the lane dim:
    #   w1m[kh][wi, dq*128 + pc*10 + c] = w1[c, 0, kh, wi - (2*pc + dq)]
    w1m = np.zeros((5, 28, 2, 128), np.float32)
    for kh in range(5):
        for dq in range(2):
            for pc in range(12):
                for kw in range(5):
                    wi = 2 * pc + dq + kw
                    w1m[kh, wi, dq, 10 * pc:10 * pc + 10] = w1[:, 0, kh, kw]
    w1m = w1m.reshape(5, 28, 256)
    b1row = np.zeros((1, 128), np.float32)
    b1row[0, :120] = np.tile(b1, 12)

    # conv2 banded weights; rows follow the pooled1 lane layout (pc*10 + ci):
    #   w2m[kh][pc*10 + ci, dq*128 + pc2*20 + co] = w2[co, ci, kh, pc - (2*pc2 + dq)]
    w2m = np.zeros((5, 128, 2, 128), np.float32)
    for kh in range(5):
        for dq in range(2):
            for pc2 in range(4):
                for kw in range(5):
                    pc = 2 * pc2 + dq + kw
                    w2m[kh, 10 * pc:10 * pc + 10, dq,
                        20 * pc2:20 * pc2 + 20] = w2[:, :, kh, kw].T
    w2m = w2m.reshape(5, 128, 256)
    b2row = np.zeros((1, 128), np.float32)
    b2row[0, :80] = np.tile(b2, 4)

    # linear1: torch NCHW flatten index = co*16 + pr2*4 + pc2; split by pooled
    # row pr2 and zero-pad the hidden dim 50 -> 128 (exact for dots).
    w1l = np.zeros((4, 128, 128), np.float32)
    for pr2 in range(4):
        for pc2 in range(4):
            for co in range(20):
                w1l[pr2, 20 * pc2 + co, :50] = l1w[:, co * 16 + pr2 * 4 + pc2]
    b1l = np.zeros((1, 128), np.float32)
    b1l[0, :50] = l1b

    # linear2: zero-pad to 128x128; pad classes get a -1e30 bias so they drop
    # out of the 128-lane log_softmax exactly.
    w2l = np.zeros((128, 128), np.float32)
    w2l[:50, :10] = l2w.T
    b2l = np.full((1, 128), -1e30, np.float32)
    b2l[0, :10] = l2b

    return dict(
        w1m=jnp.asarray(w1m, compute_dtype), b1row=jnp.asarray(b1row),
        w2m=jnp.asarray(w2m, compute_dtype), b2row=jnp.asarray(b2row),
        w1l=jnp.asarray(w1l, compute_dtype), b1l=jnp.asarray(b1l),
        w2l=jnp.asarray(w2l, compute_dtype), b2l=jnp.asarray(b2l),
    )


# ----------------------- pure-JAX reference (validation) -----------------------

def reference_forward(x_nchw, raw):
    x = x_nchw.astype(jnp.float32)
    c1 = lax.conv_general_dilated(x, raw["conv1_w"], (1, 1), "VALID",
                                  dimension_numbers=("NCHW", "OIHW", "NCHW"))
    c1 = c1 + raw["conv1_b"][None, :, None, None]
    p1 = lax.reduce_window(c1, -jnp.inf, lax.max, (1, 1, 2, 2), (1, 1, 2, 2), "VALID")
    r1 = jnp.maximum(p1, 0.0)
    c2 = lax.conv_general_dilated(r1, raw["conv2_w"], (1, 1), "VALID",
                                  dimension_numbers=("NCHW", "OIHW", "NCHW"))
    c2 = c2 + raw["conv2_b"][None, :, None, None]
    p2 = lax.reduce_window(c2, -jnp.inf, lax.max, (1, 1, 2, 2), (1, 1, 2, 2), "VALID")
    r2 = jnp.maximum(p2, 0.0)
    f = r2.reshape(x.shape[0], -1)
    h = f @ raw["lin1_w"].T + raw["lin1_b"]
    z = h @ raw["lin2_w"].T + raw["lin2_b"]
    return jax.nn.log_softmax(z, axis=-1)


# ---------------------------- deterministic params -----------------------------

def init_params(key):
    ks = jax.random.split(key, 8)

    def nrm(k, shape, scale):
        return (scale * jax.random.normal(k, shape)).astype(jnp.float32)

    return dict(
        conv1_w=nrm(ks[0], (10, 1, 5, 5), 0.2),
        conv1_b=nrm(ks[1], (10,), 0.1),
        conv2_w=nrm(ks[2], (20, 10, 5, 5), 0.06),
        conv2_b=nrm(ks[3], (20,), 0.1),
        lin1_w=nrm(ks[4], (50, 320), 0.05),
        lin1_b=nrm(ks[5], (50,), 0.05),
        lin2_w=nrm(ks[6], (10, 50), 0.1),
        lin2_b=nrm(ks[7], (10,), 0.1),
    )


if __name__ == "__main__":
    key = jax.random.PRNGKey(0)
    pkey, xkey = jax.random.split(key)
    raw = init_params(pkey)
    prep = prepare_params(raw)

    # Linear(320, 50) pins the input to MNIST-shaped 1x28x28 images.
    x = jax.random.normal(xkey, (2, 1, 28, 28), dtype=jnp.float32)

    out = jax.block_until_ready(net_forward(x, prep))
    assert out.shape == (2, 10), out.shape
    # Valid log-probs and agreement with the pure-XLA f32 reference
    # (bf16 operands / f32 accumulation => loose-ish tolerance).
    assert bool(jnp.allclose(jnp.exp(out).sum(axis=-1), 1.0, atol=1e-4))
    ref = reference_forward(x, raw)
    assert bool(jnp.allclose(out, ref, atol=5e-2)), float(jnp.max(jnp.abs(out - ref)))

    # Exercise a multi-step grid + batch-tail padding (3 grid steps, tail of 4).
    x2 = jax.random.normal(jax.random.PRNGKey(1), (20, 1, 28, 28), dtype=jnp.float32)
    out2 = jax.block_until_ready(net_forward(x2, prep, block_b=8))
    assert out2.shape == (20, 10), out2.shape
    ref2 = reference_forward(x2, raw)
    assert bool(jnp.allclose(out2, ref2, atol=5e-2)), float(jnp.max(jnp.abs(out2 - ref2)))

    print("KERNEL_OK")
</pallas_src>

<mosaic_0001>
module attributes {stable_mosaic.version = 11 : i64} {
  func.func @_net_kernel(%arg0: i32, %arg1: memref<28x8x28xbf16, #tpu.memory_space<vmem>>, %arg2: memref<5x28x256xbf16, #tpu.memory_space<vmem>>, %arg3: memref<1x128xf32, #tpu.memory_space<vmem>>, %arg4: memref<5x128x256xbf16, #tpu.memory_space<vmem>>, %arg5: memref<1x128xf32, #tpu.memory_space<vmem>>, %arg6: memref<4x128x128xbf16, #tpu.memory_space<vmem>>, %arg7: memref<1x128xf32, #tpu.memory_space<vmem>>, %arg8: memref<128x128xbf16, #tpu.memory_space<vmem>>, %arg9: memref<1x128xf32, #tpu.memory_space<vmem>>, %arg10: memref<8x128xf32, #tpu.memory_space<vmem>>, %arg11: memref<12x8x128xbf16, #tpu.memory_space<vmem>>) attributes {dimension_semantics = [#tpu.dimension_semantics<parallel>], iteration_bounds = array<i64: 1>, scalar_prefetch = 0 : i64, scratch_operands = 1 : i64, tpu.core_type = #tpu.core_type<tc>, window_params = [{transform_indices = @transform_0, window_bounds = array<i64: 28, 8, 28>}, {pipeline_mode = #tpu.pipeline_mode<synchronous>, transform_indices = @transform_1, window_bounds = array<i64: 5, 28, 256>}, {pipeline_mode = #tpu.pipeline_mode<synchronous>, transform_indices = @transform_2, window_bounds = array<i64: 1, 128>}, {pipeline_mode = #tpu.pipeline_mode<synchronous>, transform_indices = @transform_3, window_bounds = array<i64: 5, 128, 256>}, {pipeline_mode = #tpu.pipeline_mode<synchronous>, transform_indices = @transform_4, window_bounds = array<i64: 1, 128>}, {pipeline_mode = #tpu.pipeline_mode<synchronous>, transform_indices = @transform_5, window_bounds = array<i64: 4, 128, 128>}, {pipeline_mode = #tpu.pipeline_mode<synchronous>, transform_indices = @transform_6, window_bounds = array<i64: 1, 128>}, {pipeline_mode = #tpu.pipeline_mode<synchronous>, transform_indices = @transform_7, window_bounds = array<i64: 128, 128>}, {pipeline_mode = #tpu.pipeline_mode<synchronous>, transform_indices = @transform_8, window_bounds = array<i64: 1, 128>}, {transform_indices = @transform_9, window_bounds = array<i64: 8, 128>}]} {
    %c0_i32 = arith.constant 0 : i32
    %c12_i32 = arith.constant 12 : i32
    %0 = arith.addi %c0_i32, %c12_i32 : i32
    %c1_i32 = arith.constant 1 : i32
    scf.for %arg12 = %c0_i32 to %0 step %c1_i32  : i32 {
      %c1_i32_315 = arith.constant 1 : i32
      %337 = arith.muli %arg12, %c1_i32_315 : i32
      %c0_i32_316 = arith.constant 0 : i32
      %338 = arith.addi %c0_i32_316, %337 : i32
      %cst_317 = arith.constant 0.000000e+00 : f32
      %339 = vector.broadcast %cst_317 : f32 to vector<8x256xf32>
      %c2_i32 = arith.constant 2 : i32
      %340 = arith.muli %c2_i32, %338 : i32
      %c0_i32_318 = arith.constant 0 : i32
      %341 = arith.addi %340, %c0_i32_318 : i32
      %c0_i32_319 = arith.constant 0 : i32
      %342 = arith.addi %341, %c0_i32_319 : i32
      %343 = arith.index_cast %342 : i32 to index
      %c0_320 = arith.constant 0 : index
      %c0_321 = arith.constant 0 : index
      %344 = vector.load %arg1[%343, %c0_320, %c0_321] : memref<28x8x28xbf16, #tpu.memory_space<vmem>>, vector<1x8x28xbf16>
      %345 = vector.shape_cast %344 : vector<1x8x28xbf16> to vector<8x28xbf16>
      %c0_322 = arith.constant 0 : index
      %c0_323 = arith.constant 0 : index
      %c0_324 = arith.constant 0 : index
      %346 = vector.load %arg2[%c0_322, %c0_323, %c0_324] : memref<5x28x256xbf16, #tpu.memory_space<vmem>>, vector<1x28x256xbf16>
      %347 = vector.shape_cast %346 : vector<1x28x256xbf16> to vector<28x256xbf16>
      %cst_325 = arith.constant dense<0.000000e+00> : vector<8x256xf32>
      %348 = tpu.matmul %345, %347, %cst_325 {dimension_numbers = #tpu.dot_dimension_numbers<[1], [0], [0], [1], [0, 0, 1, 1], [], []>} : vector<8x28xbf16>, vector<28x256xbf16>, vector<8x256xf32> -> vector<8x256xf32>
      %349 = arith.addf %339, %348 : vector<8x256xf32>
      %c2_i32_326 = arith.constant 2 : i32
      %350 = arith.muli %c2_i32_326, %338 : i32
      %c0_i32_327 = arith.constant 0 : i32
      %351 = arith.addi %350, %c0_i32_327 : i32
      %c1_i32_328 = arith.constant 1 : i32
      %352 = arith.addi %351, %c1_i32_328 : i32
      %353 = arith.index_cast %352 : i32 to index
      %c0_329 = arith.constant 0 : index
      %c0_330 = arith.constant 0 : index
      %354 = vector.load %arg1[%353, %c0_329, %c0_330] : memref<28x8x28xbf16, #tpu.memory_space<vmem>>, vector<1x8x28xbf16>
      %355 = vector.shape_cast %354 : vector<1x8x28xbf16> to vector<8x28xbf16>
      %c1_331 = arith.constant 1 : index
      %c0_332 = arith.constant 0 : index
      %c0_333 = arith.constant 0 : index
      %356 = vector.load %arg2[%c1_331, %c0_332, %c0_333] : memref<5x28x256xbf16, #tpu.memory_space<vmem>>, vector<1x28x256xbf16>
      %357 = vector.shape_cast %356 : vector<1x28x256xbf16> to vector<28x256xbf16>
      %cst_334 = arith.constant dense<0.000000e+00> : vector<8x256xf32>
      %358 = tpu.matmul %355, %357, %cst_334 {dimension_numbers = #tpu.dot_dimension_numbers<[1], [0], [0], [1], [0, 0, 1, 1], [], []>} : vector<8x28xbf16>, vector<28x256xbf16>, vector<8x256xf32> -> vector<8x256xf32>
      %359 = arith.addf %349, %358 : vector<8x256xf32>
      %c2_i32_335 = arith.constant 2 : i32
      %360 = arith.muli %c2_i32_335, %338 : i32
      %c0_i32_336 = arith.constant 0 : i32
      %361 = arith.addi %360, %c0_i32_336 : i32
      %c2_i32_337 = arith.constant 2 : i32
      %362 = arith.addi %361, %c2_i32_337 : i32
      %363 = arith.index_cast %362 : i32 to index
      %c0_338 = arith.constant 0 : index
      %c0_339 = arith.constant 0 : index
      %364 = vector.load %arg1[%363, %c0_338, %c0_339] : memref<28x8x28xbf16, #tpu.memory_space<vmem>>, vector<1x8x28xbf16>
      %365 = vector.shape_cast %364 : vector<1x8x28xbf16> to vector<8x28xbf16>
      %c2_340 = arith.constant 2 : index
      %c0_341 = arith.constant 0 : index
      %c0_342 = arith.constant 0 : index
      %366 = vector.load %arg2[%c2_340, %c0_341, %c0_342] : memref<5x28x256xbf16, #tpu.memory_space<vmem>>, vector<1x28x256xbf16>
      %367 = vector.shape_cast %366 : vector<1x28x256xbf16> to vector<28x256xbf16>
      %cst_343 = arith.constant dense<0.000000e+00> : vector<8x256xf32>
      %368 = tpu.matmul %365, %367, %cst_343 {dimension_numbers = #tpu.dot_dimension_numbers<[1], [0], [0], [1], [0, 0, 1, 1], [], []>} : vector<8x28xbf16>, vector<28x256xbf16>, vector<8x256xf32> -> vector<8x256xf32>
      %369 = arith.addf %359, %368 : vector<8x256xf32>
      %c2_i32_344 = arith.constant 2 : i32
      %370 = arith.muli %c2_i32_344, %338 : i32
      %c0_i32_345 = arith.constant 0 : i32
      %371 = arith.addi %370, %c0_i32_345 : i32
      %c3_i32 = arith.constant 3 : i32
      %372 = arith.addi %371, %c3_i32 : i32
      %373 = arith.index_cast %372 : i32 to index
      %c0_346 = arith.constant 0 : index
      %c0_347 = arith.constant 0 : index
      %374 = vector.load %arg1[%373, %c0_346, %c0_347] : memref<28x8x28xbf16, #tpu.memory_space<vmem>>, vector<1x8x28xbf16>
      %375 = vector.shape_cast %374 : vector<1x8x28xbf16> to vector<8x28xbf16>
      %c3_348 = arith.constant 3 : index
      %c0_349 = arith.constant 0 : index
      %c0_350 = arith.constant 0 : index
      %376 = vector.load %arg2[%c3_348, %c0_349, %c0_350] : memref<5x28x256xbf16, #tpu.memory_space<vmem>>, vector<1x28x256xbf16>
      %377 = vector.shape_cast %376 : vector<1x28x256xbf16> to vector<28x256xbf16>
      %cst_351 = arith.constant dense<0.000000e+00> : vector<8x256xf32>
      %378 = tpu.matmul %375, %377, %cst_351 {dimension_numbers = #tpu.dot_dimension_numbers<[1], [0], [0], [1], [0, 0, 1, 1], [], []>} : vector<8x28xbf16>, vector<28x256xbf16>, vector<8x256xf32> -> vector<8x256xf32>
      %379 = arith.addf %369, %378 : vector<8x256xf32>
      %c2_i32_352 = arith.constant 2 : i32
      %380 = arith.muli %c2_i32_352, %338 : i32
      %c0_i32_353 = arith.constant 0 : i32
      %381 = arith.addi %380, %c0_i32_353 : i32
      %c4_i32 = arith.constant 4 : i32
      %382 = arith.addi %381, %c4_i32 : i32
      %383 = arith.index_cast %382 : i32 to index
      %c0_354 = arith.constant 0 : index
      %c0_355 = arith.constant 0 : index
      %384 = vector.load %arg1[%383, %c0_354, %c0_355] : memref<28x8x28xbf16, #tpu.memory_space<vmem>>, vector<1x8x28xbf16>
      %385 = vector.shape_cast %384 : vector<1x8x28xbf16> to vector<8x28xbf16>
      %c4_356 = arith.constant 4 : index
      %c0_357 = arith.constant 0 : index
      %c0_358 = arith.constant 0 : index
      %386 = vector.load %arg2[%c4_356, %c0_357, %c0_358] : memref<5x28x256xbf16, #tpu.memory_space<vmem>>, vector<1x28x256xbf16>
      %387 = vector.shape_cast %386 : vector<1x28x256xbf16> to vector<28x256xbf16>
      %cst_359 = arith.constant dense<0.000000e+00> : vector<8x256xf32>
      %388 = tpu.matmul %385, %387, %cst_359 {dimension_numbers = #tpu.dot_dimension_numbers<[1], [0], [0], [1], [0, 0, 1, 1], [], []>} : vector<8x28xbf16>, vector<28x256xbf16>, vector<8x256xf32> -> vector<8x256xf32>
      %389 = arith.addf %379, %388 : vector<8x256xf32>
      %390 = vector.extract_strided_slice %389 {offsets = [0, 0], sizes = [8, 128], strides = [1, 1]} : vector<8x256xf32> to vector<8x128xf32>
      %391 = vector.extract_strided_slice %389 {offsets = [0, 128], sizes = [8, 128], strides = [1, 1]} : vector<8x256xf32> to vector<8x128xf32>
      %392 = arith.maximumf %390, %391 : vector<8x128xf32>
      %cst_360 = arith.constant 0.000000e+00 : f32
      %393 = vector.broadcast %cst_360 : f32 to vector<8x256xf32>
      %c2_i32_361 = arith.constant 2 : i32
      %394 = arith.muli %c2_i32_361, %338 : i32
      %c1_i32_362 = arith.constant 1 : i32
      %395 = arith.addi %394, %c1_i32_362 : i32
      %c0_i32_363 = arith.constant 0 : i32
      %396 = arith.addi %395, %c0_i32_363 : i32
      %397 = arith.index_cast %396 : i32 to index
      %c0_364 = arith.constant 0 : index
      %c0_365 = arith.constant 0 : index
      %398 = vector.load %arg1[%397, %c0_364, %c0_365] : memref<28x8x28xbf16, #tpu.memory_space<vmem>>, vector<1x8x28xbf16>
      %399 = vector.shape_cast %398 : vector<1x8x28xbf16> to vector<8x28xbf16>
      %c0_366 = arith.constant 0 : index
      %c0_367 = arith.constant 0 : index
      %c0_368 = arith.constant 0 : index
      %400 = vector.load %arg2[%c0_366, %c0_367, %c0_368] : memref<5x28x256xbf16, #tpu.memory_space<vmem>>, vector<1x28x256xbf16>
      %401 = vector.shape_cast %400 : vector<1x28x256xbf16> to vector<28x256xbf16>
      %cst_369 = arith.constant dense<0.000000e+00> : vector<8x256xf32>
      %402 = tpu.matmul %399, %401, %cst_369 {dimension_numbers = #tpu.dot_dimension_numbers<[1], [0], [0], [1], [0, 0, 1, 1], [], []>} : vector<8x28xbf16>, vector<28x256xbf16>, vector<8x256xf32> -> vector<8x256xf32>
      %403 = arith.addf %393, %402 : vector<8x256xf32>
      %c2_i32_370 = arith.constant 2 : i32
      %404 = arith.muli %c2_i32_370, %338 : i32
      %c1_i32_371 = arith.constant 1 : i32
      %405 = arith.addi %404, %c1_i32_371 : i32
      %c1_i32_372 = arith.constant 1 : i32
      %406 = arith.addi %405, %c1_i32_372 : i32
      %407 = arith.index_cast %406 : i32 to index
      %c0_373 = arith.constant 0 : index
      %c0_374 = arith.constant 0 : index
      %408 = vector.load %arg1[%407, %c0_373, %c0_374] : memref<28x8x28xbf16, #tpu.memory_space<vmem>>, vector<1x8x28xbf16>
      %409 = vector.shape_cast %408 : vector<1x8x28xbf16> to vector<8x28xbf16>
      %c1_375 = arith.constant 1 : index
      %c0_376 = arith.constant 0 : index
      %c0_377 = arith.constant 0 : index
      %410 = vector.load %arg2[%c1_375, %c0_376, %c0_377] : memref<5x28x256xbf16, #tpu.memory_space<vmem>>, vector<1x28x256xbf16>
      %411 = vector.shape_cast %410 : vector<1x28x256xbf16> to vector<28x256xbf16>
      %cst_378 = arith.constant dense<0.000000e+00> : vector<8x256xf32>
      %412 = tpu.matmul %409, %411, %cst_378 {dimension_numbers = #tpu.dot_dimension_numbers<[1], [0], [0], [1], [0, 0, 1, 1], [], []>} : vector<8x28xbf16>, vector<28x256xbf16>, vector<8x256xf32> -> vector<8x256xf32>
      %413 = arith.addf %403, %412 : vector<8x256xf32>
      %c2_i32_379 = arith.constant 2 : i32
      %414 = arith.muli %c2_i32_379, %338 : i32
      %c1_i32_380 = arith.constant 1 : i32
      %415 = arith.addi %414, %c1_i32_380 : i32
      %c2_i32_381 = arith.constant 2 : i32
      %416 = arith.addi %415, %c2_i32_381 : i32
      %417 = arith.index_cast %416 : i32 to index
      %c0_382 = arith.constant 0 : index
      %c0_383 = arith.constant 0 : index
      %418 = vector.load %arg1[%417, %c0_382, %c0_383] : memref<28x8x28xbf16, #tpu.memory_space<vmem>>, vector<1x8x28xbf16>
      %419 = vector.shape_cast %418 : vector<1x8x28xbf16> to vector<8x28xbf16>
      %c2_384 = arith.constant 2 : index
      %c0_385 = arith.constant 0 : index
      %c0_386 = arith.constant 0 : index
      %420 = vector.load %arg2[%c2_384, %c0_385, %c0_386] : memref<5x28x256xbf16, #tpu.memory_space<vmem>>, vector<1x28x256xbf16>
      %421 = vector.shape_cast %420 : vector<1x28x256xbf16> to vector<28x256xbf16>
      %cst_387 = arith.constant dense<0.000000e+00> : vector<8x256xf32>
      %422 = tpu.matmul %419, %421, %cst_387 {dimension_numbers = #tpu.dot_dimension_numbers<[1], [0], [0], [1], [0, 0, 1, 1], [], []>} : vector<8x28xbf16>, vector<28x256xbf16>, vector<8x256xf32> -> vector<8x256xf32>
      %423 = arith.addf %413, %422 : vector<8x256xf32>
      %c2_i32_388 = arith.constant 2 : i32
      %424 = arith.muli %c2_i32_388, %338 : i32
      %c1_i32_389 = arith.constant 1 : i32
      %425 = arith.addi %424, %c1_i32_389 : i32
      %c3_i32_390 = arith.constant 3 : i32
      %426 = arith.addi %425, %c3_i32_390 : i32
      %427 = arith.index_cast %426 : i32 to index
      %c0_391 = arith.constant 0 : index
      %c0_392 = arith.constant 0 : index
      %428 = vector.load %arg1[%427, %c0_391, %c0_392] : memref<28x8x28xbf16, #tpu.memory_space<vmem>>, vector<1x8x28xbf16>
      %429 = vector.shape_cast %428 : vector<1x8x28xbf16> to vector<8x28xbf16>
      %c3_393 = arith.constant 3 : index
      %c0_394 = arith.constant 0 : index
      %c0_395 = arith.constant 0 : index
      %430 = vector.load %arg2[%c3_393, %c0_394, %c0_395] : memref<5x28x256xbf16, #tpu.memory_space<vmem>>, vector<1x28x256xbf16>
      %431 = vector.shape_cast %430 : vector<1x28x256xbf16> to vector<28x256xbf16>
      %cst_396 = arith.constant dense<0.000000e+00> : vector<8x256xf32>
      %432 = tpu.matmul %429, %431, %cst_396 {dimension_numbers = #tpu.dot_dimension_numbers<[1], [0], [0], [1], [0, 0, 1, 1], [], []>} : vector<8x28xbf16>, vector<28x256xbf16>, vector<8x256xf32> -> vector<8x256xf32>
      %433 = arith.addf %423, %432 : vector<8x256xf32>
      %c2_i32_397 = arith.constant 2 : i32
      %434 = arith.muli %c2_i32_397, %338 : i32
      %c1_i32_398 = arith.constant 1 : i32
      %435 = arith.addi %434, %c1_i32_398 : i32
      %c4_i32_399 = arith.constant 4 : i32
      %436 = arith.addi %435, %c4_i32_399 : i32
      %437 = arith.index_cast %436 : i32 to index
      %c0_400 = arith.constant 0 : index
      %c0_401 = arith.constant 0 : index
      %438 = vector.load %arg1[%437, %c0_400, %c0_401] : memref<28x8x28xbf16, #tpu.memory_space<vmem>>, vector<1x8x28xbf16>
      %439 = vector.shape_cast %438 : vector<1x8x28xbf16> to vector<8x28xbf16>
      %c4_402 = arith.constant 4 : index
      %c0_403 = arith.constant 0 : index
      %c0_404 = arith.constant 0 : index
      %440 = vector.load %arg2[%c4_402, %c0_403, %c0_404] : memref<5x28x256xbf16, #tpu.memory_space<vmem>>, vector<1x28x256xbf16>
      %441 = vector.shape_cast %440 : vector<1x28x256xbf16> to vector<28x256xbf16>
      %cst_405 = arith.constant dense<0.000000e+00> : vector<8x256xf32>
      %442 = tpu.matmul %439, %441, %cst_405 {dimension_numbers = #tpu.dot_dimension_numbers<[1], [0], [0], [1], [0, 0, 1, 1], [], []>} : vector<8x28xbf16>, vector<28x256xbf16>, vector<8x256xf32> -> vector<8x256xf32>
      %443 = arith.addf %433, %442 : vector<8x256xf32>
      %444 = vector.extract_strided_slice %443 {offsets = [0, 0], sizes = [8, 128], strides = [1, 1]} : vector<8x256xf32> to vector<8x128xf32>
      %445 = vector.extract_strided_slice %443 {offsets = [0, 128], sizes = [8, 128], strides = [1, 1]} : vector<8x256xf32> to vector<8x128xf32>
      %446 = arith.maximumf %444, %445 : vector<8x128xf32>
      %447 = arith.maximumf %392, %446 : vector<8x128xf32>
      %c0_406 = arith.constant 0 : index
      %c0_407 = arith.constant 0 : index
      %448 = vector.load %arg3[%c0_406, %c0_407] : memref<1x128xf32, #tpu.memory_space<vmem>>, vector<1x128xf32>
      %449 = vector.broadcast %448 : vector<1x128xf32> to vector<8x128xf32>
      %450 = arith.addf %447, %449 : vector<8x128xf32>
      %cst_408 = arith.constant 0.000000e+00 : f32
      %451 = vector.broadcast %cst_408 : f32 to vector<8x128xf32>
      %452 = arith.maximumf %450, %451 : vector<8x128xf32>
      %453 = arith.truncf %452 : vector<8x128xf32> to vector<8x128xbf16>
      %454 = arith.index_cast %338 : i32 to index
      %c0_409 = arith.constant 0 : index
      %c0_410 = arith.constant 0 : index
      %455 = vector.load %arg11[%454, %c0_409, %c0_410] : memref<12x8x128xbf16, #tpu.memory_space<vmem>>, vector<1x8x128xbf16>
      %456 = vector.shape_cast %455 : vector<1x8x128xbf16> to vector<8x128xbf16>
      %457 = vector.shape_cast %453 : vector<8x128xbf16> to vector<1x8x128xbf16>
      tpu.vector_store %arg11[%454, %c0_409, %c0_410], %457 {strides = array<i32>} : memref<12x8x128xbf16, #tpu.memory_space<vmem>>, vector<1x8x128xbf16>,
    }
    %c12_i32_0 = arith.constant 12 : i32
    %c0 = arith.constant 0 : index
    %c0_1 = arith.constant 0 : index
    %1 = vector.load %arg7[%c0, %c0_1] : memref<1x128xf32, #tpu.memory_space<vmem>>, vector<1x128xf32>
    %2 = vector.shape_cast %1 : vector<1x128xf32> to vector<1x128xf32>
    %3 = vector.broadcast %2 : vector<1x128xf32> to vector<8x128xf32>
    %cst = arith.constant 0.000000e+00 : f32
    %4 = vector.broadcast %cst : f32 to vector<8x256xf32>
    %c0_2 = arith.constant 0 : index
    %c0_3 = arith.constant 0 : index
    %c0_4 = arith.constant 0 : index
    %5 = vector.load %arg11[%c0_2, %c0_3, %c0_4] : memref<12x8x128xbf16, #tpu.memory_space<vmem>>, vector<1x8x128xbf16>
    %6 = vector.shape_cast %5 : vector<1x8x128xbf16> to vector<8x128xbf16>
    %c0_5 = arith.constant 0 : index
    %c0_6 = arith.constant 0 : index
    %c0_7 = arith.constant 0 : index
    %7 = vector.load %arg4[%c0_5, %c0_6, %c0_7] : memref<5x128x256xbf16, #tpu.memory_space<vmem>>, vector<1x128x256xbf16>
    %8 = vector.shape_cast %7 : vector<1x128x256xbf16> to vector<128x256xbf16>
    %cst_8 = arith.constant dense<0.000000e+00> : vector<8x256xf32>
    %9 = tpu.matmul %6, %8, %cst_8 {dimension_numbers = #tpu.dot_dimension_numbers<[1], [0], [0], [1], [0, 0, 1, 1], [], []>} : vector<8x128xbf16>, vector<128x256xbf16>, vector<8x256xf32> -> vector<8x256xf32>
    %10 = arith.addf %4, %9 : vector<8x256xf32>
    %c1 = arith.constant 1 : index
    %c0_9 = arith.constant 0 : index
    %c0_10 = arith.constant 0 : index
    %11 = vector.load %arg11[%c1, %c0_9, %c0_10] : memref<12x8x128xbf16, #tpu.memory_space<vmem>>, vector<1x8x128xbf16>
    %12 = vector.shape_cast %11 : vector<1x8x128xbf16> to vector<8x128xbf16>
    %c1_11 = arith.constant 1 : index
    %c0_12 = arith.constant 0 : index
    %c0_13 = arith.constant 0 : index
    %13 = vector.load %arg4[%c1_11, %c0_12, %c0_13] : memref<5x128x256xbf16, #tpu.memory_space<vmem>>, vector<1x128x256xbf16>
    %14 = vector.shape_cast %13 : vector<1x128x256xbf16> to vector<128x256xbf16>
    %cst_14 = arith.constant dense<0.000000e+00> : vector<8x256xf32>
    %15 = tpu.matmul %12, %14, %cst_14 {dimension_numbers = #tpu.dot_dimension_numbers<[1], [0], [0], [1], [0, 0, 1, 1], [], []>} : vector<8x128xbf16>, vector<128x256xbf16>, vector<8x256xf32> -> vector<8x256xf32>
    %16 = arith.addf %10, %15 : vector<8x256xf32>
    %c2 = arith.constant 2 : index
    %c0_15 = arith.constant 0 : index
    %c0_16 = arith.constant 0 : index
    %17 = vector.load %arg11[%c2, %c0_15, %c0_16] : memref<12x8x128xbf16, #tpu.memory_space<vmem>>, vector<1x8x128xbf16>
    %18 = vector.shape_cast %17 : vector<1x8x128xbf16> to vector<8x128xbf16>
    %c2_17 = arith.constant 2 : index
    %c0_18 = arith.constant 0 : index
    %c0_19 = arith.constant 0 : index
    %19 = vector.load %arg4[%c2_17, %c0_18, %c0_19] : memref<5x128x256xbf16, #tpu.memory_space<vmem>>, vector<1x128x256xbf16>
    %20 = vector.shape_cast %19 : vector<1x128x256xbf16> to vector<128x256xbf16>
    %cst_20 = arith.constant dense<0.000000e+00> : vector<8x256xf32>
    %21 = tpu.matmul %18, %20, %cst_20 {dimension_numbers = #tpu.dot_dimension_numbers<[1], [0], [0], [1], [0, 0, 1, 1], [], []>} : vector<8x128xbf16>, vector<128x256xbf16>, vector<8x256xf32> -> vector<8x256xf32>
    %22 = arith.addf %16, %21 : vector<8x256xf32>
    %c3 = arith.constant 3 : index
    %c0_21 = arith.constant 0 : index
    %c0_22 = arith.constant 0 : index
    %23 = vector.load %arg11[%c3, %c0_21, %c0_22] : memref<12x8x128xbf16, #tpu.memory_space<vmem>>, vector<1x8x128xbf16>
    %24 = vector.shape_cast %23 : vector<1x8x128xbf16> to vector<8x128xbf16>
    %c3_23 = arith.constant 3 : index
    %c0_24 = arith.constant 0 : index
    %c0_25 = arith.constant 0 : index
    %25 = vector.load %arg4[%c3_23, %c0_24, %c0_25] : memref<5x128x256xbf16, #tpu.memory_space<vmem>>, vector<1x128x256xbf16>
    %26 = vector.shape_cast %25 : vector<1x128x256xbf16> to vector<128x256xbf16>
    %cst_26 = arith.constant dense<0.000000e+00> : vector<8x256xf32>
    %27 = tpu.matmul %24, %26, %cst_26 {dimension_numbers = #tpu.dot_dimension_numbers<[1], [0], [0], [1], [0, 0, 1, 1], [], []>} : vector<8x128xbf16>, vector<128x256xbf16>, vector<8x256xf32> -> vector<8x256xf32>
    %28 = arith.addf %22, %27 : vector<8x256xf32>
    %c4 = arith.constant 4 : index
    %c0_27 = arith.constant 0 : index
    %c0_28 = arith.constant 0 : index
    %29 = vector.load %arg11[%c4, %c0_27, %c0_28] : memref<12x8x128xbf16, #tpu.memory_space<vmem>>, vector<1x8x128xbf16>
    %30 = vector.shape_cast %29 : vector<1x8x128xbf16> to vector<8x128xbf16>
    %c4_29 = arith.constant 4 : index
    %c0_30 = arith.constant 0 : index
    %c0_31 = arith.constant 0 : index
    %31 = vector.load %arg4[%c4_29, %c0_30, %c0_31] : memref<5x128x256xbf16, #tpu.memory_space<vmem>>, vector<1x128x256xbf16>
    %32 = vector.shape_cast %31 : vector<1x128x256xbf16> to vector<128x256xbf16>
    %cst_32 = arith.constant dense<0.000000e+00> : vector<8x256xf32>
    %33 = tpu.matmul %30, %32, %cst_32 {dimension_numbers = #tpu.dot_dimension_numbers<[1], [0], [0], [1], [0, 0, 1, 1], [], []>} : vector<8x128xbf16>, vector<128x256xbf16>, vector<8x256xf32> -> vector<8x256xf32>
    %34 = arith.addf %28, %33 : vector<8x256xf32>
    %35 = vector.extract_strided_slice %34 {offsets = [0, 0], sizes = [8, 128], strides = [1, 1]} : vector<8x256xf32> to vector<8x128xf32>
    %36 = vector.extract_strided_slice %34 {offsets = [0, 128], sizes = [8, 128], strides = [1, 1]} : vector<8x256xf32> to vector<8x128xf32>
    %37 = arith.maximumf %35, %36 : vector<8x128xf32>
    %cst_33 = arith.constant 0.000000e+00 : f32
    %38 = vector.broadcast %cst_33 : f32 to vector<8x256xf32>
    %c1_34 = arith.constant 1 : index
    %c0_35 = arith.constant 0 : index
    %c0_36 = arith.constant 0 : index
    %39 = vector.load %arg11[%c1_34, %c0_35, %c0_36] : memref<12x8x128xbf16, #tpu.memory_space<vmem>>, vector<1x8x128xbf16>
    %40 = vector.shape_cast %39 : vector<1x8x128xbf16> to vector<8x128xbf16>
    %c0_37 = arith.constant 0 : index
    %c0_38 = arith.constant 0 : index
    %c0_39 = arith.constant 0 : index
    %41 = vector.load %arg4[%c0_37, %c0_38, %c0_39] : memref<5x128x256xbf16, #tpu.memory_space<vmem>>, vector<1x128x256xbf16>
    %42 = vector.shape_cast %41 : vector<1x128x256xbf16> to vector<128x256xbf16>
    %cst_40 = arith.constant dense<0.000000e+00> : vector<8x256xf32>
    %43 = tpu.matmul %40, %42, %cst_40 {dimension_numbers = #tpu.dot_dimension_numbers<[1], [0], [0], [1], [0, 0, 1, 1], [], []>} : vector<8x128xbf16>, vector<128x256xbf16>, vector<8x256xf32> -> vector<8x256xf32>
    %44 = arith.addf %38, %43 : vector<8x256xf32>
    %c2_41 = arith.constant 2 : index
    %c0_42 = arith.constant 0 : index
    %c0_43 = arith.constant 0 : index
    %45 = vector.load %arg11[%c2_41, %c0_42, %c0_43] : memref<12x8x128xbf16, #tpu.memory_space<vmem>>, vector<1x8x128xbf16>
    %46 = vector.shape_cast %45 : vector<1x8x128xbf16> to vector<8x128xbf16>
    %c1_44 = arith.constant 1 : index
    %c0_45 = arith.constant 0 : index
    %c0_46 = arith.constant 0 : index
    %47 = vector.load %arg4[%c1_44, %c0_45, %c0_46] : memref<5x128x256xbf16, #tpu.memory_space<vmem>>, vector<1x128x256xbf16>
    %48 = vector.shape_cast %47 : vector<1x128x256xbf16> to vector<128x256xbf16>
    %cst_47 = arith.constant dense<0.000000e+00> : vector<8x256xf32>
    %49 = tpu.matmul %46, %48, %cst_47 {dimension_numbers = #tpu.dot_dimension_numbers<[1], [0], [0], [1], [0, 0, 1, 1], [], []>} : vector<8x128xbf16>, vector<128x256xbf16>, vector<8x256xf32> -> vector<8x256xf32>
    %50 = arith.addf %44, %49 : vector<8x256xf32>
    %c3_48 = arith.constant 3 : index
    %c0_49 = arith.constant 0 : index
    %c0_50 = arith.constant 0 : index
    %51 = vector.load %arg11[%c3_48, %c0_49, %c0_50] : memref<12x8x128xbf16, #tpu.memory_space<vmem>>, vector<1x8x128xbf16>
    %52 = vector.shape_cast %51 : vector<1x8x128xbf16> to vector<8x128xbf16>
    %c2_51 = arith.constant 2 : index
    %c0_52 = arith.constant 0 : index
    %c0_53 = arith.constant 0 : index
    %53 = vector.load %arg4[%c2_51, %c0_52, %c0_53] : memref<5x128x256xbf16, #tpu.memory_space<vmem>>, vector<1x128x256xbf16>
    %54 = vector.shape_cast %53 : vector<1x128x256xbf16> to vector<128x256xbf16>
    %cst_54 = arith.constant dense<0.000000e+00> : vector<8x256xf32>
    %55 = tpu.matmul %52, %54, %cst_54 {dimension_numbers = #tpu.dot_dimension_numbers<[1], [0], [0], [1], [0, 0, 1, 1], [], []>} : vector<8x128xbf16>, vector<128x256xbf16>, vector<8x256xf32> -> vector<8x256xf32>
    %56 = arith.addf %50, %55 : vector<8x256xf32>
    %c4_55 = arith.constant 4 : index
    %c0_56 = arith.constant 0 : index
    %c0_57 = arith.constant 0 : index
    %57 = vector.load %arg11[%c4_55, %c0_56, %c0_57] : memref<12x8x128xbf16, #tpu.memory_space<vmem>>, vector<1x8x128xbf16>
    %58 = vector.shape_cast %57 : vector<1x8x128xbf16> to vector<8x128xbf16>
    %c3_58 = arith.constant 3 : index
    %c0_59 = arith.constant 0 : index
    %c0_60 = arith.constant 0 : index
    %59 = vector.load %arg4[%c3_58, %c0_59, %c0_60] : memref<5x128x256xbf16, #tpu.memory_space<vmem>>, vector<1x128x256xbf16>
    %60 = vector.shape_cast %59 : vector<1x128x256xbf16> to vector<128x256xbf16>
    %cst_61 = arith.constant dense<0.000000e+00> : vector<8x256xf32>
    %61 = tpu.matmul %58, %60, %cst_61 {dimension_numbers = #tpu.dot_dimension_numbers<[1], [0], [0], [1], [0, 0, 1, 1], [], []>} : vector<8x128xbf16>, vector<128x256xbf16>, vector<8x256xf32> -> vector<8x256xf32>
    %62 = arith.addf %56, %61 : vector<8x256xf32>
    %c5 = arith.constant 5 : index
    %c0_62 = arith.constant 0 : index
    %c0_63 = arith.constant 0 : index
    %63 = vector.load %arg11[%c5, %c0_62, %c0_63] : memref<12x8x128xbf16, #tpu.memory_space<vmem>>, vector<1x8x128xbf16>
    %64 = vector.shape_cast %63 : vector<1x8x128xbf16> to vector<8x128xbf16>
    %c4_64 = arith.constant 4 : index
    %c0_65 = arith.constant 0 : index
    %c0_66 = arith.constant 0 : index
    %65 = vector.load %arg4[%c4_64, %c0_65, %c0_66] : memref<5x128x256xbf16, #tpu.memory_space<vmem>>, vector<1x128x256xbf16>
    %66 = vector.shape_cast %65 : vector<1x128x256xbf16> to vector<128x256xbf16>
    %cst_67 = arith.constant dense<0.000000e+00> : vector<8x256xf32>
    %67 = tpu.matmul %64, %66, %cst_67 {dimension_numbers = #tpu.dot_dimension_numbers<[1], [0], [0], [1], [0, 0, 1, 1], [], []>} : vector<8x128xbf16>, vector<128x256xbf16>, vector<8x256xf32> -> vector<8x256xf32>
    %68 = arith.addf %62, %67 : vector<8x256xf32>
    %69 = vector.extract_strided_slice %68 {offsets = [0, 0], sizes = [8, 128], strides = [1, 1]} : vector<8x256xf32> to vector<8x128xf32>
    %70 = vector.extract_strided_slice %68 {offsets = [0, 128], sizes = [8, 128], strides = [1, 1]} : vector<8x256xf32> to vector<8x128xf32>
    %71 = arith.maximumf %69, %70 : vector<8x128xf32>
    %72 = arith.maximumf %37, %71 : vector<8x128xf32>
    %c0_68 = arith.constant 0 : index
    %c0_69 = arith.constant 0 : index
    %73 = vector.load %arg5[%c0_68, %c0_69] : memref<1x128xf32, #tpu.memory_space<vmem>>, vector<1x128xf32>
    %74 = vector.broadcast %73 : vector<1x128xf32> to vector<8x128xf32>
    %75 = arith.addf %72, %74 : vector<8x128xf32>
    %cst_70 = arith.constant 0.000000e+00 : f32
    %76 = vector.broadcast %cst_70 : f32 to vector<8x128xf32>
    %77 = arith.maximumf %75, %76 : vector<8x128xf32>
    %78 = arith.truncf %77 : vector<8x128xf32> to vector<8x128xbf16>
    %c0_71 = arith.constant 0 : index
    %c0_72 = arith.constant 0 : index
    %c0_73 = arith.constant 0 : index
    %79 = vector.load %arg6[%c0_71, %c0_72, %c0_73] : memref<4x128x128xbf16, #tpu.memory_space<vmem>>, vector<1x128x128xbf16>
    %80 = vector.shape_cast %79 : vector<1x128x128xbf16> to vector<128x128xbf16>
    %cst_74 = arith.constant dense<0.000000e+00> : vector<8x128xf32>
    %81 = tpu.matmul %78, %80, %cst_74 {dimension_numbers = #tpu.dot_dimension_numbers<[1], [0], [0], [1], [0, 0, 1, 1], [], []>} : vector<8x128xbf16>, vector<128x128xbf16>, vector<8x128xf32> -> vector<8x128xf32>
    %82 = arith.addf %3, %81 : vector<8x128xf32>
    %cst_75 = arith.constant 0.000000e+00 : f32
    %83 = vector.broadcast %cst_75 : f32 to vector<8x256xf32>
    %c2_76 = arith.constant 2 : index
    %c0_77 = arith.constant 0 : index
    %c0_78 = arith.constant 0 : index
    %84 = vector.load %arg11[%c2_76, %c0_77, %c0_78] : memref<12x8x128xbf16, #tpu.memory_space<vmem>>, vector<1x8x128xbf16>
    %85 = vector.shape_cast %84 : vector<1x8x128xbf16> to vector<8x128xbf16>
    %c0_79 = arith.constant 0 : index
    %c0_80 = arith.constant 0 : index
    %c0_81 = arith.constant 0 : index
    %86 = vector.load %arg4[%c0_79, %c0_80, %c0_81] : memref<5x128x256xbf16, #tpu.memory_space<vmem>>, vector<1x128x256xbf16>
    %87 = vector.shape_cast %86 : vector<1x128x256xbf16> to vector<128x256xbf16>
    %cst_82 = arith.constant dense<0.000000e+00> : vector<8x256xf32>
    %88 = tpu.matmul %85, %87, %cst_82 {dimension_numbers = #tpu.dot_dimension_numbers<[1], [0], [0], [1], [0, 0, 1, 1], [], []>} : vector<8x128xbf16>, vector<128x256xbf16>, vector<8x256xf32> -> vector<8x256xf32>
    %89 = arith.addf %83, %88 : vector<8x256xf32>
    %c3_83 = arith.constant 3 : index
    %c0_84 = arith.constant 0 : index
    %c0_85 = arith.constant 0 : index
    %90 = vector.load %arg11[%c3_83, %c0_84, %c0_85] : memref<12x8x128xbf16, #tpu.memory_space<vmem>>, vector<1x8x128xbf16>
    %91 = vector.shape_cast %90 : vector<1x8x128xbf16> to vector<8x128xbf16>
    %c1_86 = arith.constant 1 : index
    %c0_87 = arith.constant 0 : index
    %c0_88 = arith.constant 0 : index
    %92 = vector.load %arg4[%c1_86, %c0_87, %c0_88] : memref<5x128x256xbf16, #tpu.memory_space<vmem>>, vector<1x128x256xbf16>
    %93 = vector.shape_cast %92 : vector<1x128x256xbf16> to vector<128x256xbf16>
    %cst_89 = arith.constant dense<0.000000e+00> : vector<8x256xf32>
    %94 = tpu.matmul %91, %93, %cst_89 {dimension_numbers = #tpu.dot_dimension_numbers<[1], [0], [0], [1], [0, 0, 1, 1], [], []>} : vector<8x128xbf16>, vector<128x256xbf16>, vector<8x256xf32> -> vector<8x256xf32>
    %95 = arith.addf %89, %94 : vector<8x256xf32>
    %c4_90 = arith.constant 4 : index
    %c0_91 = arith.constant 0 : index
    %c0_92 = arith.constant 0 : index
    %96 = vector.load %arg11[%c4_90, %c0_91, %c0_92] : memref<12x8x128xbf16, #tpu.memory_space<vmem>>, vector<1x8x128xbf16>
    %97 = vector.shape_cast %96 : vector<1x8x128xbf16> to vector<8x128xbf16>
    %c2_93 = arith.constant 2 : index
    %c0_94 = arith.constant 0 : index
    %c0_95 = arith.constant 0 : index
    %98 = vector.load %arg4[%c2_93, %c0_94, %c0_95] : memref<5x128x256xbf16, #tpu.memory_space<vmem>>, vector<1x128x256xbf16>
    %99 = vector.shape_cast %98 : vector<1x128x256xbf16> to vector<128x256xbf16>
    %cst_96 = arith.constant dense<0.000000e+00> : vector<8x256xf32>
    %100 = tpu.matmul %97, %99, %cst_96 {dimension_numbers = #tpu.dot_dimension_numbers<[1], [0], [0], [1], [0, 0, 1, 1], [], []>} : vector<8x128xbf16>, vector<128x256xbf16>, vector<8x256xf32> -> vector<8x256xf32>
    %101 = arith.addf %95, %100 : vector<8x256xf32>
    %c5_97 = arith.constant 5 : index
    %c0_98 = arith.constant 0 : index
    %c0_99 = arith.constant 0 : index
    %102 = vector.load %arg11[%c5_97, %c0_98, %c0_99] : memref<12x8x128xbf16, #tpu.memory_space<vmem>>, vector<1x8x128xbf16>
    %103 = vector.shape_cast %102 : vector<1x8x128xbf16> to vector<8x128xbf16>
    %c3_100 = arith.constant 3 : index
    %c0_101 = arith.constant 0 : index
    %c0_102 = arith.constant 0 : index
    %104 = vector.load %arg4[%c3_100, %c0_101, %c0_102] : memref<5x128x256xbf16, #tpu.memory_space<vmem>>, vector<1x128x256xbf16>
    %105 = vector.shape_cast %104 : vector<1x128x256xbf16> to vector<128x256xbf16>
    %cst_103 = arith.constant dense<0.000000e+00> : vector<8x256xf32>
    %106 = tpu.matmul %103, %105, %cst_103 {dimension_numbers = #tpu.dot_dimension_numbers<[1], [0], [0], [1], [0, 0, 1, 1], [], []>} : vector<8x128xbf16>, vector<128x256xbf16>, vector<8x256xf32> -> vector<8x256xf32>
    %107 = arith.addf %101, %106 : vector<8x256xf32>
    %c6 = arith.constant 6 : index
    %c0_104 = arith.constant 0 : index
    %c0_105 = arith.constant 0 : index
    %108 = vector.load %arg11[%c6, %c0_104, %c0_105] : memref<12x8x128xbf16, #tpu.memory_space<vmem>>, vector<1x8x128xbf16>
    %109 = vector.shape_cast %108 : vector<1x8x128xbf16> to vector<8x128xbf16>
    %c4_106 = arith.constant 4 : index
    %c0_107 = arith.constant 0 : index
    %c0_108 = arith.constant 0 : index
    %110 = vector.load %arg4[%c4_106, %c0_107, %c0_108] : memref<5x128x256xbf16, #tpu.memory_space<vmem>>, vector<1x128x256xbf16>
    %111 = vector.shape_cast %110 : vector<1x128x256xbf16> to vector<128x256xbf16>
    %cst_109 = arith.constant dense<0.000000e+00> : vector<8x256xf32>
    %112 = tpu.matmul %109, %111, %cst_109 {dimension_numbers = #tpu.dot_dimension_numbers<[1], [0], [0], [1], [0, 0, 1, 1], [], []>} : vector<8x128xbf16>, vector<128x256xbf16>, vector<8x256xf32> -> vector<8x256xf32>
    %113 = arith.addf %107, %112 : vector<8x256xf32>
    %114 = vector.extract_strided_slice %113 {offsets = [0, 0], sizes = [8, 128], strides = [1, 1]} : vector<8x256xf32> to vector<8x128xf32>
    %115 = vector.extract_strided_slice %113 {offsets = [0, 128], sizes = [8, 128], strides = [1, 1]} : vector<8x256xf32> to vector<8x128xf32>
    %116 = arith.maximumf %114, %115 : vector<8x128xf32>
    %cst_110 = arith.constant 0.000000e+00 : f32
    %117 = vector.broadcast %cst_110 : f32 to vector<8x256xf32>
    %c3_111 = arith.constant 3 : index
    %c0_112 = arith.constant 0 : index
    %c0_113 = arith.constant 0 : index
    %118 = vector.load %arg11[%c3_111, %c0_112, %c0_113] : memref<12x8x128xbf16, #tpu.memory_space<vmem>>, vector<1x8x128xbf16>
    %119 = vector.shape_cast %118 : vector<1x8x128xbf16> to vector<8x128xbf16>
    %c0_114 = arith.constant 0 : index
    %c0_115 = arith.constant 0 : index
    %c0_116 = arith.constant 0 : index
    %120 = vector.load %arg4[%c0_114, %c0_115, %c0_116] : memref<5x128x256xbf16, #tpu.memory_space<vmem>>, vector<1x128x256xbf16>
    %121 = vector.shape_cast %120 : vector<1x128x256xbf16> to vector<128x256xbf16>
    %cst_117 = arith.constant dense<0.000000e+00> : vector<8x256xf32>
    %122 = tpu.matmul %119, %121, %cst_117 {dimension_numbers = #tpu.dot_dimension_numbers<[1], [0], [0], [1], [0, 0, 1, 1], [], []>} : vector<8x128xbf16>, vector<128x256xbf16>, vector<8x256xf32> -> vector<8x256xf32>
    %123 = arith.addf %117, %122 : vector<8x256xf32>
    %c4_118 = arith.constant 4 : index
    %c0_119 = arith.constant 0 : index
    %c0_120 = arith.constant 0 : index
    %124 = vector.load %arg11[%c4_118, %c0_119, %c0_120] : memref<12x8x128xbf16, #tpu.memory_space<vmem>>, vector<1x8x128xbf16>
    %125 = vector.shape_cast %124 : vector<1x8x128xbf16> to vector<8x128xbf16>
    %c1_121 = arith.constant 1 : index
    %c0_122 = arith.constant 0 : index
    %c0_123 = arith.constant 0 : index
    %126 = vector.load %arg4[%c1_121, %c0_122, %c0_123] : memref<5x128x256xbf16, #tpu.memory_space<vmem>>, vector<1x128x256xbf16>
    %127 = vector.shape_cast %126 : vector<1x128x256xbf16> to vector<128x256xbf16>
    %cst_124 = arith.constant dense<0.000000e+00> : vector<8x256xf32>
    %128 = tpu.matmul %125, %127, %cst_124 {dimension_numbers = #tpu.dot_dimension_numbers<[1], [0], [0], [1], [0, 0, 1, 1], [], []>} : vector<8x128xbf16>, vector<128x256xbf16>, vector<8x256xf32> -> vector<8x256xf32>
    %129 = arith.addf %123, %128 : vector<8x256xf32>
    %c5_125 = arith.constant 5 : index
    %c0_126 = arith.constant 0 : index
    %c0_127 = arith.constant 0 : index
    %130 = vector.load %arg11[%c5_125, %c0_126, %c0_127] : memref<12x8x128xbf16, #tpu.memory_space<vmem>>, vector<1x8x128xbf16>
    %131 = vector.shape_cast %130 : vector<1x8x128xbf16> to vector<8x128xbf16>
    %c2_128 = arith.constant 2 : index
    %c0_129 = arith.constant 0 : index
    %c0_130 = arith.constant 0 : index
    %132 = vector.load %arg4[%c2_128, %c0_129, %c0_130] : memref<5x128x256xbf16, #tpu.memory_space<vmem>>, vector<1x128x256xbf16>
    %133 = vector.shape_cast %132 : vector<1x128x256xbf16> to vector<128x256xbf16>
    %cst_131 = arith.constant dense<0.000000e+00> : vector<8x256xf32>
    %134 = tpu.matmul %131, %133, %cst_131 {dimension_numbers = #tpu.dot_dimension_numbers<[1], [0], [0], [1], [0, 0, 1, 1], [], []>} : vector<8x128xbf16>, vector<128x256xbf16>, vector<8x256xf32> -> vector<8x256xf32>
    %135 = arith.addf %129, %134 : vector<8x256xf32>
    %c6_132 = arith.constant 6 : index
    %c0_133 = arith.constant 0 : index
    %c0_134 = arith.constant 0 : index
    %136 = vector.load %arg11[%c6_132, %c0_133, %c0_134] : memref<12x8x128xbf16, #tpu.memory_space<vmem>>, vector<1x8x128xbf16>
    %137 = vector.shape_cast %136 : vector<1x8x128xbf16> to vector<8x128xbf16>
    %c3_135 = arith.constant 3 : index
    %c0_136 = arith.constant 0 : index
    %c0_137 = arith.constant 0 : index
    %138 = vector.load %arg4[%c3_135, %c0_136, %c0_137] : memref<5x128x256xbf16, #tpu.memory_space<vmem>>, vector<1x128x256xbf16>
    %139 = vector.shape_cast %138 : vector<1x128x256xbf16> to vector<128x256xbf16>
    %cst_138 = arith.constant dense<0.000000e+00> : vector<8x256xf32>
    %140 = tpu.matmul %137, %139, %cst_138 {dimension_numbers = #tpu.dot_dimension_numbers<[1], [0], [0], [1], [0, 0, 1, 1], [], []>} : vector<8x128xbf16>, vector<128x256xbf16>, vector<8x256xf32> -> vector<8x256xf32>
    %141 = arith.addf %135, %140 : vector<8x256xf32>
    %c7 = arith.constant 7 : index
    %c0_139 = arith.constant 0 : index
    %c0_140 = arith.constant 0 : index
    %142 = vector.load %arg11[%c7, %c0_139, %c0_140] : memref<12x8x128xbf16, #tpu.memory_space<vmem>>, vector<1x8x128xbf16>
    %143 = vector.shape_cast %142 : vector<1x8x128xbf16> to vector<8x128xbf16>
    %c4_141 = arith.constant 4 : index
    %c0_142 = arith.constant 0 : index
    %c0_143 = arith.constant 0 : index
    %144 = vector.load %arg4[%c4_141, %c0_142, %c0_143] : memref<5x128x256xbf16, #tpu.memory_space<vmem>>, vector<1x128x256xbf16>
    %145 = vector.shape_cast %144 : vector<1x128x256xbf16> to vector<128x256xbf16>
    %cst_144 = arith.constant dense<0.000000e+00> : vector<8x256xf32>
    %146 = tpu.matmul %143, %145, %cst_144 {dimension_numbers = #tpu.dot_dimension_numbers<[1], [0], [0], [1], [0, 0, 1, 1], [], []>} : vector<8x128xbf16>, vector<128x256xbf16>, vector<8x256xf32> -> vector<8x256xf32>
    %147 = arith.addf %141, %146 : vector<8x256xf32>
    %148 = vector.extract_strided_slice %147 {offsets = [0, 0], sizes = [8, 128], strides = [1, 1]} : vector<8x256xf32> to vector<8x128xf32>
    %149 = vector.extract_strided_slice %147 {offsets = [0, 128], sizes = [8, 128], strides = [1, 1]} : vector<8x256xf32> to vector<8x128xf32>
    %150 = arith.maximumf %148, %149 : vector<8x128xf32>
    %151 = arith.maximumf %116, %150 : vector<8x128xf32>
    %c0_145 = arith.constant 0 : index
    %c0_146 = arith.constant 0 : index
    %152 = vector.load %arg5[%c0_145, %c0_146] : memref<1x128xf32, #tpu.memory_space<vmem>>, vector<1x128xf32>
    %153 = vector.broadcast %152 : vector<1x128xf32> to vector<8x128xf32>
    %154 = arith.addf %151, %153 : vector<8x128xf32>
    %cst_147 = arith.constant 0.000000e+00 : f32
    %155 = vector.broadcast %cst_147 : f32 to vector<8x128xf32>
    %156 = arith.maximumf %154, %155 : vector<8x128xf32>
    %157 = arith.truncf %156 : vector<8x128xf32> to vector<8x128xbf16>
    %c1_148 = arith.constant 1 : index
    %c0_149 = arith.constant 0 : index
    %c0_150 = arith.constant 0 : index
    %158 = vector.load %arg6[%c1_148, %c0_149, %c0_150] : memref<4x128x128xbf16, #tpu.memory_space<vmem>>, vector<1x128x128xbf16>
    %159 = vector.shape_cast %158 : vector<1x128x128xbf16> to vector<128x128xbf16>
    %cst_151 = arith.constant dense<0.000000e+00> : vector<8x128xf32>
    %160 = tpu.matmul %157, %159, %cst_151 {dimension_numbers = #tpu.dot_dimension_numbers<[1], [0], [0], [1], [0, 0, 1, 1], [], []>} : vector<8x128xbf16>, vector<128x128xbf16>, vector<8x128xf32> -> vector<8x128xf32>
    %161 = arith.addf %82, %160 : vector<8x128xf32>
    %cst_152 = arith.constant 0.000000e+00 : f32
    %162 = vector.broadcast %cst_152 : f32 to vector<8x256xf32>
    %c4_153 = arith.constant 4 : index
    %c0_154 = arith.constant 0 : index
    %c0_155 = arith.constant 0 : index
    %163 = vector.load %arg11[%c4_153, %c0_154, %c0_155] : memref<12x8x128xbf16, #tpu.memory_space<vmem>>, vector<1x8x128xbf16>
    %164 = vector.shape_cast %163 : vector<1x8x128xbf16> to vector<8x128xbf16>
    %c0_156 = arith.constant 0 : index
    %c0_157 = arith.constant 0 : index
    %c0_158 = arith.constant 0 : index
    %165 = vector.load %arg4[%c0_156, %c0_157, %c0_158] : memref<5x128x256xbf16, #tpu.memory_space<vmem>>, vector<1x128x256xbf16>
    %166 = vector.shape_cast %165 : vector<1x128x256xbf16> to vector<128x256xbf16>
    %cst_159 = arith.constant dense<0.000000e+00> : vector<8x256xf32>
    %167 = tpu.matmul %164, %166, %cst_159 {dimension_numbers = #tpu.dot_dimension_numbers<[1], [0], [0], [1], [0, 0, 1, 1], [], []>} : vector<8x128xbf16>, vector<128x256xbf16>, vector<8x256xf32> -> vector<8x256xf32>
    %168 = arith.addf %162, %167 : vector<8x256xf32>
    %c5_160 = arith.constant 5 : index
    %c0_161 = arith.constant 0 : index
    %c0_162 = arith.constant 0 : index
    %169 = vector.load %arg11[%c5_160, %c0_161, %c0_162] : memref<12x8x128xbf16, #tpu.memory_space<vmem>>, vector<1x8x128xbf16>
    %170 = vector.shape_cast %169 : vector<1x8x128xbf16> to vector<8x128xbf16>
    %c1_163 = arith.constant 1 : index
    %c0_164 = arith.constant 0 : index
    %c0_165 = arith.constant 0 : index
    %171 = vector.load %arg4[%c1_163, %c0_164, %c0_165] : memref<5x128x256xbf16, #tpu.memory_space<vmem>>, vector<1x128x256xbf16>
    %172 = vector.shape_cast %171 : vector<1x128x256xbf16> to vector<128x256xbf16>
    %cst_166 = arith.constant dense<0.000000e+00> : vector<8x256xf32>
    %173 = tpu.matmul %170, %172, %cst_166 {dimension_numbers = #tpu.dot_dimension_numbers<[1], [0], [0], [1], [0, 0, 1, 1], [], []>} : vector<8x128xbf16>, vector<128x256xbf16>, vector<8x256xf32> -> vector<8x256xf32>
    %174 = arith.addf %168, %173 : vector<8x256xf32>
    %c6_167 = arith.constant 6 : index
    %c0_168 = arith.constant 0 : index
    %c0_169 = arith.constant 0 : index
    %175 = vector.load %arg11[%c6_167, %c0_168, %c0_169] : memref<12x8x128xbf16, #tpu.memory_space<vmem>>, vector<1x8x128xbf16>
    %176 = vector.shape_cast %175 : vector<1x8x128xbf16> to vector<8x128xbf16>
    %c2_170 = arith.constant 2 : index
    %c0_171 = arith.constant 0 : index
    %c0_172 = arith.constant 0 : index
    %177 = vector.load %arg4[%c2_170, %c0_171, %c0_172] : memref<5x128x256xbf16, #tpu.memory_space<vmem>>, vector<1x128x256xbf16>
    %178 = vector.shape_cast %177 : vector<1x128x256xbf16> to vector<128x256xbf16>
    %cst_173 = arith.constant dense<0.000000e+00> : vector<8x256xf32>
    %179 = tpu.matmul %176, %178, %cst_173 {dimension_numbers = #tpu.dot_dimension_numbers<[1], [0], [0], [1], [0, 0, 1, 1], [], []>} : vector<8x128xbf16>, vector<128x256xbf16>, vector<8x256xf32> -> vector<8x256xf32>
    %180 = arith.addf %174, %179 : vector<8x256xf32>
    %c7_174 = arith.constant 7 : index
    %c0_175 = arith.constant 0 : index
    %c0_176 = arith.constant 0 : index
    %181 = vector.load %arg11[%c7_174, %c0_175, %c0_176] : memref<12x8x128xbf16, #tpu.memory_space<vmem>>, vector<1x8x128xbf16>
    %182 = vector.shape_cast %181 : vector<1x8x128xbf16> to vector<8x128xbf16>
    %c3_177 = arith.constant 3 : index
    %c0_178 = arith.constant 0 : index
    %c0_179 = arith.constant 0 : index
    %183 = vector.load %arg4[%c3_177, %c0_178, %c0_179] : memref<5x128x256xbf16, #tpu.memory_space<vmem>>, vector<1x128x256xbf16>
    %184 = vector.shape_cast %183 : vector<1x128x256xbf16> to vector<128x256xbf16>
    %cst_180 = arith.constant dense<0.000000e+00> : vector<8x256xf32>
    %185 = tpu.matmul %182, %184, %cst_180 {dimension_numbers = #tpu.dot_dimension_numbers<[1], [0], [0], [1], [0, 0, 1, 1], [], []>} : vector<8x128xbf16>, vector<128x256xbf16>, vector<8x256xf32> -> vector<8x256xf32>
    %186 = arith.addf %180, %185 : vector<8x256xf32>
    %c8 = arith.constant 8 : index
    %c0_181 = arith.constant 0 : index
    %c0_182 = arith.constant 0 : index
    %187 = vector.load %arg11[%c8, %c0_181, %c0_182] : memref<12x8x128xbf16, #tpu.memory_space<vmem>>, vector<1x8x128xbf16>
    %188 = vector.shape_cast %187 : vector<1x8x128xbf16> to vector<8x128xbf16>
    %c4_183 = arith.constant 4 : index
    %c0_184 = arith.constant 0 : index
    %c0_185 = arith.constant 0 : index
    %189 = vector.load %arg4[%c4_183, %c0_184, %c0_185] : memref<5x128x256xbf16, #tpu.memory_space<vmem>>, vector<1x128x256xbf16>
    %190 = vector.shape_cast %189 : vector<1x128x256xbf16> to vector<128x256xbf16>
    %cst_186 = arith.constant dense<0.000000e+00> : vector<8x256xf32>
    %191 = tpu.matmul %188, %190, %cst_186 {dimension_numbers = #tpu.dot_dimension_numbers<[1], [0], [0], [1], [0, 0, 1, 1], [], []>} : vector<8x128xbf16>, vector<128x256xbf16>, vector<8x256xf32> -> vector<8x256xf32>
    %192 = arith.addf %186, %191 : vector<8x256xf32>
    %193 = vector.extract_strided_slice %192 {offsets = [0, 0], sizes = [8, 128], strides = [1, 1]} : vector<8x256xf32> to vector<8x128xf32>
    %194 = vector.extract_strided_slice %192 {offsets = [0, 128], sizes = [8, 128], strides = [1, 1]} : vector<8x256xf32> to vector<8x128xf32>
    %195 = arith.maximumf %193, %194 : vector<8x128xf32>
    %cst_187 = arith.constant 0.000000e+00 : f32
    %196 = vector.broadcast %cst_187 : f32 to vector<8x256xf32>
    %c5_188 = arith.constant 5 : index
    %c0_189 = arith.constant 0 : index
    %c0_190 = arith.constant 0 : index
    %197 = vector.load %arg11[%c5_188, %c0_189, %c0_190] : memref<12x8x128xbf16, #tpu.memory_space<vmem>>, vector<1x8x128xbf16>
    %198 = vector.shape_cast %197 : vector<1x8x128xbf16> to vector<8x128xbf16>
    %c0_191 = arith.constant 0 : index
    %c0_192 = arith.constant 0 : index
    %c0_193 = arith.constant 0 : index
    %199 = vector.load %arg4[%c0_191, %c0_192, %c0_193] : memref<5x128x256xbf16, #tpu.memory_space<vmem>>, vector<1x128x256xbf16>
    %200 = vector.shape_cast %199 : vector<1x128x256xbf16> to vector<128x256xbf16>
    %cst_194 = arith.constant dense<0.000000e+00> : vector<8x256xf32>
    %201 = tpu.matmul %198, %200, %cst_194 {dimension_numbers = #tpu.dot_dimension_numbers<[1], [0], [0], [1], [0, 0, 1, 1], [], []>} : vector<8x128xbf16>, vector<128x256xbf16>, vector<8x256xf32> -> vector<8x256xf32>
    %202 = arith.addf %196, %201 : vector<8x256xf32>
    %c6_195 = arith.constant 6 : index
    %c0_196 = arith.constant 0 : index
    %c0_197 = arith.constant 0 : index
    %203 = vector.load %arg11[%c6_195, %c0_196, %c0_197] : memref<12x8x128xbf16, #tpu.memory_space<vmem>>, vector<1x8x128xbf16>
    %204 = vector.shape_cast %203 : vector<1x8x128xbf16> to vector<8x128xbf16>
    %c1_198 = arith.constant 1 : index
    %c0_199 = arith.constant 0 : index
    %c0_200 = arith.constant 0 : index
    %205 = vector.load %arg4[%c1_198, %c0_199, %c0_200] : memref<5x128x256xbf16, #tpu.memory_space<vmem>>, vector<1x128x256xbf16>
    %206 = vector.shape_cast %205 : vector<1x128x256xbf16> to vector<128x256xbf16>
    %cst_201 = arith.constant dense<0.000000e+00> : vector<8x256xf32>
    %207 = tpu.matmul %204, %206, %cst_201 {dimension_numbers = #tpu.dot_dimension_numbers<[1], [0], [0], [1], [0, 0, 1, 1], [], []>} : vector<8x128xbf16>, vector<128x256xbf16>, vector<8x256xf32> -> vector<8x256xf32>
    %208 = arith.addf %202, %207 : vector<8x256xf32>
    %c7_202 = arith.constant 7 : index
    %c0_203 = arith.constant 0 : index
    %c0_204 = arith.constant 0 : index
    %209 = vector.load %arg11[%c7_202, %c0_203, %c0_204] : memref<12x8x128xbf16, #tpu.memory_space<vmem>>, vector<1x8x128xbf16>
    %210 = vector.shape_cast %209 : vector<1x8x128xbf16> to vector<8x128xbf16>
    %c2_205 = arith.constant 2 : index
    %c0_206 = arith.constant 0 : index
    %c0_207 = arith.constant 0 : index
    %211 = vector.load %arg4[%c2_205, %c0_206, %c0_207] : memref<5x128x256xbf16, #tpu.memory_space<vmem>>, vector<1x128x256xbf16>
    %212 = vector.shape_cast %211 : vector<1x128x256xbf16> to vector<128x256xbf16>
    %cst_208 = arith.constant dense<0.000000e+00> : vector<8x256xf32>
    %213 = tpu.matmul %210, %212, %cst_208 {dimension_numbers = #tpu.dot_dimension_numbers<[1], [0], [0], [1], [0, 0, 1, 1], [], []>} : vector<8x128xbf16>, vector<128x256xbf16>, vector<8x256xf32> -> vector<8x256xf32>
    %214 = arith.addf %208, %213 : vector<8x256xf32>
    %c8_209 = arith.constant 8 : index
    %c0_210 = arith.constant 0 : index
    %c0_211 = arith.constant 0 : index
    %215 = vector.load %arg11[%c8_209, %c0_210, %c0_211] : memref<12x8x128xbf16, #tpu.memory_space<vmem>>, vector<1x8x128xbf16>
    %216 = vector.shape_cast %215 : vector<1x8x128xbf16> to vector<8x128xbf16>
    %c3_212 = arith.constant 3 : index
    %c0_213 = arith.constant 0 : index
    %c0_214 = arith.constant 0 : index
    %217 = vector.load %arg4[%c3_212, %c0_213, %c0_214] : memref<5x128x256xbf16, #tpu.memory_space<vmem>>, vector<1x128x256xbf16>
    %218 = vector.shape_cast %217 : vector<1x128x256xbf16> to vector<128x256xbf16>
    %cst_215 = arith.constant dense<0.000000e+00> : vector<8x256xf32>
    %219 = tpu.matmul %216, %218, %cst_215 {dimension_numbers = #tpu.dot_dimension_numbers<[1], [0], [0], [1], [0, 0, 1, 1], [], []>} : vector<8x128xbf16>, vector<128x256xbf16>, vector<8x256xf32> -> vector<8x256xf32>
    %220 = arith.addf %214, %219 : vector<8x256xf32>
    %c9 = arith.constant 9 : index
    %c0_216 = arith.constant 0 : index
    %c0_217 = arith.constant 0 : index
    %221 = vector.load %arg11[%c9, %c0_216, %c0_217] : memref<12x8x128xbf16, #tpu.memory_space<vmem>>, vector<1x8x128xbf16>
    %222 = vector.shape_cast %221 : vector<1x8x128xbf16> to vector<8x128xbf16>
    %c4_218 = arith.constant 4 : index
    %c0_219 = arith.constant 0 : index
    %c0_220 = arith.constant 0 : index
    %223 = vector.load %arg4[%c4_218, %c0_219, %c0_220] : memref<5x128x256xbf16, #tpu.memory_space<vmem>>, vector<1x128x256xbf16>
    %224 = vector.shape_cast %223 : vector<1x128x256xbf16> to vector<128x256xbf16>
    %cst_221 = arith.constant dense<0.000000e+00> : vector<8x256xf32>
    %225 = tpu.matmul %222, %224, %cst_221 {dimension_numbers = #tpu.dot_dimension_numbers<[1], [0], [0], [1], [0, 0, 1, 1], [], []>} : vector<8x128xbf16>, vector<128x256xbf16>, vector<8x256xf32> -> vector<8x256xf32>
    %226 = arith.addf %220, %225 : vector<8x256xf32>
    %227 = vector.extract_strided_slice %226 {offsets = [0, 0], sizes = [8, 128], strides = [1, 1]} : vector<8x256xf32> to vector<8x128xf32>
    %228 = vector.extract_strided_slice %226 {offsets = [0, 128], sizes = [8, 128], strides = [1, 1]} : vector<8x256xf32> to vector<8x128xf32>
    %229 = arith.maximumf %227, %228 : vector<8x128xf32>
    %230 = arith.maximumf %195, %229 : vector<8x128xf32>
    %c0_222 = arith.constant 0 : index
    %c0_223 = arith.constant 0 : index
    %231 = vector.load %arg5[%c0_222, %c0_223] : memref<1x128xf32, #tpu.memory_space<vmem>>, vector<1x128xf32>
    %232 = vector.broadcast %231 : vector<1x128xf32> to vector<8x128xf32>
    %233 = arith.addf %230, %232 : vector<8x128xf32>
    %cst_224 = arith.constant 0.000000e+00 : f32
    %234 = vector.broadcast %cst_224 : f32 to vector<8x128xf32>
    %235 = arith.maximumf %233, %234 : vector<8x128xf32>
    %236 = arith.truncf %235 : vector<8x128xf32> to vector<8x128xbf16>
    %c2_225 = arith.constant 2 : index
    %c0_226 = arith.constant 0 : index
    %c0_227 = arith.constant 0 : index
    %237 = vector.load %arg6[%c2_225, %c0_226, %c0_227] : memref<4x128x128xbf16, #tpu.memory_space<vmem>>, vector<1x128x128xbf16>
    %238 = vector.shape_cast %237 : vector<1x128x128xbf16> to vector<128x128xbf16>
    %cst_228 = arith.constant dense<0.000000e+00> : vector<8x128xf32>
    %239 = tpu.matmul %236, %238, %cst_228 {dimension_numbers = #tpu.dot_dimension_numbers<[1], [0], [0], [1], [0, 0, 1, 1], [], []>} : vector<8x128xbf16>, vector<128x128xbf16>, vector<8x128xf32> -> vector<8x128xf32>
    %240 = arith.addf %161, %239 : vector<8x128xf32>
    %cst_229 = arith.constant 0.000000e+00 : f32
    %241 = vector.broadcast %cst_229 : f32 to vector<8x256xf32>
    %c6_230 = arith.constant 6 : index
    %c0_231 = arith.constant 0 : index
    %c0_232 = arith.constant 0 : index
    %242 = vector.load %arg11[%c6_230, %c0_231, %c0_232] : memref<12x8x128xbf16, #tpu.memory_space<vmem>>, vector<1x8x128xbf16>
    %243 = vector.shape_cast %242 : vector<1x8x128xbf16> to vector<8x128xbf16>
    %c0_233 = arith.constant 0 : index
    %c0_234 = arith.constant 0 : index
    %c0_235 = arith.constant 0 : index
    %244 = vector.load %arg4[%c0_233, %c0_234, %c0_235] : memref<5x128x256xbf16, #tpu.memory_space<vmem>>, vector<1x128x256xbf16>
    %245 = vector.shape_cast %244 : vector<1x128x256xbf16> to vector<128x256xbf16>
    %cst_236 = arith.constant dense<0.000000e+00> : vector<8x256xf32>
    %246 = tpu.matmul %243, %245, %cst_236 {dimension_numbers = #tpu.dot_dimension_numbers<[1], [0], [0], [1], [0, 0, 1, 1], [], []>} : vector<8x128xbf16>, vector<128x256xbf16>, vector<8x256xf32> -> vector<8x256xf32>
    %247 = arith.addf %241, %246 : vector<8x256xf32>
    %c7_237 = arith.constant 7 : index
    %c0_238 = arith.constant 0 : index
    %c0_239 = arith.constant 0 : index
    %248 = vector.load %arg11[%c7_237, %c0_238, %c0_239] : memref<12x8x128xbf16, #tpu.memory_space<vmem>>, vector<1x8x128xbf16>
    %249 = vector.shape_cast %248 : vector<1x8x128xbf16> to vector<8x128xbf16>
    %c1_240 = arith.constant 1 : index
    %c0_241 = arith.constant 0 : index
    %c0_242 = arith.constant 0 : index
    %250 = vector.load %arg4[%c1_240, %c0_241, %c0_242] : memref<5x128x256xbf16, #tpu.memory_space<vmem>>, vector<1x128x256xbf16>
    %251 = vector.shape_cast %250 : vector<1x128x256xbf16> to vector<128x256xbf16>
    %cst_243 = arith.constant dense<0.000000e+00> : vector<8x256xf32>
    %252 = tpu.matmul %249, %251, %cst_243 {dimension_numbers = #tpu.dot_dimension_numbers<[1], [0], [0], [1], [0, 0, 1, 1], [], []>} : vector<8x128xbf16>, vector<128x256xbf16>, vector<8x256xf32> -> vector<8x256xf32>
    %253 = arith.addf %247, %252 : vector<8x256xf32>
    %c8_244 = arith.constant 8 : index
    %c0_245 = arith.constant 0 : index
    %c0_246 = arith.constant 0 : index
    %254 = vector.load %arg11[%c8_244, %c0_245, %c0_246] : memref<12x8x128xbf16, #tpu.memory_space<vmem>>, vector<1x8x128xbf16>
    %255 = vector.shape_cast %254 : vector<1x8x128xbf16> to vector<8x128xbf16>
    %c2_247 = arith.constant 2 : index
    %c0_248 = arith.constant 0 : index
    %c0_249 = arith.constant 0 : index
    %256 = vector.load %arg4[%c2_247, %c0_248, %c0_249] : memref<5x128x256xbf16, #tpu.memory_space<vmem>>, vector<1x128x256xbf16>
    %257 = vector.shape_cast %256 : vector<1x128x256xbf16> to vector<128x256xbf16>
    %cst_250 = arith.constant dense<0.000000e+00> : vector<8x256xf32>
    %258 = tpu.matmul %255, %257, %cst_250 {dimension_numbers = #tpu.dot_dimension_numbers<[1], [0], [0], [1], [0, 0, 1, 1], [], []>} : vector<8x128xbf16>, vector<128x256xbf16>, vector<8x256xf32> -> vector<8x256xf32>
    %259 = arith.addf %253, %258 : vector<8x256xf32>
    %c9_251 = arith.constant 9 : index
    %c0_252 = arith.constant 0 : index
    %c0_253 = arith.constant 0 : index
    %260 = vector.load %arg11[%c9_251, %c0_252, %c0_253] : memref<12x8x128xbf16, #tpu.memory_space<vmem>>, vector<1x8x128xbf16>
    %261 = vector.shape_cast %260 : vector<1x8x128xbf16> to vector<8x128xbf16>
    %c3_254 = arith.constant 3 : index
    %c0_255 = arith.constant 0 : index
    %c0_256 = arith.constant 0 : index
    %262 = vector.load %arg4[%c3_254, %c0_255, %c0_256] : memref<5x128x256xbf16, #tpu.memory_space<vmem>>, vector<1x128x256xbf16>
    %263 = vector.shape_cast %262 : vector<1x128x256xbf16> to vector<128x256xbf16>
    %cst_257 = arith.constant dense<0.000000e+00> : vector<8x256xf32>
    %264 = tpu.matmul %261, %263, %cst_257 {dimension_numbers = #tpu.dot_dimension_numbers<[1], [0], [0], [1], [0, 0, 1, 1], [], []>} : vector<8x128xbf16>, vector<128x256xbf16>, vector<8x256xf32> -> vector<8x256xf32>
    %265 = arith.addf %259, %264 : vector<8x256xf32>
    %c10 = arith.constant 10 : index
    %c0_258 = arith.constant 0 : index
    %c0_259 = arith.constant 0 : index
    %266 = vector.load %arg11[%c10, %c0_258, %c0_259] : memref<12x8x128xbf16, #tpu.memory_space<vmem>>, vector<1x8x128xbf16>
    %267 = vector.shape_cast %266 : vector<1x8x128xbf16> to vector<8x128xbf16>
    %c4_260 = arith.constant 4 : index
    %c0_261 = arith.constant 0 : index
    %c0_262 = arith.constant 0 : index
    %268 = vector.load %arg4[%c4_260, %c0_261, %c0_262] : memref<5x128x256xbf16, #tpu.memory_space<vmem>>, vector<1x128x256xbf16>
    %269 = vector.shape_cast %268 : vector<1x128x256xbf16> to vector<128x256xbf16>
    %cst_263 = arith.constant dense<0.000000e+00> : vector<8x256xf32>
    %270 = tpu.matmul %267, %269, %cst_263 {dimension_numbers = #tpu.dot_dimension_numbers<[1], [0], [0], [1], [0, 0, 1, 1], [], []>} : vector<8x128xbf16>, vector<128x256xbf16>, vector<8x256xf32> -> vector<8x256xf32>
    %271 = arith.addf %265, %270 : vector<8x256xf32>
    %272 = vector.extract_strided_slice %271 {offsets = [0, 0], sizes = [8, 128], strides = [1, 1]} : vector<8x256xf32> to vector<8x128xf32>
    %273 = vector.extract_strided_slice %271 {offsets = [0, 128], sizes = [8, 128], strides = [1, 1]} : vector<8x256xf32> to vector<8x128xf32>
    %274 = arith.maximumf %272, %273 : vector<8x128xf32>
    %cst_264 = arith.constant 0.000000e+00 : f32
    %275 = vector.broadcast %cst_264 : f32 to vector<8x256xf32>
    %c7_265 = arith.constant 7 : index
    %c0_266 = arith.constant 0 : index
    %c0_267 = arith.constant 0 : index
    %276 = vector.load %arg11[%c7_265, %c0_266, %c0_267] : memref<12x8x128xbf16, #tpu.memory_space<vmem>>, vector<1x8x128xbf16>
    %277 = vector.shape_cast %276 : vector<1x8x128xbf16> to vector<8x128xbf16>
    %c0_268 = arith.constant 0 : index
    %c0_269 = arith.constant 0 : index
    %c0_270 = arith.constant 0 : index
    %278 = vector.load %arg4[%c0_268, %c0_269, %c0_270] : memref<5x128x256xbf16, #tpu.memory_space<vmem>>, vector<1x128x256xbf16>
    %279 = vector.shape_cast %278 : vector<1x128x256xbf16> to vector<128x256xbf16>
    %cst_271 = arith.constant dense<0.000000e+00> : vector<8x256xf32>
    %280 = tpu.matmul %277, %279, %cst_271 {dimension_numbers = #tpu.dot_dimension_numbers<[1], [0], [0], [1], [0, 0, 1, 1], [], []>} : vector<8x128xbf16>, vector<128x256xbf16>, vector<8x256xf32> -> vector<8x256xf32>
    %281 = arith.addf %275, %280 : vector<8x256xf32>
    %c8_272 = arith.constant 8 : index
    %c0_273 = arith.constant 0 : index
    %c0_274 = arith.constant 0 : index
    %282 = vector.load %arg11[%c8_272, %c0_273, %c0_274] : memref<12x8x128xbf16, #tpu.memory_space<vmem>>, vector<1x8x128xbf16>
    %283 = vector.shape_cast %282 : vector<1x8x128xbf16> to vector<8x128xbf16>
    %c1_275 = arith.constant 1 : index
    %c0_276 = arith.constant 0 : index
    %c0_277 = arith.constant 0 : index
    %284 = vector.load %arg4[%c1_275, %c0_276, %c0_277] : memref<5x128x256xbf16, #tpu.memory_space<vmem>>, vector<1x128x256xbf16>
    %285 = vector.shape_cast %284 : vector<1x128x256xbf16> to vector<128x256xbf16>
    %cst_278 = arith.constant dense<0.000000e+00> : vector<8x256xf32>
    %286 = tpu.matmul %283, %285, %cst_278 {dimension_numbers = #tpu.dot_dimension_numbers<[1], [0], [0], [1], [0, 0, 1, 1], [], []>} : vector<8x128xbf16>, vector<128x256xbf16>, vector<8x256xf32> -> vector<8x256xf32>
    %287 = arith.addf %281, %286 : vector<8x256xf32>
    %c9_279 = arith.constant 9 : index
    %c0_280 = arith.constant 0 : index
    %c0_281 = arith.constant 0 : index
    %288 = vector.load %arg11[%c9_279, %c0_280, %c0_281] : memref<12x8x128xbf16, #tpu.memory_space<vmem>>, vector<1x8x128xbf16>
    %289 = vector.shape_cast %288 : vector<1x8x128xbf16> to vector<8x128xbf16>
    %c2_282 = arith.constant 2 : index
    %c0_283 = arith.constant 0 : index
    %c0_284 = arith.constant 0 : index
    %290 = vector.load %arg4[%c2_282, %c0_283, %c0_284] : memref<5x128x256xbf16, #tpu.memory_space<vmem>>, vector<1x128x256xbf16>
    %291 = vector.shape_cast %290 : vector<1x128x256xbf16> to vector<128x256xbf16>
    %cst_285 = arith.constant dense<0.000000e+00> : vector<8x256xf32>
    %292 = tpu.matmul %289, %291, %cst_285 {dimension_numbers = #tpu.dot_dimension_numbers<[1], [0], [0], [1], [0, 0, 1, 1], [], []>} : vector<8x128xbf16>, vector<128x256xbf16>, vector<8x256xf32> -> vector<8x256xf32>
    %293 = arith.addf %287, %292 : vector<8x256xf32>
    %c10_286 = arith.constant 10 : index
    %c0_287 = arith.constant 0 : index
    %c0_288 = arith.constant 0 : index
    %294 = vector.load %arg11[%c10_286, %c0_287, %c0_288] : memref<12x8x128xbf16, #tpu.memory_space<vmem>>, vector<1x8x128xbf16>
    %295 = vector.shape_cast %294 : vector<1x8x128xbf16> to vector<8x128xbf16>
    %c3_289 = arith.constant 3 : index
    %c0_290 = arith.constant 0 : index
    %c0_291 = arith.constant 0 : index
    %296 = vector.load %arg4[%c3_289, %c0_290, %c0_291] : memref<5x128x256xbf16, #tpu.memory_space<vmem>>, vector<1x128x256xbf16>
    %297 = vector.shape_cast %296 : vector<1x128x256xbf16> to vector<128x256xbf16>
    %cst_292 = arith.constant dense<0.000000e+00> : vector<8x256xf32>
    %298 = tpu.matmul %295, %297, %cst_292 {dimension_numbers = #tpu.dot_dimension_numbers<[1], [0], [0], [1], [0, 0, 1, 1], [], []>} : vector<8x128xbf16>, vector<128x256xbf16>, vector<8x256xf32> -> vector<8x256xf32>
    %299 = arith.addf %293, %298 : vector<8x256xf32>
    %c11 = arith.constant 11 : index
    %c0_293 = arith.constant 0 : index
    %c0_294 = arith.constant 0 : index
    %300 = vector.load %arg11[%c11, %c0_293, %c0_294] : memref<12x8x128xbf16, #tpu.memory_space<vmem>>, vector<1x8x128xbf16>
    %301 = vector.shape_cast %300 : vector<1x8x128xbf16> to vector<8x128xbf16>
    %c4_295 = arith.constant 4 : index
    %c0_296 = arith.constant 0 : index
    %c0_297 = arith.constant 0 : index
    %302 = vector.load %arg4[%c4_295, %c0_296, %c0_297] : memref<5x128x256xbf16, #tpu.memory_space<vmem>>, vector<1x128x256xbf16>
    %303 = vector.shape_cast %302 : vector<1x128x256xbf16> to vector<128x256xbf16>
    %cst_298 = arith.constant dense<0.000000e+00> : vector<8x256xf32>
    %304 = tpu.matmul %301, %303, %cst_298 {dimension_numbers = #tpu.dot_dimension_numbers<[1], [0], [0], [1], [0, 0, 1, 1], [], []>} : vector<8x128xbf16>, vector<128x256xbf16>, vector<8x256xf32> -> vector<8x256xf32>
    %305 = arith.addf %299, %304 : vector<8x256xf32>
    %306 = vector.extract_strided_slice %305 {offsets = [0, 0], sizes = [8, 128], strides = [1, 1]} : vector<8x256xf32> to vector<8x128xf32>
    %307 = vector.extract_strided_slice %305 {offsets = [0, 128], sizes = [8, 128], strides = [1, 1]} : vector<8x256xf32> to vector<8x128xf32>
    %308 = arith.maximumf %306, %307 : vector<8x128xf32>
    %309 = arith.maximumf %274, %308 : vector<8x128xf32>
    %c0_299 = arith.constant 0 : index
    %c0_300 = arith.constant 0 : index
    %310 = vector.load %arg5[%c0_299, %c0_300] : memref<1x128xf32, #tpu.memory_space<vmem>>, vector<1x128xf32>
    %311 = vector.broadcast %310 : vector<1x128xf32> to vector<8x128xf32>
    %312 = arith.addf %309, %311 : vector<8x128xf32>
    %cst_301 = arith.constant 0.000000e+00 : f32
    %313 = vector.broadcast %cst_301 : f32 to vector<8x128xf32>
    %314 = arith.maximumf %312, %313 : vector<8x128xf32>
    %315 = arith.truncf %314 : vector<8x128xf32> to vector<8x128xbf16>
    %c3_302 = arith.constant 3 : index
    %c0_303 = arith.constant 0 : index
    %c0_304 = arith.constant 0 : index
    %316 = vector.load %arg6[%c3_302, %c0_303, %c0_304] : memref<4x128x128xbf16, #tpu.memory_space<vmem>>, vector<1x128x128xbf16>
    %317 = vector.shape_cast %316 : vector<1x128x128xbf16> to vector<128x128xbf16>
    %cst_305 = arith.constant dense<0.000000e+00> : vector<8x128xf32>
    %318 = tpu.matmul %315, %317, %cst_305 {dimension_numbers = #tpu.dot_dimension_numbers<[1], [0], [0], [1], [0, 0, 1, 1], [], []>} : vector<8x128xbf16>, vector<128x128xbf16>, vector<8x128xf32> -> vector<8x128xf32>
    %319 = arith.addf %240, %318 : vector<8x128xf32>
    %320 = arith.truncf %319 : vector<8x128xf32> to vector<8x128xbf16>
    %c0_306 = arith.constant 0 : index
    %c0_307 = arith.constant 0 : index
    %321 = vector.load %arg8[%c0_306, %c0_307] : memref<128x128xbf16, #tpu.memory_space<vmem>>, vector<128x128xbf16>
    %cst_308 = arith.constant dense<0.000000e+00> : vector<8x128xf32>
    %322 = tpu.matmul %320, %321, %cst_308 {dimension_numbers = #tpu.dot_dimension_numbers<[1], [0], [0], [1], [0, 0, 1, 1], [], []>} : vector<8x128xbf16>, vector<128x128xbf16>, vector<8x128xf32> -> vector<8x128xf32>
    %c0_309 = arith.constant 0 : index
    %c0_310 = arith.constant 0 : index
    %323 = vector.load %arg9[%c0_309, %c0_310] : memref<1x128xf32, #tpu.memory_space<vmem>>, vector<1x128xf32>
    %324 = vector.broadcast %323 : vector<1x128xf32> to vector<8x128xf32>
    %325 = arith.addf %322, %324 : vector<8x128xf32>
    %cst_311 = arith.constant dense<0xFF800000> : vector<8xf32>
    %326 = vector.multi_reduction <maximumf>, %325, %cst_311 [1] : vector<8x128xf32> to vector<8xf32>
    %327 = vector.shape_cast %326 : vector<8xf32> to vector<8x1xf32>
    %328 = vector.broadcast %327 : vector<8x1xf32> to vector<8x128xf32>
    %329 = arith.subf %325, %328 : vector<8x128xf32>
    %330 = math.exp %329 : vector<8x128xf32>
    %cst_312 = arith.constant dense<0.000000e+00> : vector<8xf32>
    %331 = vector.multi_reduction <add>, %330, %cst_312 [1] : vector<8x128xf32> to vector<8xf32>
    %332 = vector.shape_cast %331 : vector<8xf32> to vector<8x1xf32>
    %333 = math.log %332 : vector<8x1xf32>
    %334 = vector.broadcast %333 : vector<8x1xf32> to vector<8x128xf32>
    %335 = arith.subf %329, %334 : vector<8x128xf32>
    %c0_313 = arith.constant 0 : index
    %c0_314 = arith.constant 0 : index
    %336 = vector.load %arg10[%c0_313, %c0_314] : memref<8x128xf32, #tpu.memory_space<vmem>>, vector<8x128xf32>
    tpu.vector_store %arg10[%c0_313, %c0_314], %335 {strides = array<i32>} : memref<8x128xf32, #tpu.memory_space<vmem>>, vector<8x128xf32>,
    return
  }
  func.func @transform_0(%arg0: i32) -> (i32, i32, i32) {
    %c0_i32 = arith.constant 0 : i32
    %c0_i32_0 = arith.constant 0 : i32
    %c0_i32_1 = arith.constant 0 : i32
    return %c0_i32, %arg0, %c0_i32_0 : i32, i32, i32
  }
  func.func @transform_1(%arg0: i32) -> (i32, i32, i32) {
    %c0_i32 = arith.constant 0 : i32
    %c0_i32_0 = arith.constant 0 : i32
    %c0_i32_1 = arith.constant 0 : i32
    %c0_i32_2 = arith.constant 0 : i32
    return %c0_i32, %c0_i32_0, %c0_i32_1 : i32, i32, i32
  }
  func.func @transform_2(%arg0: i32) -> (i32, i32) {
    %c0_i32 = arith.constant 0 : i32
    %c0_i32_0 = arith.constant 0 : i32
    %c0_i32_1 = arith.constant 0 : i32
    return %c0_i32, %c0_i32_0 : i32, i32
  }
  func.func @transform_3(%arg0: i32) -> (i32, i32, i32) {
    %c0_i32 = arith.constant 0 : i32
    %c0_i32_0 = arith.constant 0 : i32
    %c0_i32_1 = arith.constant 0 : i32
    %c0_i32_2 = arith.constant 0 : i32
    return %c0_i32, %c0_i32_0, %c0_i32_1 : i32, i32, i32
  }
  func.func @transform_4(%arg0: i32) -> (i32, i32) {
    %c0_i32 = arith.constant 0 : i32
    %c0_i32_0 = arith.constant 0 : i32
    %c0_i32_1 = arith.constant 0 : i32
    return %c0_i32, %c0_i32_0 : i32, i32
  }
  func.func @transform_5(%arg0: i32) -> (i32, i32, i32) {
    %c0_i32 = arith.constant 0 : i32
    %c0_i32_0 = arith.constant 0 : i32
    %c0_i32_1 = arith.constant 0 : i32
    %c0_i32_2 = arith.constant 0 : i32
    return %c0_i32, %c0_i32_0, %c0_i32_1 : i32, i32, i32
  }
  func.func @transform_6(%arg0: i32) -> (i32, i32) {
    %c0_i32 = arith.constant 0 : i32
    %c0_i32_0 = arith.constant 0 : i32
    %c0_i32_1 = arith.constant 0 : i32
    return %c0_i32, %c0_i32_0 : i32, i32
  }
  func.func @transform_7(%arg0: i32) -> (i32, i32) {
    %c0_i32 = arith.constant 0 : i32
    %c0_i32_0 = arith.constant 0 : i32
    %c0_i32_1 = arith.constant 0 : i32
    return %c0_i32, %c0_i32_0 : i32, i32
  }
  func.func @transform_8(%arg0: i32) -> (i32, i32) {
    %c0_i32 = arith.constant 0 : i32
    %c0_i32_0 = arith.constant 0 : i32
    %c0_i32_1 = arith.constant 0 : i32
    return %c0_i32, %c0_i32_0 : i32, i32
  }
  func.func @transform_9(%arg0: i32) -> (i32, i32) {
    %c0_i32 = arith.constant 0 : i32
    %c0_i32_0 = arith.constant 0 : i32
    return %arg0, %c0_i32 : i32, i32
  }
}

</mosaic_0001>

<bundles_post_ra>
// kernel: net_forward.1
= control target key start
LH: loop header
LB: loop body
LE: loop exit
PB: predicated region body
PF: predicated region fallthrough
CT: control target
= control target key end

     0   :  { %14 = vsyncpa [#allocation4], 0  ;;  %s5770_s0 = inlined_call_operand.vmem [shape: bf16[28,8,28], index: 0, kind: input, shape index: {}]   ;;  %s5771_s1 = inlined_call_operand.vmem [shape: bf16[5,28,256], index: 1, kind: input, shape index: {}]   ;;  %s5772_s2 = inlined_call_operand.vmem [shape: f32[1,128], index: 2, kind: input, shape index: {}]   ;;  %s5773_s3 = inlined_call_operand.hbm [shape: bf16[5,128,256], index: 3, kind: input, shape index: {}]   ;;  %s5774_s4 = inlined_call_operand.vmem [shape: f32[1,128], index: 4, kind: input, shape index: {}]   ;;  %s5775_s5 = inlined_call_operand.hbm [shape: bf16[4,128,128], index: 5, kind: input, shape index: {}]   ;;  %s5776_s6 = inlined_call_operand.vmem [shape: f32[1,128], index: 6, kind: input, shape index: {}]   ;;  %s5777_s7 = inlined_call_operand.vmem [shape: bf16[128,128], index: 7, kind: input, shape index: {}]   ;;  %s5778_s8 = inlined_call_operand.vmem [shape: f32[1,128], index: 8, kind: input, shape index: {}]   ;;  %s5779_s9 = inlined_call_operand.vmem [shape: f32[8,128], index: 9, kind: output, shape index: {}]  }
   0x1   :  { %15 = vsyncpa [#allocation6], 0  ;;  %s4376_s30 = smov [#allocation3]   ;;  %s4320_s13 = scalar_lea.hbm %s5773_s3, 10240 }
   0x2   :  { %s27_s10 = sshll.u32 %s4376_s30, 4  ;;  %p4321_p0 = scmp.ne.s32.totalorder %s5773_s3, %s4320_s13  ;;  %s28_s10 = int_to_ptr.vmem [resolvable:$true] %s27_s10 }
   0x3   :  { %p4324_p1 = scmp.lt.u32.totalorder %s4320_s13, %s5773_s3 }
   0x5   :  { %p4326_p2 = pnand %p4324_p1, %p4321_p0 }
   0x7   :  { %4329 = shalt.err (!%p4326_p2)
}
   0x8   :  { %s4330_s18 = scalar_lea.vmem %s28_s10, 10240  ;;  %p4335_p4 = scmp.lt.s32.totalorder %s28_s10, %s28_s10 }
   0x9   :  { %p4331_p3 = scmp.ne.s32.totalorder %s28_s10, %s4330_s18  ;;  %p4336_p5 = scmp.lt.s32.totalorder %s4330_s18, %s4330_s18 }
   0xb   :  { %p4337_p6 = por %p4336_p5, %p4335_p4 }
   0xd   :  { %p4338_p7 = pnand %p4337_p6, %p4331_p3 }
   0xf   :  { %4341 = shalt.err (!%p4338_p7)
}
  0x10   :  { %s4377_s19 = smov 128   ;;  %s4378_s20 = smov 8  }
  0x11   :  { %33 = dma.hbm_to_vmem [thread:$0]  %s5773_s3, 10240, %s28_s10, [#allocation4], %s4377_s19, %s4377_s19, %s4378_s20  }
  0x12   :  { %s4379_s23 = smov [#allocation5]   ;;  %s4342_s27 = scalar_lea.hbm %s5775_s5, 4096 }
  0x13   :  { %s41_s24 = sshll.u32 %s4379_s23, 4  ;;  %p4343_p8 = scmp.ne.s32.totalorder %s5775_s5, %s4342_s27  ;;  %s42_s24 = int_to_ptr.vmem [resolvable:$true] %s41_s24 }
  0x14   :  { %p4346_p9 = scmp.lt.u32.totalorder %s4342_s27, %s5775_s5 }
  0x16   :  { %p4348_p10 = pnand %p4346_p9, %p4343_p8 }
  0x18   :  { %4351 = shalt.err (!%p4348_p10)
}
  0x19   :  { %s4352_s12 = scalar_lea.vmem %s42_s24, 4096  ;;  %p4357_p12 = scmp.lt.s32.totalorder %s42_s24, %s42_s24 }
  0x1a   :  { %p4353_p11 = scmp.ne.s32.totalorder %s42_s24, %s4352_s12  ;;  %p4358_p13 = scmp.lt.s32.totalorder %s4352_s12, %s4352_s12 }
  0x1c   :  { %p4359_p0 = por %p4358_p13, %p4357_p12 }
  0x1e   :  { %p4360_p1 = pnand %p4359_p0, %p4353_p11 }
  0x20   :  { %4363 = shalt.err (!%p4360_p1)
}
  0x21   :  { %s4380_s3 = smov 64   ;;  %s4381_s10 = smov 4  }
  0x22   :  { %47 = dma.hbm_to_vmem [thread:$0]  %s5775_s5, 4096, %s42_s24, [#allocation6], %s4380_s3, %s4380_s3, %s4381_s10  }
  0x23   :  { %4368 = dma.done.wait [#allocation4], 10240  }
  0x24   :  { %4369 = vsyncadd [#allocation4], 4294957056 }
  0x25   :  { %4370 = dma.done.wait [#allocation6], 4096  }
  0x26   :  { %4371 = vsyncadd [#allocation6], 4294963200  ;;  %s4460_s15 = smov 0  }
  0x27 LB: > { %v4045_v0 = vld [vmem:[%s5771_s1 + $0x24] ss:$8 sps:$4 sm:$0xff]   ;;  %v4047_v1 = vld [vmem:[%s5771_s1 + $0x20] ss:$8 sps:$4 sm:$0xff]   ;;  %vm106_vm0 = vcmask 1045504   ;;  %v4382_v2 = vmov 0   ;;  %s4374_s15 = sphi %s4460_s15, %s66_s15  }
  0x28   : > { %145 = vmatprep.mubr.bf16.mxu0 %v4382_v2  ;;  %492 = vmatprep.mubr.bf16.mxu1 %v4382_v2  ;;  %v4048_v3 = vld [vmem:[%s5771_s1 + $0x34] ss:$8 sps:$4 sm:$0x3f]   ;;  %v4050_v4 = vld [vmem:[%s5771_s1 + $0x30] ss:$8 sps:$4 sm:$0x3f]  }
  0x29   : > { %113 = vmatprep.subr.bf16.mxu0 %v4045_v0  ;;  %460 = vmatprep.subr.bf16.mxu1 %v4045_v0  ;;  %s3705_s23 = sshll.u32 %s4374_s15, 3  ;;  %v108_v5 = vsel %vm106_vm0, %v4050_v4, 0  ;;  %v4053_v6 = vld [vmem:[%s5771_s1 + $0x4] ss:$8 sps:$4 sm:$0xff]   ;;  %v4051_v8 = vld [vmem:[%s5771_s1] ss:$8 sps:$4 sm:$0xff]  }
  0x2a   : > { %114 = vmatpush1.bf16.msra.mxu0 %v4047_v1  ;;  %461 = vmatpush1.bf16.msra.mxu1 %v4047_v1  ;;  %s4486_s26 = scalar_lea.vmem %s5770_s0, %s3705_s23  ;;  %vm102_vm1 = vcmask 228352   ;;  %v4054_v10 = vld [vmem:[%s5771_s1 + $0x14] ss:$8 sps:$4 sm:$0x3f]   ;;  %v4059_v13 = vld [vmem:[%s5771_s1 + $0x44] ss:$8 sps:$4 sm:$0xff]  }
  0x2b   : > { %3520 = vmatprep.subr.msk.bf16.mxu0 %vm106_vm0, %v4048_v3  ;;  %3567 = vmatprep.subr.msk.bf16.mxu1 %vm106_vm0, %v4048_v3  ;;  %v3511_v7 = vld [vmem:[%s4486_s26 + $0x4] sm:$0xf]  ;;  %v3530_v9 = vld [vmem:[%s4486_s26 + $0x8] sm:$0xf]  ;;  %v70_v14 = vld [vmem:[%s4486_s26] sm:$0xf] }
  0x2c   : > { %v4056_v11 = vld [vmem:[%s5771_s1 + $0x10] ss:$8 sps:$4 sm:$0x3f]   ;;  %v4057_v15 = vld [vmem:[%s5771_s1 + $0x40] ss:$8 sps:$4 sm:$0xff]  }
  0x2d   : > { %v176_v12 = vsel %vm106_vm0, %v4056_v11, 0  ;;  %v4060_v16 = vld [vmem:[%s5771_s1 + $0x54] ss:$8 sps:$4 sm:$0x3f]   ;;  %v4065_v19 = vld [vmem:[%s5771_s1 + $0x64] ss:$8 sps:$4 sm:$0xff]  }
  0x2e   : > { %116 = vmatpush1.bf16.msra.mxu0 %v108_v5  ;;  %463 = vmatpush1.bf16.msra.mxu1 %v108_v5  ;;  %v4062_v17 = vld [vmem:[%s5771_s1 + $0x50] ss:$8 sps:$4 sm:$0x3f]   ;;  %v4063_v20 = vld [vmem:[%s5771_s1 + $0x60] ss:$8 sps:$4 sm:$0xff]  }
  0x2f   : > { %181 = vmatprep.subr.bf16.mxu0 %v4053_v6  ;;  %501 = vmatprep.subr.bf16.mxu1 %v4053_v6  ;;  %v253_v18 = vsel %vm106_vm0, %v4062_v17, 0  ;;  %v3543_v21 = vld [vmem:[%s4486_s26 + $0xc] sm:$0xf]  ;;  %v4066_v22 = vld [vmem:[%s5771_s1 + $0x74] ss:$8 sps:$4 sm:$0x3f]  }
  0x30   : > { %v4068_v23 = vld [vmem:[%s5771_s1 + $0x70] ss:$8 sps:$4 sm:$0x3f]   ;;  %v4071_v25 = vld [vmem:[%s5771_s1 + $0x84] ss:$8 sps:$4 sm:$0xff]  }
  0x31   : > { %3521 = vmatmul.mubr.msk.bf16.vlgmr.msra.gmra.mrb[0].mxu0 %vm102_vm1, %v3511_v7  ;;  %3568 = vmatmul.mubr.msk.bf16.vlgmr.msra.gmra.mrb[0].mxu1 %vm102_vm1, %v3530_v9  ;;  %v332_v24 = vsel %vm106_vm0, %v4068_v23, 0  ;;  %v4069_v26 = vld [vmem:[%s5771_s1 + $0x80] ss:$8 sps:$4 sm:$0xff]   ;;  %v3556_v27 = vld [vmem:[%s4486_s26 + $0x10] sm:$0xf] }
  0x32   : > { %182 = vmatpush1.bf16.msra.mxu0 %v4051_v8  ;;  %502 = vmatpush1.bf16.msra.mxu1 %v4051_v8  ;;  %v4072_v28 = vld [vmem:[%s5771_s1 + $0x94] ss:$8 sps:$4 sm:$0x3f]   ;;  %v4074_v29 = vld [vmem:[%s5771_s1 + $0x90] ss:$8 sps:$4 sm:$0x3f]  }
  0x33   : > { %3526 = vmatprep.subr.msk.bf16.mxu0 %vm106_vm0, %v4054_v10  ;;  %3569 = vmatprep.subr.msk.bf16.mxu1 %vm106_vm0, %v4054_v10  ;;  %v411_v30 = vsel %vm106_vm0, %v4074_v29, 0  ;;  %v3577_v31 = vld [vmem:[%s4486_s26 + $0x14] sm:$0xf]  ;;  %v3580_v40 = vld [vmem:[%s5772_s2] ss:$0 sm:$0xff]  ;;  %s3581_s26 = sshll.u32 %s4374_s15, 2 }
  0x34   : > { %213 = vmatprep.mubr.bf16.mxu0 %v4382_v2  ;;  %533 = vmatprep.mubr.bf16.mxu1 %v4382_v2  ;;  %s691_s19 = scalar_lea.vmem [#allocation2], %s3581_s26  ;;  %s66_s15 = sadd.s32 1, %s4374_s15  }
  0x35   : > { %p63_p2 = scmp.ge.s32.totalorder %s66_s15, 12  }
  0x36   : > { %184 = vmatpush1.bf16.msra.mxu0 %v176_v12  ;;  %504 = vmatpush1.bf16.msra.mxu1 %v176_v12  ;;  %v4579_v47 = vld [vmem:[#allocation3 + $0x84] ss:$8 sps:$4 sm:$0xff] (%p63_p2)   ;;  %v5780_v49 = vmov (%p63_p2), 0   ;;  %v4586_v50 = vld [vmem:[#allocation3 + $0x80] ss:$8 sps:$4 sm:$0xff] (%p63_p2)   ;;  %vm4385_vm2 = vmmov (%p63_p2), 0  }
  0x37   : > { %258 = vmatprep.subr.bf16.mxu0 %v4059_v13  ;;  %542 = vmatprep.subr.bf16.mxu1 %v4059_v13  ;;  %v4581_v48 = vld [vmem:[#allocation3 + $0x4] ss:$8 sps:$4 sm:$0xff] (%p63_p2)   ;;  %v4588_v51 = vld [vmem:[#allocation3] ss:$8 sps:$4 sm:$0xff] (%p63_p2)   ;;  %v4591_v52 = vld [vmem:[#allocation3 + $0x94] ss:$8 sps:$4 sm:$0xff] (%p63_p2)  }
  0x38   :  { %v4595_v53 = vld [vmem:[#allocation3 + $0x14] ss:$8 sps:$4 sm:$0xff] (%p63_p2)   ;;  %v4597_v54 = vld [vmem:[#allocation3 + $0x90] ss:$8 sps:$4 sm:$0xff] (%p63_p2)   ;;  %v4603_v56 = vld [vmem:[#allocation3 + $0xa4] ss:$8 sps:$4 sm:$0xff] (%p63_p2)  }
  0x39   :  { %v4600_v55 = vld [vmem:[#allocation3 + $0x10] ss:$8 sps:$4 sm:$0xff] (%p63_p2)   ;;  %v4605_v57 = vld [vmem:[#allocation3 + $0x24] ss:$8 sps:$4 sm:$0xff] (%p63_p2)   ;;  %v4607_v58 = vld [vmem:[#allocation3 + $0xa0] ss:$8 sps:$4 sm:$0xff] (%p63_p2)  }
  0x3a   :  { %v4609_v59 = vld [vmem:[#allocation3 + $0x20] ss:$8 sps:$4 sm:$0xff] (%p63_p2)   ;;  %v4613_v60 = vld [vmem:[#allocation3 + $0xb4] ss:$8 sps:$4 sm:$0xff] (%p63_p2)   ;;  %v4619_v62 = vld [vmem:[#allocation3 + $0xb0] ss:$8 sps:$4 sm:$0xff] (%p63_p2)  }
  0x3b   :  { %v4617_v61 = vld [vmem:[#allocation3 + $0x34] ss:$8 sps:$4 sm:$0xff] (%p63_p2)   ;;  %v4623_v63 = vld [vmem:[#allocation3 + $0x30] ss:$8 sps:$4 sm:$0xff] (%p63_p2)   ;;  %v4625_v0 = vld [vmem:[#allocation3 + $0xc4] ss:$8 sps:$4 sm:$0xff] (%p63_p2)  }
  0x3c   :  { %v4629_v1 = vld [vmem:[#allocation3 + $0x44] ss:$8 sps:$4 sm:$0xff] (%p63_p2)   ;;  %v4633_v3 = vld [vmem:[#allocation3 + $0x40] ss:$8 sps:$4 sm:$0xff] (%p63_p2)   ;;  %v4637_v4 = vld [vmem:[#allocation3 + $0xd4] ss:$8 sps:$4 sm:$0xff] (%p63_p2)  }
  0x3d   : > { %3527 = vmatmul.mubr.msk.bf16.vlgmr.msra.gmra.mrb[0].mxu0 %vm102_vm1, %v70_v14  ;;  %3570 = vmatmul.mubr.msk.bf16.vlgmr.msra.gmra.mrb[0].mxu1 %vm102_vm1, %v3511_v7  ;;  %5939 = vst [vmem:[#allocation9_spill] sm:$0xff] (%p63_p2), %v4629_v1  ;;  %5940 = vst [vmem:[#allocation10_spill] sm:$0xff] (%p63_p2), %v4633_v3  ;;  %v4641_v5 = vld [vmem:[#allocation3 + $0x54] ss:$8 sps:$4 sm:$0xff] (%p63_p2)   ;;  %v4645_v6 = vld [vmem:[#allocation3 + $0xd0] ss:$8 sps:$4 sm:$0xff] (%p63_p2)  }
  0x3e   : > { %259 = vmatpush1.bf16.msra.mxu0 %v4057_v15  ;;  %543 = vmatpush1.bf16.msra.mxu1 %v4057_v15  ;;  %5941 = vst [vmem:[#allocation11_spill] sm:$0xff] (%p63_p2), %v4641_v5  ;;  %v4647_v7 = vld [vmem:[#allocation3 + $0x50] ss:$8 sps:$4 sm:$0xff] (%p63_p2)   ;;  %v4651_v8 = vld [vmem:[#allocation3 + $0xe4] ss:$8 sps:$4 sm:$0xff] (%p63_p2)  }
  0x3f   : > { %3539 = vmatprep.subr.msk.bf16.mxu0 %vm106_vm0, %v4060_v16  ;;  %3571 = vmatprep.subr.msk.bf16.mxu1 %vm106_vm0, %v4060_v16  ;;  %5942 = vst [vmem:[#allocation12_spill] sm:$0xff] (%p63_p2), %v4647_v7  ;;  %v4657_v10 = vld [vmem:[#allocation3 + $0xe0] ss:$8 sps:$4 sm:$0xff] (%p63_p2)   ;;  %v4663_v12 = vld [vmem:[#allocation3 + $0xf4] ss:$8 sps:$4 sm:$0xff] (%p63_p2)  }
  0x40   : > { %290 = vmatprep.mubr.bf16.mxu0 %v4382_v2  ;;  %574 = vmatprep.mubr.bf16.mxu1 %v4382_v2  ;;  %v4659_v11 = vld [vmem:[#allocation3 + $0x60] ss:$8 sps:$4 sm:$0xff] (%p63_p2)   ;;  %v4665_v13 = vld [vmem:[#allocation3 + $0x74] ss:$8 sps:$4 sm:$0xff] (%p63_p2)   ;;  %v4669_v14 = vld [vmem:[#allocation3 + $0xf0] ss:$8 sps:$4 sm:$0xff] (%p63_p2)  }
  0x41   :  { %5944 = vst [vmem:[#allocation14_spill] sm:$0xff] (%p63_p2), %v4659_v11  ;;  %5945 = vst [vmem:[#allocation15_spill] sm:$0xff] (%p63_p2), %v4665_v13  ;;  %v4671_v15 = vld [vmem:[#allocation3 + $0x70] ss:$8 sps:$4 sm:$0xff] (%p63_p2)   ;;  %v4675_v16 = vld [vmem:[#allocation3 + $0x104] ss:$8 sps:$4 sm:$0xff] (%p63_p2)  }
  0x42   : > { %261 = vmatpush1.bf16.msra.mxu0 %v253_v18  ;;  %545 = vmatpush1.bf16.msra.mxu1 %v253_v18  ;;  %5946 = vst [vmem:[#allocation16_spill] sm:$0xff] (%p63_p2), %v4671_v15  ;;  %5947 = vst [vmem:[#allocation17_spill] sm:$0xff] (%p63_p2), %v4675_v16  ;;  %v4700_v23 = vld [vmem:[#allocation3 + $0x120] ss:$8 sps:$4 sm:$0xff] (%p63_p2)   ;;  %v4724_v29 = vld [vmem:[#allocation3 + $0x150] ss:$8 sps:$4 sm:$0xff] (%p63_p2)  }
  0x43   : > { %337 = vmatprep.subr.bf16.mxu0 %v4065_v19  ;;  %585 = vmatprep.subr.bf16.mxu1 %v4065_v19  ;;  %v4681_v19 = vld [vmem:[#allocation3 + $0x100] ss:$8 sps:$4 sm:$0xff] (%p63_p2)   ;;  %5952 = vst [vmem:[#allocation22_spill] sm:$0xff] (%p63_p2), %v4700_v23  ;;  %5957 = vst [vmem:[#allocation27_spill] sm:$0xff] (%p63_p2), %v4724_v29 }
  0x44   :  { %5948 = vst [vmem:[#allocation18_spill] sm:$0xff] (%p63_p2), %v4681_v19 }
  0x49   : > { %3540 = vmatmul.mubr.msk.bf16.vlgmr.msra.gmra.mrb[0].mxu0 %vm102_vm1, %v3530_v9  ;;  %3572 = vmatmul.mubr.msk.bf16.vlgmr.msra.gmra.mrb[0].mxu1 %vm102_vm1, %v3543_v21  ;;  %v4653_v9 = vld [vmem:[#allocation3 + $0x64] ss:$8 sps:$4 sm:$0xff] (%p63_p2)  }
  0x4a   : > { %338 = vmatpush1.bf16.msra.mxu0 %v4063_v20  ;;  %586 = vmatpush1.bf16.msra.mxu1 %v4063_v20  ;;  %5943 = vst [vmem:[#allocation13_spill] sm:$0xff] (%p63_p2), %v4653_v9  ;;  %v4685_v20 = vld [vmem:[#allocation3 + $0x114] ss:$8 sps:$4 sm:$0xff] (%p63_p2)  }
  0x4b   : > { %3552 = vmatprep.subr.msk.bf16.mxu0 %vm106_vm0, %v4066_v22  ;;  %3573 = vmatprep.subr.msk.bf16.mxu1 %vm106_vm0, %v4066_v22  ;;  %5949 = vst [vmem:[#allocation19_spill] sm:$0xff] (%p63_p2), %v4685_v20  ;;  %v4694_v22 = vld [vmem:[#allocation3 + $0x124] ss:$8 sps:$4 sm:$0xff] (%p63_p2)  }
  0x4c   : > { %369 = vmatprep.mubr.bf16.mxu0 %v4382_v2  ;;  %617 = vmatprep.mubr.bf16.mxu1 %v4382_v2  ;;  %5951 = vst [vmem:[#allocation21_spill] sm:$0xff] (%p63_p2), %v4694_v22 }
  0x4e   : > { %340 = vmatpush1.bf16.msra.mxu0 %v332_v24  ;;  %588 = vmatpush1.bf16.msra.mxu1 %v332_v24  ;;  %v4704_v24 = vld [vmem:[#allocation3 + $0x134] ss:$8 sps:$4 sm:$0xff] (%p63_p2)  }
  0x4f   : > { %416 = vmatprep.subr.bf16.mxu0 %v4071_v25  ;;  %635 = vmatprep.subr.bf16.mxu1 %v4071_v25  ;;  %5953 = vst [vmem:[#allocation23_spill] sm:$0xff] (%p63_p2), %v4704_v24  ;;  %v4708_v25 = vld [vmem:[#allocation3 + $0x130] ss:$8 sps:$4 sm:$0xff] (%p63_p2)  }
  0x50   :  { %5954 = vst [vmem:[#allocation24_spill] sm:$0xff] (%p63_p2), %v4708_v25 }
  0x55   : > { %3553 = vmatmul.mubr.msk.bf16.vlgmr.msra.gmra.mrb[0].mxu0 %vm102_vm1, %v3543_v21  ;;  %3574 = vmatmul.mubr.msk.bf16.vlgmr.msra.gmra.mrb[0].mxu1 %vm102_vm1, %v3556_v27  ;;  %v4690_v21 = vld [vmem:[#allocation3 + $0x110] ss:$8 sps:$4 sm:$0xff] (%p63_p2)  }
  0x56   : > { %417 = vmatpush1.bf16.msra.mxu0 %v4069_v26  ;;  %636 = vmatpush1.bf16.msra.mxu1 %v4069_v26  ;;  %5950 = vst [vmem:[#allocation20_spill] sm:$0xff] (%p63_p2), %v4690_v21  ;;  %v4712_v26 = vld [vmem:[#allocation3 + $0x144] ss:$8 sps:$4 sm:$0xff] (%p63_p2)  }
  0x57   : > { %3565 = vmatprep.subr.msk.bf16.mxu0 %vm106_vm0, %v4072_v28  ;;  %3578 = vmatprep.subr.msk.bf16.mxu1 %vm106_vm0, %v4072_v28  ;;  %5955 = vst [vmem:[#allocation25_spill] sm:$0xff] (%p63_p2), %v4712_v26  ;;  %v4720_v28 = vld [vmem:[#allocation3 + $0x154] ss:$8 sps:$4 sm:$0xff] (%p63_p2)  }
  0x58   : > { %448 = vmatprep.mubr.bf16.mxu0 %v4382_v2  ;;  %667 = vmatprep.mubr.bf16.mxu1 %v4382_v2  ;;  %v4631_v2 = vld [vmem:[#allocation3 + $0xc0] ss:$8 sps:$4 sm:$0xff] (%p63_p2)  }
  0x5a   : > { %419 = vmatpush1.bf16.msra.mxu0 %v411_v30  ;;  %638 = vmatpush1.bf16.msra.mxu1 %v411_v30  ;;  %v4728_v30 = vld [vmem:[#allocation3 + $0x164] ss:$8 sps:$4 sm:$0xff] (%p63_p2)  }
  0x5b   :  { %816 = vmatprep.subr.bf16.mxu1 (%p63_p2), %v4579_v47  ;;  %937 = vmatprep.subr.bf16.mxu0 (%p63_p2), %v4581_v48 }
  0x61   : > { %3566 = vmatmul.mubr.msk.bf16.vlgmr.msra.gmra.mrb[0].mxu0 %vm102_vm1, %v3556_v27  ;;  %3579 = vmatmul.mubr.msk.bf16.vlgmr.msra.gmra.mrb[0].mxu1 %vm102_vm1, %v3577_v31  ;;  %v4716_v27 = vld [vmem:[#allocation3 + $0x140] ss:$8 sps:$4 sm:$0xff] (%p63_p2)  }
  0x62   :  { %848 = vmatprep.mubr.bf16.mxu1 (%p63_p2), %v5780_v49  ;;  %969 = vmatprep.mubr.bf16.mxu0 (%p63_p2), %v5780_v49  ;;  %5956 = vst [vmem:[#allocation26_spill] sm:$0xff] (%p63_p2), %v4716_v27  ;;  %v4730_v31 = vld [vmem:[#allocation3 + $0x160] ss:$8 sps:$4 sm:$0xff] (%p63_p2)  }
  0x63   :  { %817 = vmatpush1.bf16.msra.mxu1 (%p63_p2), %v4586_v50  ;;  %938 = vmatpush1.bf16.msra.mxu0 (%p63_p2), %v4588_v51 }
  0x64   :  { %818 = vmatprep.subr.bf16.mxu1 (%p63_p2), %v4591_v52  ;;  %939 = vmatprep.subr.bf16.mxu0 (%p63_p2), %v4595_v53 }
  0x67   :  { %819 = vmatpush1.bf16.msra.mxu1 (%p63_p2), %v4597_v54  ;;  %940 = vmatpush1.bf16.msra.mxu0 (%p63_p2), %v4600_v55 }
  0x68   :  { %820 = vmatprep.subr.bf16.mxu1 (%p63_p2), %v4603_v56  ;;  %941 = vmatprep.subr.bf16.mxu0 (%p63_p2), %v4605_v57 }
  0x6b   :  { %821 = vmatpush1.bf16.msra.mxu1 (%p63_p2), %v4607_v58  ;;  %942 = vmatpush1.bf16.msra.mxu0 (%p63_p2), %v4609_v59 }
  0x6c   :  { %822 = vmatprep.subr.bf16.mxu1 (%p63_p2), %v4613_v60  ;;  %943 = vmatprep.subr.bf16.mxu0 (%p63_p2), %v4617_v61 }
  0x6f   :  { %823 = vmatpush1.bf16.msra.mxu1 (%p63_p2), %v4619_v62  ;;  %944 = vmatpush1.bf16.msra.mxu0 (%p63_p2), %v4623_v63 }
  0x70   :  { %824 = vmatprep.subr.bf16.mxu1 (%p63_p2), %v4625_v0  ;;  %945 = vmatprep.subr.bf16.mxu0 (%p63_p2), %v4629_v1 }
  0x73   :  { %825 = vmatpush1.bf16.msra.mxu1 (%p63_p2), %v4631_v2  ;;  %946 = vmatpush1.bf16.msra.mxu0 (%p63_p2), %v4633_v3 }
  0x74   :  { %826 = vmatprep.subr.bf16.mxu1 (%p63_p2), %v4637_v4  ;;  %947 = vmatprep.subr.bf16.mxu0 (%p63_p2), %v4641_v5 }
  0x77   :  { %827 = vmatpush1.bf16.msra.mxu1 (%p63_p2), %v4645_v6  ;;  %948 = vmatpush1.bf16.msra.mxu0 (%p63_p2), %v4647_v7 }
  0x78   :  { %828 = vmatprep.subr.bf16.mxu1 (%p63_p2), %v4651_v8  ;;  %949 = vmatprep.subr.bf16.mxu0 (%p63_p2), %v4653_v9 }
  0x7b   :  { %829 = vmatpush1.bf16.msra.mxu1 (%p63_p2), %v4657_v10  ;;  %950 = vmatpush1.bf16.msra.mxu0 (%p63_p2), %v4659_v11 }
  0x7c   :  { %830 = vmatprep.subr.bf16.mxu1 (%p63_p2), %v4663_v12  ;;  %951 = vmatprep.subr.bf16.mxu0 (%p63_p2), %v4665_v13 }
  0x7f   :  { %831 = vmatpush1.bf16.msra.mxu1 (%p63_p2), %v4669_v14  ;;  %952 = vmatpush1.bf16.msra.mxu0 (%p63_p2), %v4671_v15 }
  0x80   :  { %1077 = vmatprep.subr.bf16.mxu0 (%p63_p2), %v4675_v16  ;;  %1405 = vmatprep.subr.bf16.mxu1 (%p63_p2), %v4579_v47 }
 0x134   : > { %v450_v32 = vpop.f32.mrb[0].mxu0  ;;  %v669_v33 = vpop.f32.mrb[0].mxu1 }
 0x135   : > { %v452_v34 = vpop.f32.mrb[1].mxu0  ;;  %v671_v35 = vpop.f32.mrb[1].mxu1 }
 0x136   : > { %v459_v36 = vmax.f32 %v450_v32, %v452_v34  ;;  %v678_v37 = vmax.f32 %v669_v33, %v671_v35  ;;  %v454_v38 = vpop.f32.mrb[2].mxu0  ;;  %v673_v39 = vpop.f32.mrb[2].mxu1  ;;  %v4732_v32 = vld [vmem:[#allocation3 + $0x174] ss:$8 sps:$4 sm:$0xff] (%p63_p2)   ;;  %v4738_v33 = vld [vmem:[#allocation3 + $0x170] ss:$8 sps:$4 sm:$0xff] (%p63_p2)  }
 0x137   : > { %v455_v41 = vpop.f32.mrb[3].mxu0  ;;  %v674_v42 = vpop.f32.mrb[3].mxu1  ;;  %v4740_v34 = vld [vmem:[#allocation3 + $0x184] ss:$8 sps:$4 sm:$0xff] (%p63_p2)   ;;  %v4756_v38 = vld [vmem:[#allocation3 + $0x190] ss:$8 sps:$4 sm:$0xff] (%p63_p2)  }
 0x138   : > { %v679_v43 = vmax.f32 %v459_v36, %v678_v37  ;;  %v4748_v36 = vld [vmem:[#allocation3 + $0x180] ss:$8 sps:$4 sm:$0xff] (%p63_p2)   ;;  %v4752_v37 = vld [vmem:[#allocation3 + $0x194] ss:$8 sps:$4 sm:$0xff] (%p63_p2)   ;;  %v4760_v39 = vld [vmem:[#allocation3 + $0x1a4] ss:$8 sps:$4 sm:$0xff] (%p63_p2)  }
 0x139   :  { %v4770_v41 = vld [vmem:[#allocation3 + $0x1b4] ss:$8 sps:$4 sm:$0xff] (%p63_p2)   ;;  %v4776_v42 = vld [vmem:[#allocation3 + $0x1b0] ss:$8 sps:$4 sm:$0xff] (%p63_p2)  }
 0x13a   : > { %v687_v44 = vadd.f32 %v3580_v40, %v679_v43  ;;  %65 = sbr.rel (!%p63_p2) target bundleno = 39 (0x27), region = 100  ;;  %v4766_v40 = vld [vmem:[#allocation3 + $0x1a0] ss:$8 sps:$4 sm:$0xff] (%p63_p2)   ;;  %v4778_v43 = vld [vmem:[#allocation3 + $0x1c4] ss:$8 sps:$4 sm:$0xff] (%p63_p2)  }
 0x13c   : > { %v688_v45 = vmax.f32 %v687_v44, 0.0  ;;  %v4784_v44 = vld [vmem:[#allocation3 + $0x1c0] ss:$8 sps:$4 sm:$0xff] (%p63_p2)  }
 0x13e   : > { %v689_v46 = vpack.c.bf16 %v688_v45, %v688_v45  ;;  %v4786_v45 = vld [vmem:[#allocation3 + $0x1d4] ss:$8 sps:$4 sm:$0xff] (%p63_p2)  }
 0x140   : > { %692 = vst [vmem:[%s691_s19] sm:$0xf] %v689_v46  ;;  %v4794_v46 = vld [vmem:[#allocation3 + $0x1d0] ss:$8 sps:$4 sm:$0xff] (%p63_p2)  }
 0x147   :  { %v4677_v17 = vld [vmem:[#allocation2 + $0x4] sm:$0xf]  ;;  %v700_v18 = vld [vmem:[#allocation2] sm:$0xf]  ;;  %v4746_v35 = vld [vmem:[#allocation2 + $0x8] sm:$0xf] }
 0x148   :  { %849 = vmatmul.mubr.bf16.vlgmr.msra.gmra.mrb[0].mxu1 %v4677_v17  ;;  %970 = vmatmul.mubr.bf16.vlgmr.msra.gmra.mrb[0].mxu0 %v700_v18  ;;  %5958 = vst [vmem:[#allocation28_spill] sm:$0xff] %v4746_v35  ;;  %v4798_v18 = vld [vmem:[#allocation3 + $0x1e4] ss:$8 sps:$4 sm:$0xff]  }
 0x149   :  { %1078 = vmatpush1.bf16.msra.mxu0 %v4681_v19  ;;  %1406 = vmatpush1.bf16.msra.mxu1 %v4586_v50 }
 0x14a   :  { %1079 = vmatprep.subr.bf16.mxu0 %v4685_v20  ;;  %1407 = vmatprep.subr.bf16.mxu1 %v4591_v52 }
 0x14b   :  { %1109 = vmatprep.mubr.bf16.mxu0 %v5780_v49  ;;  %1437 = vmatprep.mubr.bf16.mxu1 %v5780_v49 }
 0x14d   :  { %1080 = vmatpush1.bf16.msra.mxu0 %v4690_v21  ;;  %1408 = vmatpush1.bf16.msra.mxu1 %v4597_v54 }
 0x14e   :  { %1081 = vmatprep.subr.bf16.mxu0 %v4694_v22  ;;  %1409 = vmatprep.subr.bf16.mxu1 %v4603_v56 }
 0x151   :  { %1082 = vmatpush1.bf16.msra.mxu0 %v4700_v23  ;;  %1410 = vmatpush1.bf16.msra.mxu1 %v4607_v58 }
 0x152   :  { %1083 = vmatprep.subr.bf16.mxu0 %v4704_v24  ;;  %1411 = vmatprep.subr.bf16.mxu1 %v4613_v60 }
 0x155   :  { %1084 = vmatpush1.bf16.msra.mxu0 %v4708_v25  ;;  %1412 = vmatpush1.bf16.msra.mxu1 %v4619_v62 }
 0x156   :  { %1085 = vmatprep.subr.bf16.mxu0 %v4712_v26  ;;  %1413 = vmatprep.subr.bf16.mxu1 %v4625_v0 }
 0x159   :  { %1086 = vmatpush1.bf16.msra.mxu0 %v4716_v27  ;;  %1414 = vmatpush1.bf16.msra.mxu1 %v4631_v2 }
 0x15a   :  { %1087 = vmatprep.subr.bf16.mxu0 %v4720_v28  ;;  %1415 = vmatprep.subr.bf16.mxu1 %v4637_v4 }
 0x15d   :  { %1088 = vmatpush1.bf16.msra.mxu0 %v4724_v29  ;;  %1416 = vmatpush1.bf16.msra.mxu1 %v4645_v6 }
 0x15e   :  { %1089 = vmatprep.subr.bf16.mxu0 %v4728_v30  ;;  %1417 = vmatprep.subr.bf16.mxu1 %v4651_v8 }
 0x161   :  { %1090 = vmatpush1.bf16.msra.mxu0 %v4730_v31  ;;  %1418 = vmatpush1.bf16.msra.mxu1 %v4657_v10 }
 0x162   :  { %1091 = vmatprep.subr.bf16.mxu0 %v4732_v32  ;;  %1419 = vmatprep.subr.bf16.mxu1 %v4663_v12 }
 0x165   :  { %1092 = vmatpush1.bf16.msra.mxu0 %v4738_v33  ;;  %1420 = vmatpush1.bf16.msra.mxu1 %v4669_v14 }
 0x166   :  { %1219 = vmatprep.subr.bf16.mxu0 %v4740_v34  ;;  %1446 = vmatprep.subr.bf16.mxu1 %v4581_v48 }
 0x168   :  { %1110 = vmatmul.mubr.bf16.vlgmr.msra.gmra.mrb[0].mxu0 %v4746_v35  ;;  %1438 = vmatmul.mubr.bf16.vlgmr.msra.gmra.mrb[4].mxu1 %v4746_v35  ;;  %v4806_v35 = vld [vmem:[#allocation3 + $0x1f4] ss:$8 sps:$4 sm:$0xff]  }
 0x169   :  { %1220 = vmatpush1.bf16.msra.mxu0 %v4748_v36  ;;  %1447 = vmatpush1.bf16.msra.mxu1 %v4588_v51  ;;  %5959 = vst [vmem:[#allocation29_spill] sm:$0xff] %v4806_v35 }
 0x16a   :  { %1221 = vmatprep.subr.bf16.mxu0 %v4752_v37  ;;  %1448 = vmatprep.subr.bf16.mxu1 %v4595_v53 }
 0x16b   :  { %1251 = vmatprep.mubr.bf16.mxu0 %v5780_v49  ;;  %1478 = vmatprep.mubr.bf16.mxu1 %v5780_v49  ;;  %v4802_v49 = vld [vmem:[#allocation3 + $0x1e0] ss:$8 sps:$4 sm:$0xff]  }
 0x16d   :  { %1222 = vmatpush1.bf16.msra.mxu0 %v4756_v38  ;;  %1449 = vmatpush1.bf16.msra.mxu1 %v4600_v55 }
 0x16e   :  { %1223 = vmatprep.subr.bf16.mxu0 %v4760_v39  ;;  %1450 = vmatprep.subr.bf16.mxu1 %v4605_v57 }
 0x171   :  { %1224 = vmatpush1.bf16.msra.mxu0 %v4766_v40  ;;  %1451 = vmatpush1.bf16.msra.mxu1 %v4609_v59 }
 0x172   :  { %1225 = vmatprep.subr.bf16.mxu0 %v4770_v41  ;;  %1452 = vmatprep.subr.bf16.mxu1 %v4617_v61 }
 0x175   :  { %1226 = vmatpush1.bf16.msra.mxu0 %v4776_v42  ;;  %1453 = vmatpush1.bf16.msra.mxu1 %v4623_v63 }
 0x176   :  { %1227 = vmatprep.subr.bf16.mxu0 %v4778_v43  ;;  %1454 = vmatprep.subr.bf16.mxu1 %v4629_v1  ;;  %v5967_v1 = vmov 0  }
 0x179   :  { %1228 = vmatpush1.bf16.msra.mxu0 %v4784_v44  ;;  %1455 = vmatpush1.bf16.msra.mxu1 %v4633_v3  ;;  %v4810_v3 = vld [vmem:[#allocation3 + $0x1f0] ss:$8 sps:$4 sm:$0xff]  }
 0x17a   :  { %1229 = vmatprep.subr.bf16.mxu0 %v4786_v45  ;;  %1456 = vmatprep.subr.bf16.mxu1 %v4641_v5  ;;  %5960 = vst [vmem:[#allocation30_spill] sm:$0xff] %v4810_v3  ;;  %v4814_v5 = vld [vmem:[#allocation3 + $0x204] ss:$8 sps:$4 sm:$0xff]  }
 0x17b   :  { %5961 = vst [vmem:[#allocation31_spill] sm:$0xff] %v4814_v5 }
 0x17d   :  { %1230 = vmatpush1.bf16.msra.mxu0 %v4794_v46  ;;  %1457 = vmatpush1.bf16.msra.mxu1 %v4647_v7  ;;  %v4818_v7 = vld [vmem:[#allocation2 + $0xc] sm:$0xf] }
 0x17e   :  { %1231 = vmatprep.subr.bf16.mxu0 %v4798_v18  ;;  %1458 = vmatprep.subr.bf16.mxu1 %v4653_v9  ;;  %5962 = vst [vmem:[#allocation32_spill] sm:$0xff] %v4818_v7  ;;  %v4820_v9 = vld [vmem:[#allocation3 + $0x200] ss:$8 sps:$4 sm:$0xff]  }
 0x17f   :  { %5963 = vst [vmem:[#allocation33_spill] sm:$0xff] %v4820_v9 }
 0x181   :  { %1232 = vmatpush1.bf16.msra.mxu0 %v4802_v49  ;;  %1459 = vmatpush1.bf16.msra.mxu1 %v4659_v11  ;;  %v4824_v11 = vld [vmem:[#allocation3 + $0x214] ss:$8 sps:$4 sm:$0xff]  }
 0x182   :  { %1233 = vmatprep.subr.bf16.mxu0 %v4806_v35  ;;  %1460 = vmatprep.subr.bf16.mxu1 %v4665_v13  ;;  %5964 = vst [vmem:[#allocation34_spill] sm:$0xff] %v4824_v11  ;;  %v4830_v13 = vld [vmem:[#allocation3 + $0x210] ss:$8 sps:$4 sm:$0xff]  }
 0x183   :  { %5965 = vst [vmem:[#allocation35_spill] sm:$0xff] %v4830_v13 }
 0x185   :  { %1234 = vmatpush1.bf16.msra.mxu0 %v4810_v3  ;;  %1461 = vmatpush1.bf16.msra.mxu1 %v4671_v15  ;;  %v4834_v15 = vld [vmem:[#allocation3 + $0x224] ss:$8 sps:$4 sm:$0xff]  }
 0x186   :  { %1361 = vmatprep.subr.bf16.mxu0 %v4814_v5  ;;  %1487 = vmatprep.subr.bf16.mxu1 %v4675_v16  ;;  %5966 = vst [vmem:[#allocation36_spill] sm:$0xff] %v4834_v15  ;;  %v4852_v16 = vld [vmem:[#allocation3 + $0x244] ss:$8 sps:$4 sm:$0xff]  }
 0x187   :  { %5971 = vst [vmem:[#allocation40_spill] sm:$0xff] %v4852_v16 }
 0x188   :  { %1252 = vmatmul.mubr.bf16.vlgmr.msra.gmra.mrb[0].mxu0 %v4818_v7  ;;  %1479 = vmatmul.mubr.bf16.vlgmr.msra.gmra.mrb[4].mxu1 %v4677_v17  ;;  %v4840_v17 = vld [vmem:[#allocation3 + $0x220] ss:$8 sps:$4 sm:$0xff]  }
 0x189   :  { %1362 = vmatpush1.bf16.msra.mxu0 %v4820_v9  ;;  %1488 = vmatpush1.bf16.msra.mxu1 %v4681_v19  ;;  %5968 = vst [vmem:[#allocation37_spill] sm:$0xff] %v4840_v17  ;;  %v4844_v19 = vld [vmem:[#allocation3 + $0x234] ss:$8 sps:$4 sm:$0xff]  }
 0x18a   :  { %1363 = vmatprep.subr.bf16.mxu0 %v4824_v11  ;;  %1489 = vmatprep.subr.bf16.mxu1 %v4685_v20  ;;  %5969 = vst [vmem:[#allocation38_spill] sm:$0xff] %v4844_v19  ;;  %v4848_v20 = vld [vmem:[#allocation3 + $0x230] ss:$8 sps:$4 sm:$0xff]  }
 0x18b   :  { %1393 = vmatprep.mubr.bf16.mxu0 %v5967_v1  ;;  %1519 = vmatprep.mubr.bf16.mxu1 %v5967_v1  ;;  %5970 = vst [vmem:[#allocation39_spill] sm:$0xff] %v4848_v20 }
 0x18d   :  { %1364 = vmatpush1.bf16.msra.mxu0 %v4830_v13  ;;  %1490 = vmatpush1.bf16.msra.mxu1 %v4690_v21  ;;  %v4856_v21 = vld [vmem:[#allocation3 + $0x240] ss:$8 sps:$4 sm:$0xff]  }
 0x18e   :  { %1365 = vmatprep.subr.bf16.mxu0 %v4834_v15  ;;  %1491 = vmatprep.subr.bf16.mxu1 %v4694_v22  ;;  %5972 = vst [vmem:[#allocation41_spill] sm:$0xff] %v4856_v21  ;;  %v4860_v22 = vld [vmem:[#allocation3 + $0x254] ss:$8 sps:$4 sm:$0xff]  }
 0x18f   :  { %5973 = vst [vmem:[#allocation42_spill] sm:$0xff] %v4860_v22 }
 0x191   :  { %1366 = vmatpush1.bf16.msra.mxu0 %v4840_v17  ;;  %1492 = vmatpush1.bf16.msra.mxu1 %v4700_v23  ;;  %v4864_v23 = vld [vmem:[#allocation3 + $0x250] ss:$8 sps:$4 sm:$0xff]  }
 0x192   :  { %1367 = vmatprep.subr.bf16.mxu0 %v4844_v19  ;;  %1493 = vmatprep.subr.bf16.mxu1 %v4704_v24  ;;  %5974 = vst [vmem:[#allocation43_spill] sm:$0xff] %v4864_v23  ;;  %v4868_v24 = vld [vmem:[#allocation3 + $0x264] ss:$8 sps:$4 sm:$0xff]  }
 0x193   :  { %5975 = vst [vmem:[#allocation44_spill] sm:$0xff] %v4868_v24 }
 0x195   :  { %1368 = vmatpush1.bf16.msra.mxu0 %v4848_v20  ;;  %1494 = vmatpush1.bf16.msra.mxu1 %v4708_v25  ;;  %v4872_v25 = vld [vmem:[#allocation3 + $0x260] ss:$8 sps:$4 sm:$0xff]  }
 0x196   :  { %1369 = vmatprep.subr.bf16.mxu0 %v4852_v16  ;;  %1495 = vmatprep.subr.bf16.mxu1 %v4712_v26  ;;  %5976 = vst [vmem:[#allocation45_spill] sm:$0xff] %v4872_v25  ;;  %v4876_v26 = vld [vmem:[#allocation3 + $0x274] ss:$8 sps:$4 sm:$0xff]  }
 0x197   :  { %5977 = vst [vmem:[#allocation46_spill] sm:$0xff] %v4876_v26 }
 0x199   :  { %1370 = vmatpush1.bf16.msra.mxu0 %v4856_v21  ;;  %1496 = vmatpush1.bf16.msra.mxu1 %v4716_v27  ;;  %v4880_v27 = vld [vmem:[#allocation3 + $0x270] ss:$8 sps:$4 sm:$0xff]  }
 0x19a   :  { %1371 = vmatprep.subr.bf16.mxu0 %v4860_v22  ;;  %1497 = vmatprep.subr.bf16.mxu1 %v4720_v28  ;;  %5978 = vst [vmem:[#allocation47_spill] sm:$0xff] %v4880_v27 }
 0x19d   :  { %1372 = vmatpush1.bf16.msra.mxu0 %v4864_v23  ;;  %1498 = vmatpush1.bf16.msra.mxu1 %v4724_v29  ;;  %v4886_v29 = vld [vmem:[#allocation2 + $0x10] sm:$0xf] }
 0x19e   :  { %1373 = vmatprep.subr.bf16.mxu0 %v4868_v24  ;;  %1499 = vmatprep.subr.bf16.mxu1 %v4728_v30 }
 0x1a1   :  { %1374 = vmatpush1.bf16.msra.mxu0 %v4872_v25  ;;  %1500 = vmatpush1.bf16.msra.mxu1 %v4730_v31 }
 0x1a2   :  { %1375 = vmatprep.subr.bf16.mxu0 %v4876_v26  ;;  %1501 = vmatprep.subr.bf16.mxu1 %v4732_v32 }
 0x1a5   :  { %1376 = vmatpush1.bf16.msra.mxu0 %v4880_v27  ;;  %1502 = vmatpush1.bf16.msra.mxu1 %v4738_v33 }
 0x1a6   :  { %1530 = vmatprep.subr.bf16.mxu1 %v4740_v34 }
 0x1a8   :  { %1394 = vmatmul.mubr.bf16.vlgmr.msra.gmra.mrb[0].mxu0 %v4886_v29  ;;  %1520 = vmatmul.mubr.bf16.vlgmr.msra.gmra.mrb[4].mxu1 %v4818_v7 }
 0x1a9   :  { %1531 = vmatpush1.bf16.msra.mxu1 %v4748_v36  ;;  %1562 = vmatprep.mubr.bf16.mxu1 %v5967_v1 }
 0x1aa   :  { %1532 = vmatprep.subr.bf16.mxu1 %v4752_v37 }
 0x1ad   :  { %1533 = vmatpush1.bf16.msra.mxu1 %v4756_v38 }
 0x1ae   :  { %1534 = vmatprep.subr.bf16.mxu1 %v4760_v39 }
 0x1b1   :  { %1535 = vmatpush1.bf16.msra.mxu1 %v4766_v40 }
 0x1b2   :  { %1536 = vmatprep.subr.bf16.mxu1 %v4770_v41 }
 0x1b5   :  { %1537 = vmatpush1.bf16.msra.mxu1 %v4776_v42 }
 0x1b6   :  { %1538 = vmatprep.subr.bf16.mxu1 %v4778_v43 }
 0x1b9   :  { %1539 = vmatpush1.bf16.msra.mxu1 %v4784_v44 }
 0x1ba   :  { %1540 = vmatprep.subr.bf16.mxu1 %v4786_v45 }
 0x1bd   :  { %1541 = vmatpush1.bf16.msra.mxu1 %v4794_v46 }
 0x1be   :  { %1542 = vmatprep.subr.bf16.mxu1 %v4798_v18 }
 0x1c1   :  { %1543 = vmatpush1.bf16.msra.mxu1 %v4802_v49 }
 0x1c2   :  { %1544 = vmatprep.subr.bf16.mxu1 %v4806_v35 }
 0x1c5   :  { %1545 = vmatpush1.bf16.msra.mxu1 %v4810_v3 }
 0x1c6   :  { %1575 = vmatprep.subr.bf16.mxu1 %v4814_v5 }
 0x1c8   :  { %1563 = vmatmul.mubr.bf16.vlgmr.msra.gmra.mrb[4].mxu1 %v4886_v29 }
 0x1c9   :  { %1576 = vmatpush1.bf16.msra.mxu1 %v4820_v9  ;;  %1607 = vmatprep.mubr.bf16.mxu1 %v5967_v1 }
 0x1ca   :  { %1577 = vmatprep.subr.bf16.mxu1 %v4824_v11 }
 0x1cd   :  { %1578 = vmatpush1.bf16.msra.mxu1 %v4830_v13 }
 0x1ce   :  { %1579 = vmatprep.subr.bf16.mxu1 %v4834_v15 }
 0x1d1   :  { %1580 = vmatpush1.bf16.msra.mxu1 %v4840_v17  ;;  %v4925_v17 = vld [vmem:[#allocation2 + $0x14] sm:$0xf] }
 0x1d2   :  { %1581 = vmatprep.subr.bf16.mxu1 %v4844_v19  ;;  %5979 = vst [vmem:[#allocation48_spill] sm:$0xff] %v4925_v17 }
 0x1d5   :  { %1582 = vmatpush1.bf16.msra.mxu1 %v4848_v20 }
 0x1d6   :  { %1583 = vmatprep.subr.bf16.mxu1 %v4852_v16 }
 0x1d9   :  { %1584 = vmatpush1.bf16.msra.mxu1 %v4856_v21 }
 0x1da   :  { %1585 = vmatprep.subr.bf16.mxu1 %v4860_v22 }
 0x1dd   :  { %1586 = vmatpush1.bf16.msra.mxu1 %v4864_v23 }
 0x1de   :  { %1587 = vmatprep.subr.bf16.mxu1 %v4868_v24 }
 0x1e1   :  { %1588 = vmatpush1.bf16.msra.mxu1 %v4872_v25 }
 0x1e2   :  { %1589 = vmatprep.subr.bf16.mxu1 %v4876_v26 }
 0x1e5   :  { %1590 = vmatpush1.bf16.msra.mxu1 %v4880_v27 }
 0x1e6   :  { %1735 = vmatprep.subr.bf16.mxu1 %v4579_v47 }
 0x1e8   :  { %1608 = vmatmul.mubr.bf16.vlgmr.msra.gmra.mrb[4].mxu1 %v4925_v17 }
 0x1e9   :  { %1736 = vmatpush1.bf16.msra.mxu1 %v4586_v50  ;;  %1767 = vmatprep.mubr.bf16.mxu1 %v5967_v1  ;;  %v4195_v50 = vld [vmem:[#allocation5] sm:$0xff]  }
 0x1ea   :  { %1737 = vmatprep.subr.bf16.mxu1 %v4591_v52  ;;  %v5818_v52 = vmov 0.0  }
 0x1eb   :  { %3756 = vmatprep.subr.bf16.mxu0 %v5818_v52 }
 0x1ec   :  { %3757 = vmatpush3.bf16.msra.mxu0 %v4195_v50  ;;  %v5985_v50 = vld [vmem:[#allocation14_spill] sm:$0xff] }
 0x1ed   :  { %1738 = vmatpush1.bf16.msra.mxu1 %v4597_v54  ;;  %v4196_v54 = vld [vmem:[#allocation5 + $0x8] sm:$0xff]   ;;  %3758 = vmatprep.subr.bf16.mxu0 %v5818_v52 }
 0x1ee   :  { %1739 = vmatprep.subr.bf16.mxu1 %v4603_v56  ;;  %v4197_v56 = vld [vmem:[#allocation5 + $0x10] sm:$0xff]  }
 0x1f0   :  { %3759 = vmatpush3.bf16.msra.mxu0 %v4196_v54  ;;  %v5986_v54 = vld [vmem:[#allocation15_spill] sm:$0xff] }
 0x1f1   :  { %1740 = vmatpush1.bf16.msra.mxu1 %v4607_v58  ;;  %3760 = vmatprep.subr.bf16.mxu0 %v5818_v52  ;;  %v4198_v58 = vld [vmem:[#allocation5 + $0x18] sm:$0xff]  }
 0x1f2   :  { %1741 = vmatprep.subr.bf16.mxu1 %v4613_v60 }
 0x1f4   :  { %3761 = vmatpush3.bf16.msra.mxu0 %v4197_v56  ;;  %v5988_v56 = vld [vmem:[#allocation17_spill] sm:$0xff] }
 0x1f5   :  { %1742 = vmatpush1.bf16.msra.mxu1 %v4619_v62  ;;  %3762 = vmatprep.subr.bf16.mxu0 %v5818_v52 }
 0x1f6   :  { %1743 = vmatprep.subr.bf16.mxu1 %v4625_v0  ;;  %v5983_v0 = vld [vmem:[#allocation12_spill] sm:$0xff] }
 0x1f8   :  { %3763 = vmatpush3.bf16.msra.mxu0 %v4198_v58  ;;  %v5989_v58 = vld [vmem:[#allocation28_spill] sm:$0xff] }
 0x1f9   :  { %1744 = vmatpush1.bf16.msra.mxu1 %v4631_v2  ;;  %3764 = vmatprep.subr.bf16.mxu0 %v5818_v52 }
 0x1fa   :  { %1745 = vmatprep.subr.bf16.mxu1 %v4637_v4 }
 0x1fd   :  { %1746 = vmatpush1.bf16.msra.mxu1 %v4645_v6 }
 0x1fe   :  { %1747 = vmatprep.subr.bf16.mxu1 %v4651_v8 }
 0x201   :  { %1748 = vmatpush1.bf16.msra.mxu1 %v4657_v10 }
 0x202   :  { %1749 = vmatprep.subr.bf16.mxu1 %v4663_v12 }
 0x205   :  { %1750 = vmatpush1.bf16.msra.mxu1 %v4669_v14 }
 0x206   :  { %1776 = vmatprep.subr.bf16.mxu1 %v4581_v48  ;;  %v4199_v48 = vld [vmem:[#allocation5 + $0x20] sm:$0xff]  }
 0x207   :  { %3765 = vmatpush3.bf16.msra.mxu0 %v4199_v48  ;;  %v5990_v48 = vld [vmem:[#allocation18_spill] sm:$0xff] }
 0x208   :  { %1768 = vmatmul.mubr.bf16.vlgmr.msra.gmra.mrb[8].mxu1 %v4818_v7  ;;  %3766 = vmatprep.subr.bf16.mxu0 %v5818_v52  ;;  %v5998_v52 = vld [vmem:[#allocation26_spill] sm:$0xff]  ;;  %v5999_v7 = vmov 0.0  }
 0x209   :  { %1777 = vmatpush1.bf16.msra.mxu1 %v4588_v51  ;;  %1808 = vmatprep.mubr.bf16.mxu1 %v5967_v1  ;;  %v5980_v51 = vld [vmem:[#allocation9_spill] sm:$0xff] }
 0x20a   :  { %1778 = vmatprep.subr.bf16.mxu1 %v4595_v53  ;;  %v5981_v53 = vld [vmem:[#allocation10_spill] sm:$0xff]  ;;  %3772 = vmatprep.mubr.msk.bf16.mxu0 %vm4385_vm2, %v5999_v7 }
 0x20d   :  { %1779 = vmatpush1.bf16.msra.mxu1 %v4600_v55  ;;  %v5982_v55 = vld [vmem:[#allocation11_spill] sm:$0xff] }
 0x20e   :  { %1780 = vmatprep.subr.bf16.mxu1 %v4605_v57 }
 0x211   :  { %1781 = vmatpush1.bf16.msra.mxu1 %v4609_v59 }
 0x212   :  { %1782 = vmatprep.subr.bf16.mxu1 %v4617_v61  ;;  %v5984_v61 = vld [vmem:[#allocation13_spill] sm:$0xff] }
 0x215   :  { %1783 = vmatpush1.bf16.msra.mxu1 %v4623_v63  ;;  %v5987_v63 = vld [vmem:[#allocation16_spill] sm:$0xff] }
 0x216   :  { %1784 = vmatprep.subr.bf16.mxu1 %v5980_v51  ;;  %v5991_v51 = vld [vmem:[#allocation19_spill] sm:$0xff] }
 0x219   :  { %1785 = vmatpush1.bf16.msra.mxu1 %v5981_v53  ;;  %v5992_v53 = vld [vmem:[#allocation20_spill] sm:$0xff] }
 0x21a   :  { %1786 = vmatprep.subr.bf16.mxu1 %v5982_v55  ;;  %v5993_v55 = vld [vmem:[#allocation21_spill] sm:$0xff] }
 0x21b   :  { %v4964_v57 = vpop.f32.mrb[0].mxu1 }
 0x21c   :  { %v4966_v60 = vpop.f32.mrb[1].mxu1 }
 0x21d   :  { %v854_v62 = vpop.f32.mrb[2].mxu1  ;;  %1787 = vmatpush1.bf16.msra.mxu1 %v5983_v0  ;;  %v5995_v0 = vld [vmem:[#allocation23_spill] sm:$0xff] }
 0x21e   :  { %v855_v59 = vpop.f32.mrb[3].mxu1  ;;  %1788 = vmatprep.subr.bf16.mxu1 %v5984_v61  ;;  %v5994_v62 = vld [vmem:[#allocation22_spill] sm:$0xff]  ;;  %v5997_v61 = vld [vmem:[#allocation25_spill] sm:$0xff] }
 0x21f   :  { %v5996_v59 = vld [vmem:[#allocation24_spill] sm:$0xff] }
 0x221   :  { %1789 = vmatpush1.bf16.msra.mxu1 %v5985_v50 }
 0x222   :  { %1790 = vmatprep.subr.bf16.mxu1 %v5986_v54 }
 0x225   :  { %1791 = vmatpush1.bf16.msra.mxu1 %v5987_v63 }
 0x226   :  { %1817 = vmatprep.subr.bf16.mxu1 %v5988_v56 }
 0x228   :  { %1809 = vmatmul.mubr.bf16.vlgmr.msra.gmra.mrb[8].mxu1 %v5989_v58  ;;  %v4200_v58 = vld [vmem:[#allocation5 + $0x28] sm:$0xff]  }
 0x229   :  { %1818 = vmatpush1.bf16.msra.mxu1 %v5990_v48  ;;  %1849 = vmatprep.mubr.bf16.mxu1 %v5967_v1 }
 0x22a   :  { %1819 = vmatprep.subr.bf16.mxu1 %v5991_v51  ;;  %3767 = vmatpush3.bf16.msra.mxu0 %v4200_v58  ;;  %v6000_v51 = vld [vmem:[#allocation27_spill] sm:$0xff] }
 0x22b   :  { %3768 = vmatprep.subr.bf16.mxu0 %v5999_v7 }
 0x22d   :  { %1820 = vmatpush1.bf16.msra.mxu1 %v5992_v53  ;;  %v4201_v53 = vld [vmem:[#allocation5 + $0x30] sm:$0xff]  }
 0x22e   :  { %1821 = vmatprep.subr.bf16.mxu1 %v5993_v55  ;;  %3769 = vmatpush3.bf16.msra.mxu0 %v4201_v53 }
 0x22f   :  { %3770 = vmatprep.subr.bf16.mxu0 %v5999_v7 }
 0x231   :  { %1822 = vmatpush1.bf16.msra.mxu1 %v5994_v62 }
 0x232   :  { %1823 = vmatprep.subr.bf16.mxu1 %v5995_v0 }
 0x235   :  { %1824 = vmatpush1.bf16.msra.mxu1 %v5996_v59  ;;  %v4202_v59 = vld [vmem:[#allocation5 + $0x38] sm:$0xff]  }
 0x236   :  { %1825 = vmatprep.subr.bf16.mxu1 %v5997_v61  ;;  %3771 = vmatpush3.bf16.msra.mxu0 %v4202_v59 }
 0x237   :  { %1949 = vmatprep.subr.bf16.mxu0 %v4579_v47  ;;  %v6001_v47 = vld [vmem:[#allocation37_spill] sm:$0xff] }
 0x239   :  { %1826 = vmatpush1.bf16.msra.mxu1 %v5998_v52 }
 0x23a   :  { %1827 = vmatprep.subr.bf16.mxu1 %v4720_v28 }
 0x23d   :  { %1828 = vmatpush1.bf16.msra.mxu1 %v6000_v51 }
 0x23e   :  { %1829 = vmatprep.subr.bf16.mxu1 %v4728_v30 }
 0x241   :  { %1830 = vmatpush1.bf16.msra.mxu1 %v4730_v31 }
 0x242   :  { %1831 = vmatprep.subr.bf16.mxu1 %v4732_v32 }
 0x245   :  { %1832 = vmatpush1.bf16.msra.mxu1 %v4738_v33 }
 0x246   :  { %1860 = vmatprep.subr.bf16.mxu1 %v4740_v34 }
 0x248   :  { %1850 = vmatmul.mubr.bf16.vlgmr.msra.gmra.mrb[8].mxu1 %v4886_v29 }
 0x249   :  { %1861 = vmatpush1.bf16.msra.mxu1 %v4748_v36  ;;  %1892 = vmatprep.mubr.bf16.mxu1 %v5967_v1 }
 0x24a   :  { %1862 = vmatprep.subr.bf16.mxu1 %v4752_v37 }
 0x24d   :  { %1863 = vmatpush1.bf16.msra.mxu1 %v4756_v38 }
 0x24e   :  { %1864 = vmatprep.subr.bf16.mxu1 %v4760_v39 }
 0x251   :  { %1865 = vmatpush1.bf16.msra.mxu1 %v4766_v40 }
 0x252   :  { %1866 = vmatprep.subr.bf16.mxu1 %v4770_v41 }
 0x255   :  { %1867 = vmatpush1.bf16.msra.mxu1 %v4776_v42 }
 0x256   :  { %1868 = vmatprep.subr.bf16.mxu1 %v4778_v43 }
 0x259   :  { %1869 = vmatpush1.bf16.msra.mxu1 %v4784_v44 }
 0x25a   :  { %1870 = vmatprep.subr.bf16.mxu1 %v4786_v45 }
 0x25d   :  { %1871 = vmatpush1.bf16.msra.mxu1 %v4794_v46 }
 0x25e   :  { %1872 = vmatprep.subr.bf16.mxu1 %v4798_v18 }
 0x261   :  { %1873 = vmatpush1.bf16.msra.mxu1 %v4802_v49 }
 0x262   :  { %1874 = vmatprep.subr.bf16.mxu1 %v4806_v35 }
 0x265   :  { %1875 = vmatpush1.bf16.msra.mxu1 %v4810_v3 }
 0x266   :  { %1905 = vmatprep.subr.bf16.mxu1 %v4814_v5  ;;  %v5121_v5 = vld [vmem:[#allocation3 + $0x64] ss:$8 sps:$4 sm:$0xff]  }
 0x267   :  { %6019 = vst [vmem:[#allocation49_spill] sm:$0xff] %v5121_v5 }
 0x268   :  { %1893 = vmatmul.mubr.bf16.vlgmr.msra.gmra.mrb[8].mxu1 %v4925_v17 }
 0x269   :  { %1906 = vmatpush1.bf16.msra.mxu1 %v4820_v9  ;;  %1937 = vmatprep.mubr.bf16.mxu1 %v5967_v1 }
 0x26a   :  { %1907 = vmatprep.subr.bf16.mxu1 %v4824_v11  ;;  %v5119_v11 = vld [vmem:[%s5774_s4] ss:$0 sm:$0xff] }
 0x26b   :  { %6018 = vst [vmem:[#allocation27_spill] sm:$0xff] %v5119_v11 }
 0x26d   :  { %1908 = vmatpush1.bf16.msra.mxu1 %v4830_v13  ;;  %v5113_v13 = vld [vmem:[#allocation3 + $0x50] ss:$8 sps:$4 sm:$0xff]  }
 0x26e   :  { %1909 = vmatprep.subr.bf16.mxu1 %v4834_v15  ;;  %6017 = vst [vmem:[#allocation26_spill] sm:$0xff] %v5113_v13 }
 0x271   :  { %1910 = vmatpush1.bf16.msra.mxu1 %v6001_v47 }
 0x272   :  { %1911 = vmatprep.subr.bf16.mxu1 %v4844_v19 }
 0x275   :  { %1912 = vmatpush1.bf16.msra.mxu1 %v4848_v20 }
 0x276   :  { %1913 = vmatprep.subr.bf16.mxu1 %v4852_v16  ;;  %v5059_v16 = vld [vmem:[#allocation3 + $0xa0] ss:$8 sps:$4 sm:$0xff]  }
 0x279   :  { %1914 = vmatpush1.bf16.msra.mxu1 %v4856_v21 }
 0x27a   :  { %1915 = vmatprep.subr.bf16.mxu1 %v4860_v22 }
 0x27b   :  { %v1395_v53 = vpop.f32.mrb[0].mxu0 }
 0x27c   :  { %v5028_v59 = vadd.f32 %v1395_v53, %v4964_v57  ;;  %v1397_v58 = vpop.f32.mrb[1].mxu0  ;;  %v5040_v57 = vld [vmem:[#allocation2 + $0x18] sm:$0xf]  ;;  %v5042_v53 = vld [vmem:[#allocation3 + $0x84] ss:$8 sps:$4 sm:$0xff]  }
 0x27d   :  { %v5031_v7 = vadd.f32 %v1397_v58, %v4966_v60  ;;  %v1399_v15 = vpop.f32.mrb[2].mxu0  ;;  %1916 = vmatpush1.bf16.msra.mxu1 %v4864_v23  ;;  %6002 = vst [vmem:[#allocation9_spill] sm:$0xff] %v5042_v53  ;;  %v5053_v60 = vld [vmem:[#allocation3 + $0x90] ss:$8 sps:$4 sm:$0xff]   ;;  %v5056_v58 = vld [vmem:[#allocation3 + $0xa4] ss:$8 sps:$4 sm:$0xff]  }
 0x27e   :  { %v1400_v19 = vpop.f32.mrb[3].mxu0  ;;  %1917 = vmatprep.subr.bf16.mxu1 %v4868_v24  ;;  %v5046_v15 = vld [vmem:[#allocation3 + $0x80] ss:$8 sps:$4 sm:$0xff]   ;;  %v5110_v23 = vld [vmem:[#allocation3 + $0x54] ss:$8 sps:$4 sm:$0xff]  }
 0x27f   :  { %v5050_v19 = vld [vmem:[#allocation3 + $0x94] ss:$8 sps:$4 sm:$0xff]   ;;  %v5082_v24 = vld [vmem:[#allocation3] ss:$8 sps:$4 sm:$0xff]   ;;  %6016 = vst [vmem:[#allocation25_spill] sm:$0xff] %v5110_v23  ;;  %v6020_v3 = vmax.f32 %v5028_v59, %v5031_v7 }
 0x280   :  { %6007 = vst [vmem:[#allocation14_spill] sm:$0xff] %v5082_v24  ;;  %v6022_v7 = vld [vmem:[#allocation20_spill] sm:$0xff]  ;;  %v6042_v59 = vld [vmem:[#allocation33_spill] sm:$0xff] }
 0x281   :  { %1918 = vmatpush1.bf16.msra.mxu1 %v4872_v25  ;;  %v5078_v25 = vld [vmem:[#allocation3 + $0x4] ss:$8 sps:$4 sm:$0xff]  }
 0x282   :  { %1919 = vmatprep.subr.bf16.mxu1 %v4876_v26  ;;  %v5068_v26 = vld [vmem:[#allocation3 + $0xc4] ss:$8 sps:$4 sm:$0xff]   ;;  %6006 = vst [vmem:[#allocation13_spill] sm:$0xff] %v5078_v25 }
 0x283   :  { %6005 = vst [vmem:[#allocation12_spill] sm:$0xff] %v5068_v26 }
 0x285   :  { %1920 = vmatpush1.bf16.msra.mxu1 %v4880_v27  ;;  %v5065_v27 = vld [vmem:[#allocation3 + $0xb0] ss:$8 sps:$4 sm:$0xff]  }
 0x286   :  { %2273 = vmatprep.subr.bf16.mxu1 %v5042_v53  ;;  %v5062_v53 = vld [vmem:[#allocation3 + $0xb4] ss:$8 sps:$4 sm:$0xff]   ;;  %6004 = vst [vmem:[#allocation11_spill] sm:$0xff] %v5065_v27 }
 0x287   :  { %6003 = vst [vmem:[#allocation10_spill] sm:$0xff] %v5062_v53 }
 0x288   :  { %1938 = vmatmul.mubr.bf16.vlgmr.msra.gmra.mrb[8].mxu1 %v5040_v57 }
 0x289   :  { %2274 = vmatpush1.bf16.msra.mxu1 %v5046_v15  ;;  %2305 = vmatprep.mubr.bf16.mxu1 %v5967_v1 }
 0x28a   :  { %2275 = vmatprep.subr.bf16.mxu1 %v5050_v19 }
 0x28d   :  { %2276 = vmatpush1.bf16.msra.mxu1 %v5053_v60 }
 0x28e   :  { %2277 = vmatprep.subr.bf16.mxu1 %v5056_v58 }
 0x291   :  { %2278 = vmatpush1.bf16.msra.mxu1 %v5059_v16 }
 0x292   :  { %2279 = vmatprep.subr.bf16.mxu1 %v5062_v53 }
 0x295   :  { %2280 = vmatpush1.bf16.msra.mxu1 %v5065_v27 }
 0x296   :  { %2281 = vmatprep.subr.bf16.mxu1 %v5068_v26 }
 0x299   :  { %2282 = vmatpush1.bf16.msra.mxu1 %v4631_v2  ;;  %v5086_v2 = vld [vmem:[#allocation3 + $0x14] ss:$8 sps:$4 sm:$0xff]  }
 0x29a   :  { %2283 = vmatprep.subr.bf16.mxu1 %v4637_v4  ;;  %6008 = vst [vmem:[#allocation15_spill] sm:$0xff] %v5086_v2  ;;  %v5089_v4 = vld [vmem:[#allocation3 + $0x10] ss:$8 sps:$4 sm:$0xff]  }
 0x29b   :  { %6009 = vst [vmem:[#allocation16_spill] sm:$0xff] %v5089_v4 }
 0x29d   :  { %2284 = vmatpush1.bf16.msra.mxu1 %v4645_v6  ;;  %v5092_v6 = vld [vmem:[#allocation3 + $0x24] ss:$8 sps:$4 sm:$0xff]  }
 0x29e   :  { %2285 = vmatprep.subr.bf16.mxu1 %v4651_v8  ;;  %6010 = vst [vmem:[#allocation17_spill] sm:$0xff] %v5092_v6  ;;  %v5095_v8 = vld [vmem:[#allocation3 + $0x20] ss:$8 sps:$4 sm:$0xff]  }
 0x29f   :  { %6011 = vst [vmem:[#allocation28_spill] sm:$0xff] %v5095_v8 }
 0x2a1   :  { %2286 = vmatpush1.bf16.msra.mxu1 %v4657_v10  ;;  %v5098_v10 = vld [vmem:[#allocation3 + $0x34] ss:$8 sps:$4 sm:$0xff]  }
 0x2a2   :  { %2287 = vmatprep.subr.bf16.mxu1 %v4663_v12  ;;  %6012 = vst [vmem:[#allocation18_spill] sm:$0xff] %v5098_v10  ;;  %v5101_v12 = vld [vmem:[#allocation3 + $0x30] ss:$8 sps:$4 sm:$0xff]  }
 0x2a3   :  { %6013 = vst [vmem:[#allocation21_spill] sm:$0xff] %v5101_v12 }
 0x2a5   :  { %2288 = vmatpush1.bf16.msra.mxu1 %v4669_v14  ;;  %v5104_v14 = vld [vmem:[#allocation3 + $0x44] ss:$8 sps:$4 sm:$0xff]  }
 0x2a6   :  { %2314 = vmatprep.subr.bf16.mxu1 %v5078_v25  ;;  %6014 = vst [vmem:[#allocation22_spill] sm:$0xff] %v5104_v14 }
 0x2a8   :  { %2306 = vmatmul.mubr.bf16.vlgmr.msra.gmra.mrb[12].mxu1 %v4925_v17  ;;  %v5107_v17 = vld [vmem:[#allocation3 + $0x40] ss:$8 sps:$4 sm:$0xff]  }
 0x2a9   :  { %2315 = vmatpush1.bf16.msra.mxu1 %v5082_v24  ;;  %2346 = vmatprep.mubr.bf16.mxu1 %v5967_v1  ;;  %6015 = vst [vmem:[#allocation23_spill] sm:$0xff] %v5107_v17 }
 0x2aa   :  { %2316 = vmatprep.subr.bf16.mxu1 %v5086_v2 }
 0x2ad   :  { %2317 = vmatpush1.bf16.msra.mxu1 %v5089_v4 }
 0x2ae   :  { %2318 = vmatprep.subr.bf16.mxu1 %v5092_v6 }
 0x2b1   :  { %2319 = vmatpush1.bf16.msra.mxu1 %v5095_v8 }
 0x2b2   :  { %2320 = vmatprep.subr.bf16.mxu1 %v5098_v10 }
 0x2b5   :  { %2321 = vmatpush1.bf16.msra.mxu1 %v5101_v12 }
 0x2b6   :  { %2322 = vmatprep.subr.bf16.mxu1 %v5104_v14 }
 0x2b9   :  { %2323 = vmatpush1.bf16.msra.mxu1 %v5107_v17 }
 0x2ba   :  { %2324 = vmatprep.subr.bf16.mxu1 %v5110_v23 }
 0x2bb   :  { %v1609_v22 = vpop.f32.mrb[4].mxu1 }
 0x2bc   :  { %v1611_v21 = vpop.f32.mrb[5].mxu1 }
 0x2bd   :  { %v1618_v20 = vmax.f32 %v1609_v22, %v1611_v21  ;;  %v1613_v47 = vpop.f32.mrb[6].mxu1  ;;  %2325 = vmatpush1.bf16.msra.mxu1 %v5113_v13 }
 0x2be   :  { %v1614_v9 = vpop.f32.mrb[7].mxu1  ;;  %2326 = vmatprep.subr.bf16.mxu1 %v5121_v5 }
 0x2bf   :  { %v1619_v35 = vmax.f32 %v6020_v3, %v1618_v20  ;;  %v6021_v3 = vld [vmem:[#allocation19_spill] sm:$0xff]  ;;  %v6023_v9 = vld [vmem:[#allocation24_spill] sm:$0xff]  ;;  %v5151_v20 = vld [vmem:[#allocation3 + $0xc0] ss:$8 sps:$4 sm:$0xff]  }
 0x2c0   :  { %6024 = vst [vmem:[#allocation19_spill] sm:$0xff] %v5151_v20 }
 0x2c1   :  { %v1627_v21 = vadd.f32 %v5119_v11, %v1619_v35  ;;  %2327 = vmatpush1.bf16.msra.mxu1 %v5985_v50  ;;  %v5154_v35 = vld [vmem:[#allocation3 + $0xd4] ss:$8 sps:$4 sm:$0xff]   ;;  %v5159_v50 = vld [vmem:[#allocation3 + $0xd0] ss:$8 sps:$4 sm:$0xff]   ;;  %v6050_v11 = vld [vmem:[#allocation37_spill] sm:$0xff] }
 0x2c2   :  { %2328 = vmatprep.subr.bf16.mxu1 %v5986_v54  ;;  %6025 = vst [vmem:[#allocation20_spill] sm:$0xff] %v5154_v35  ;;  %6026 = vst [vmem:[#allocation24_spill] sm:$0xff] %v5159_v50  ;;  %v5162_v54 = vld [vmem:[#allocation3 + $0xe4] ss:$8 sps:$4 sm:$0xff]  }
 0x2c3   :  { %v1628_v22 = vmax.f32 %v1627_v21, 0.0  ;;  %6027 = vst [vmem:[#allocation50_spill] sm:$0xff] %v5162_v54  ;;  %v6043_v21 = vld [vmem:[#allocation34_spill] sm:$0xff] }
 0x2c5   :  { %v1629_v47 = vpack.c.bf16 %v1628_v22, %v1628_v22  ;;  %2329 = vmatpush1.bf16.msra.mxu1 %v5987_v63  ;;  %v5167_v63 = vld [vmem:[#allocation3 + $0xe0] ss:$8 sps:$4 sm:$0xff]   ;;  %v5239_v22 = vld [vmem:[#allocation3 + $0x110] ss:$8 sps:$4 sm:$0xff]  }
 0x2c6   :  { %2355 = vmatprep.subr.bf16.mxu1 %v5988_v56  ;;  %6028 = vst [vmem:[#allocation51_spill] sm:$0xff] %v5167_v63  ;;  %v5170_v56 = vld [vmem:[#allocation3 + $0xf4] ss:$8 sps:$4 sm:$0xff]   ;;  %6044 = vst [vmem:[#allocation33_spill] sm:$0xff] %v5239_v22 }
 0x2c7   :  { %3773 = vmatmul.mubr.bf16.vlgmr.msra.gmra.mrb[4].mxu0 %v1629_v47  ;;  %6029 = vst [vmem:[#allocation52_spill] sm:$0xff] %v5170_v56  ;;  %v5242_v47 = vld [vmem:[#allocation3 + $0x124] ss:$8 sps:$4 sm:$0xff]  }
 0x2c8   :  { %1950 = vmatpush1.bf16.msra.mxu0 %v5046_v15  ;;  %1981 = vmatprep.mubr.bf16.mxu0 %v5967_v1  ;;  %6045 = vst [vmem:[#allocation34_spill] sm:$0xff] %v5242_v47 }
 0x2c9   :  { %1951 = vmatprep.subr.bf16.mxu0 %v5050_v19  ;;  %2347 = vmatmul.mubr.bf16.vlgmr.msra.gmra.mrb[12].mxu1 %v4886_v29 }
 0x2ca   :  { %2356 = vmatpush1.bf16.msra.mxu1 %v5990_v48  ;;  %2387 = vmatprep.mubr.bf16.mxu1 %v5967_v1  ;;  %v6036_v48 = vld [vmem:[#allocation30_spill] sm:$0xff] }
 0x2cb   :  { %2357 = vmatprep.subr.bf16.mxu1 %v6021_v3  ;;  %v6046_v3 = vld [vmem:[#allocation35_spill] sm:$0xff] }
 0x2cc   :  { %1952 = vmatpush1.bf16.msra.mxu0 %v5053_v60 }
 0x2cd   :  { %1953 = vmatprep.subr.bf16.mxu0 %v5056_v58 }
 0x2ce   :  { %2358 = vmatpush1.bf16.msra.mxu1 %v6022_v7  ;;  %v6047_v7 = vld [vmem:[#allocation36_spill] sm:$0xff] }
 0x2cf   :  { %2359 = vmatprep.subr.bf16.mxu1 %v5993_v55  ;;  %v6038_v55 = vld [vmem:[#allocation31_spill] sm:$0xff] }
 0x2d0   :  { %1954 = vmatpush1.bf16.msra.mxu0 %v5059_v16 }
 0x2d1   :  { %1955 = vmatprep.subr.bf16.mxu0 %v5062_v53 }
 0x2d2   :  { %2360 = vmatpush1.bf16.msra.mxu1 %v5994_v62  ;;  %v5226_v62 = vld [vmem:[#allocation3 + $0x100] ss:$8 sps:$4 sm:$0xff]  }
 0x2d3   :  { %2361 = vmatprep.subr.bf16.mxu1 %v5995_v0  ;;  %6039 = vst [vmem:[#allocation30_spill] sm:$0xff] %v5226_v62  ;;  %v5230_v0 = vld [vmem:[#allocation2 + $0x1c] sm:$0xf] }
 0x2d4   :  { %1956 = vmatpush1.bf16.msra.mxu0 %v5065_v27 }
 0x2d5   :  { %1957 = vmatprep.subr.bf16.mxu0 %v5068_v26 }
 0x2d6   :  { %2362 = vmatpush1.bf16.msra.mxu1 %v6023_v9  ;;  %v5247_v9 = vld [vmem:[#allocation3 + $0x120] ss:$8 sps:$4 sm:$0xff]  }
 0x2d7   :  { %2363 = vmatprep.subr.bf16.mxu1 %v5997_v61  ;;  %v5232_v61 = vld [vmem:[#allocation3 + $0x114] ss:$8 sps:$4 sm:$0xff]   ;;  %6048 = vst [vmem:[#allocation35_spill] sm:$0xff] %v5247_v9 }
 0x2d8   :  { %1958 = vmatpush1.bf16.msra.mxu0 %v5151_v20  ;;  %6041 = vst [vmem:[#allocation31_spill] sm:$0xff] %v5232_v61 }
 0x2d9   :  { %1959 = vmatprep.subr.bf16.mxu0 %v5154_v35 }
 0x2da   :  { %2364 = vmatpush1.bf16.msra.mxu1 %v5998_v52  ;;  %v5220_v52 = vld [vmem:[#allocation3 + $0x104] ss:$8 sps:$4 sm:$0xff]  }
 0x2db   :  { %2365 = vmatprep.subr.bf16.mxu1 %v4720_v28  ;;  %v5175_v28 = vld [vmem:[#allocation3 + $0xf0] ss:$8 sps:$4 sm:$0xff]   ;;  %6035 = vst [vmem:[#allocation56_spill] sm:$0xff] %v5220_v52 }
 0x2dc   :  { %1960 = vmatpush1.bf16.msra.mxu0 %v5159_v50  ;;  %6030 = vst [vmem:[#allocation53_spill] sm:$0xff] %v5175_v28 }
 0x2dd   :  { %1961 = vmatprep.subr.bf16.mxu0 %v5162_v54 }
 0x2de   :  { %2366 = vmatpush1.bf16.msra.mxu1 %v6000_v51  ;;  %v6037_v51 = vld [vmem:[#allocation32_spill] sm:$0xff] }
 0x2df   :  { %2367 = vmatprep.subr.bf16.mxu1 %v4728_v30  ;;  %v5212_v30 = vld [vmem:[#allocation3 + $0x74] ss:$8 sps:$4 sm:$0xff]   ;;  %6040 = vst [vmem:[#allocation32_spill] sm:$0xff] %v5230_v0 }
 0x2e0   :  { %1962 = vmatpush1.bf16.msra.mxu0 %v5167_v63  ;;  %6032 = vst [vmem:[#allocation55_spill] sm:$0xff] %v5212_v30 }
 0x2e1   :  { %1963 = vmatprep.subr.bf16.mxu0 %v5170_v56 }
 0x2e2   :  { %2368 = vmatpush1.bf16.msra.mxu1 %v4730_v31  ;;  %v6033_v31 = vld [vmem:[#allocation29_spill] sm:$0xff] }
 0x2e3   :  { %2369 = vmatprep.subr.bf16.mxu1 %v4732_v32  ;;  %v5217_v32 = vld [vmem:[#allocation3 + $0x70] ss:$8 sps:$4 sm:$0xff]  }
 0x2e4   :  { %1964 = vmatpush1.bf16.msra.mxu0 %v5175_v28  ;;  %6034 = vst [vmem:[#allocation29_spill] sm:$0xff] %v5217_v32 }
 0x2e5   :  { %1990 = vmatprep.subr.bf16.mxu0 %v5078_v25 }
 0x2e6   :  { %2370 = vmatpush1.bf16.msra.mxu1 %v4738_v33 }
 0x2e7   :  { %1982 = vmatmul.mubr.bf16.vlgmr.msra.gmra.mrb[8].mxu0 %v4886_v29  ;;  %2398 = vmatprep.subr.bf16.mxu1 %v4740_v34  ;;  %v5209_v29 = vld [vmem:[#allocation3 + $0x60] ss:$8 sps:$4 sm:$0xff]  }
 0x2e8   :  { %1991 = vmatpush1.bf16.msra.mxu0 %v5082_v24  ;;  %2022 = vmatprep.mubr.bf16.mxu0 %v5967_v1  ;;  %6031 = vst [vmem:[#allocation54_spill] sm:$0xff] %v5209_v29 }
 0x2e9   :  { %1992 = vmatprep.subr.bf16.mxu0 %v5086_v2  ;;  %2388 = vmatmul.mubr.bf16.vlgmr.msra.gmra.mrb[12].mxu1 %v5040_v57 }
 0x2ea   :  { %2399 = vmatpush1.bf16.msra.mxu1 %v4748_v36  ;;  %2430 = vmatprep.mubr.bf16.mxu1 %v5967_v1 }
 0x2eb   :  { %2400 = vmatprep.subr.bf16.mxu1 %v4752_v37 }
 0x2ec   :  { %1993 = vmatpush1.bf16.msra.mxu0 %v5089_v4 }
 0x2ed   :  { %1994 = vmatprep.subr.bf16.mxu0 %v5092_v6 }
 0x2ee   :  { %2401 = vmatpush1.bf16.msra.mxu1 %v4756_v38 }
 0x2ef   :  { %2402 = vmatprep.subr.bf16.mxu1 %v4760_v39 }
 0x2f0   :  { %1995 = vmatpush1.bf16.msra.mxu0 %v5095_v8 }
 0x2f1   :  { %1996 = vmatprep.subr.bf16.mxu0 %v5098_v10 }
 0x2f2   :  { %2403 = vmatpush1.bf16.msra.mxu1 %v4766_v40 }
 0x2f3   :  { %2404 = vmatprep.subr.bf16.mxu1 %v4770_v41 }
 0x2f4   :  { %1997 = vmatpush1.bf16.msra.mxu0 %v5101_v12 }
 0x2f5   :  { %1998 = vmatprep.subr.bf16.mxu0 %v5104_v14 }
 0x2f6   :  { %2405 = vmatpush1.bf16.msra.mxu1 %v4776_v42 }
 0x2f7   :  { %2406 = vmatprep.subr.bf16.mxu1 %v4778_v43 }
 0x2f8   :  { %1999 = vmatpush1.bf16.msra.mxu0 %v5107_v17  ;;  %v6068_v17 = vld [vmem:[#allocation9_spill] sm:$0xff] }
 0x2f9   :  { %2000 = vmatprep.subr.bf16.mxu0 %v5110_v23  ;;  %v6065_v23 = vld [vmem:[#allocation46_spill] sm:$0xff] }
 0x2fa   :  { %2407 = vmatpush1.bf16.msra.mxu1 %v4784_v44 }
 0x2fb   :  { %2408 = vmatprep.subr.bf16.mxu1 %v4786_v45 }
 0x2fc   :  { %2001 = vmatpush1.bf16.msra.mxu0 %v5113_v13  ;;  %v6064_v13 = vld [vmem:[#allocation45_spill] sm:$0xff] }
 0x2fd   :  { %2002 = vmatprep.subr.bf16.mxu0 %v5121_v5  ;;  %v6063_v5 = vld [vmem:[#allocation44_spill] sm:$0xff] }
 0x2fe   :  { %2409 = vmatpush1.bf16.msra.mxu1 %v4794_v46 }
 0x2ff   :  { %2410 = vmatprep.subr.bf16.mxu1 %v4798_v18 }
 0x300   :  { %2003 = vmatpush1.bf16.msra.mxu0 %v5209_v29  ;;  %v6062_v29 = vld [vmem:[#allocation43_spill] sm:$0xff] }
 0x301   :  { %2004 = vmatprep.subr.bf16.mxu0 %v5212_v30  ;;  %v6059_v30 = vld [vmem:[#allocation42_spill] sm:$0xff] }
 0x302   :  { %2411 = vmatpush1.bf16.msra.mxu1 %v4802_v49 }
 0x303   :  { %2412 = vmatprep.subr.bf16.mxu1 %v6033_v31 }
 0x304   :  { %2005 = vmatpush1.bf16.msra.mxu0 %v5217_v32  ;;  %v6058_v32 = vld [vmem:[#allocation41_spill] sm:$0xff] }
 0x305   :  { %2031 = vmatprep.subr.bf16.mxu0 %v5220_v52  ;;  %v6055_v52 = vld [vmem:[#allocation40_spill] sm:$0xff] }
 0x306   :  { %2413 = vmatpush1.bf16.msra.mxu1 %v6036_v48 }
 0x307   :  { %2023 = vmatmul.mubr.bf16.vlgmr.msra.gmra.mrb[8].mxu0 %v6037_v51  ;;  %2443 = vmatprep.subr.bf16.mxu1 %v6038_v55  ;;  %v5250_v51 = vld [vmem:[#allocation3 + $0x134] ss:$8 sps:$4 sm:$0xff]  }
 0x308   :  { %2032 = vmatpush1.bf16.msra.mxu0 %v5226_v62  ;;  %2063 = vmatprep.mubr.bf16.mxu0 %v5967_v1  ;;  %6049 = vst [vmem:[#allocation36_spill] sm:$0xff] %v5250_v51  ;;  %v6054_v62 = vld [vmem:[#allocation39_spill] sm:$0xff] }
 0x309   :  { %2033 = vmatprep.subr.bf16.mxu0 %v5232_v61  ;;  %2431 = vmatmul.mubr.bf16.vlgmr.msra.gmra.mrb[12].mxu1 %v5230_v0  ;;  %v6051_v61 = vld [vmem:[#allocation38_spill] sm:$0xff] }
 0x30a   :  { %2444 = vmatpush1.bf16.msra.mxu1 %v6042_v59  ;;  %2475 = vmatprep.mubr.bf16.mxu1 %v5967_v1 }
 0x30b   :  { %2445 = vmatprep.subr.bf16.mxu1 %v6043_v21 }
 0x30c   :  { %2034 = vmatpush1.bf16.msra.mxu0 %v5239_v22  ;;  %v5255_v22 = vld [vmem:[#allocation3 + $0x130] ss:$8 sps:$4 sm:$0xff]  }
 0x30d   :  { %2035 = vmatprep.subr.bf16.mxu0 %v5242_v47  ;;  %6052 = vst [vmem:[#allocation37_spill] sm:$0xff] %v5255_v22  ;;  %v5258_v47 = vld [vmem:[#allocation3 + $0x144] ss:$8 sps:$4 sm:$0xff]  }
 0x30e   :  { %2446 = vmatpush1.bf16.msra.mxu1 %v6046_v3  ;;  %6053 = vst [vmem:[#allocation38_spill] sm:$0xff] %v5258_v47 }
 0x30f   :  { %2447 = vmatprep.subr.bf16.mxu1 %v6047_v7 }
 0x310   :  { %2036 = vmatpush1.bf16.msra.mxu0 %v5247_v9  ;;  %v5263_v9 = vld [vmem:[#allocation3 + $0x140] ss:$8 sps:$4 sm:$0xff]  }
 0x311   :  { %2037 = vmatprep.subr.bf16.mxu0 %v5250_v51  ;;  %6056 = vst [vmem:[#allocation39_spill] sm:$0xff] %v5263_v9  ;;  %v5266_v51 = vld [vmem:[#allocation3 + $0x154] ss:$8 sps:$4 sm:$0xff]  }
 0x312   :  { %2448 = vmatpush1.bf16.msra.mxu1 %v6050_v11  ;;  %6057 = vst [vmem:[#allocation40_spill] sm:$0xff] %v5266_v51 }
 0x313   :  { %2449 = vmatprep.subr.bf16.mxu1 %v6051_v61 }
 0x314   :  { %2038 = vmatpush1.bf16.msra.mxu0 %v5255_v22  ;;  %v5271_v22 = vld [vmem:[#allocation3 + $0x150] ss:$8 sps:$4 sm:$0xff]  }
 0x315   :  { %2039 = vmatprep.subr.bf16.mxu0 %v5258_v47  ;;  %6060 = vst [vmem:[#allocation41_spill] sm:$0xff] %v5271_v22  ;;  %v5274_v47 = vld [vmem:[#allocation3 + $0x164] ss:$8 sps:$4 sm:$0xff]  }
 0x316   :  { %2450 = vmatpush1.bf16.msra.mxu1 %v6054_v62  ;;  %6061 = vst [vmem:[#allocation42_spill] sm:$0xff] %v5274_v47 }
 0x317   :  { %2451 = vmatprep.subr.bf16.mxu1 %v6055_v52 }
 0x318   :  { %2040 = vmatpush1.bf16.msra.mxu0 %v5263_v9  ;;  %v5279_v9 = vld [vmem:[#allocation3 + $0x160] ss:$8 sps:$4 sm:$0xff]  }
 0x319   :  { %2041 = vmatprep.subr.bf16.mxu0 %v5266_v51  ;;  %v5282_v51 = vld [vmem:[#allocation3 + $0x174] ss:$8 sps:$4 sm:$0xff]  }
 0x31a   :  { %2452 = vmatpush1.bf16.msra.mxu1 %v6058_v32 }
 0x31b   :  { %2453 = vmatprep.subr.bf16.mxu1 %v6059_v30 }
 0x31c   :  { %2042 = vmatpush1.bf16.msra.mxu0 %v5271_v22  ;;  %v6067_v22 = vld [vmem:[#allocation48_spill] sm:$0xff] }
 0x31d   :  { %2043 = vmatprep.subr.bf16.mxu0 %v5274_v47  ;;  %v6066_v47 = vld [vmem:[#allocation47_spill] sm:$0xff] }
 0x31e   :  { %2454 = vmatpush1.bf16.msra.mxu1 %v6062_v29 }
 0x31f   :  { %2455 = vmatprep.subr.bf16.mxu1 %v6063_v5 }
 0x320   :  { %2044 = vmatpush1.bf16.msra.mxu0 %v5279_v9 }
 0x321   :  { %2045 = vmatprep.subr.bf16.mxu0 %v5282_v51 }
 0x322   :  { %2456 = vmatpush1.bf16.msra.mxu1 %v6064_v13 }
 0x323   :  { %2457 = vmatprep.subr.bf16.mxu1 %v6065_v23 }
 0x324   :  { %2046 = vmatpush1.bf16.msra.mxu0 %v4738_v33 }
 0x325   :  { %2074 = vmatprep.subr.bf16.mxu0 %v4740_v34 }
 0x326   :  { %2458 = vmatpush1.bf16.msra.mxu1 %v6066_v47 }
 0x327   :  { %2064 = vmatmul.mubr.bf16.vlgmr.msra.gmra.mrb[8].mxu0 %v6067_v22  ;;  %2811 = vmatprep.subr.bf16.mxu1 %v6068_v17 }
 0x328   :  { %2075 = vmatpush1.bf16.msra.mxu0 %v4748_v36  ;;  %2106 = vmatprep.mubr.bf16.mxu0 %v5967_v1 }
 0x329   :  { %2076 = vmatprep.subr.bf16.mxu0 %v4752_v37  ;;  %v4203_v37 = vld [vmem:[#allocation5 + $0x40] sm:$0xff]  }
 0x32c   :  { %2077 = vmatpush1.bf16.msra.mxu0 %v4756_v38  ;;  %v6069_v38 = vmov 0.0  }
 0x32d   :  { %2078 = vmatprep.subr.bf16.mxu0 %v4760_v39  ;;  %v4204_v39 = vld [vmem:[#allocation5 + $0x48] sm:$0xff]  }
 0x330   :  { %2079 = vmatpush1.bf16.msra.mxu0 %v4766_v40  ;;  %v4208_v40 = vld [vmem:[#allocation5 + $0x68] sm:$0xff]  }
 0x331   :  { %2080 = vmatprep.subr.bf16.mxu0 %v4770_v41  ;;  %v4209_v41 = vld [vmem:[#allocation5 + $0x70] sm:$0xff]  }
 0x334   :  { %2081 = vmatpush1.bf16.msra.mxu0 %v4776_v42  ;;  %v4210_v42 = vld [vmem:[#allocation5 + $0x78] sm:$0xff]  }
 0x335   :  { %2082 = vmatprep.subr.bf16.mxu0 %v4778_v43  ;;  %v5344_v43 = vld [vmem:[#allocation2 + $0x20] sm:$0xf] }
 0x336   :  { %2476 = vmatmul.mubr.bf16.vlgmr.msra.gmra.mrb[12].mxu1 %v5344_v43 }
 0x337   :  { %2812 = vmatpush1.bf16.msra.mxu1 %v5046_v15  ;;  %2843 = vmatprep.mubr.bf16.mxu1 %v5967_v1 }
 0x338   :  { %2083 = vmatpush1.bf16.msra.mxu0 %v4784_v44  ;;  %2813 = vmatprep.subr.bf16.mxu1 %v5050_v19  ;;  %v6070_v44 = vld [vmem:[#allocation23_spill] sm:$0xff] }
 0x339   :  { %2084 = vmatprep.subr.bf16.mxu0 %v4786_v45  ;;  %v6071_v45 = vld [vmem:[#allocation25_spill] sm:$0xff] }
 0x33b   :  { %2814 = vmatpush1.bf16.msra.mxu1 %v5053_v60 }
 0x33c   :  { %2085 = vmatpush1.bf16.msra.mxu0 %v4794_v46  ;;  %2815 = vmatprep.subr.bf16.mxu1 %v5056_v58  ;;  %v6072_v46 = vld [vmem:[#allocation26_spill] sm:$0xff] }
 0x33d   :  { %2086 = vmatprep.subr.bf16.mxu0 %v4798_v18  ;;  %v6073_v18 = vld [vmem:[#allocation49_spill] sm:$0xff] }
 0x33f   :  { %2816 = vmatpush1.bf16.msra.mxu1 %v5059_v16 }
 0x340   :  { %2087 = vmatpush1.bf16.msra.mxu0 %v4802_v49  ;;  %2817 = vmatprep.subr.bf16.mxu1 %v5062_v53 }
 0x341   :  { %2088 = vmatprep.subr.bf16.mxu0 %v6033_v31  ;;  %v6076_v31 = vld [vmem:[#allocation29_spill] sm:$0xff] }
 0x343   :  { %2818 = vmatpush1.bf16.msra.mxu1 %v5065_v27 }
 0x344   :  { %2089 = vmatpush1.bf16.msra.mxu0 %v6036_v48  ;;  %2819 = vmatprep.subr.bf16.mxu1 %v5068_v26  ;;  %v6079_v48 = vld [vmem:[#allocation31_spill] sm:$0xff] }
 0x345   :  { %2119 = vmatprep.subr.bf16.mxu0 %v6038_v55  ;;  %v6080_v55 = vld [vmem:[#allocation33_spill] sm:$0xff] }
 0x347   :  { %2107 = vmatmul.mubr.bf16.vlgmr.msra.gmra.mrb[8].mxu0 %v5040_v57  ;;  %2820 = vmatpush1.bf16.msra.mxu1 %v5151_v20 }
 0x348   :  { %2120 = vmatpush1.bf16.msra.mxu0 %v6042_v59  ;;  %2151 = vmatprep.mubr.bf16.mxu0 %v5967_v1  ;;  %v6083_v59 = vld [vmem:[#allocation36_spill] sm:$0xff] }
 0x349   :  { %2121 = vmatprep.subr.bf16.mxu0 %v6043_v21  ;;  %2821 = vmatprep.subr.bf16.mxu1 %v5154_v35  ;;  %v6084_v21 = vld [vmem:[#allocation37_spill] sm:$0xff] }
 0x34b   :  { %2822 = vmatpush1.bf16.msra.mxu1 %v5159_v50 }
 0x34c   :  { %2122 = vmatpush1.bf16.msra.mxu0 %v6046_v3  ;;  %2823 = vmatprep.subr.bf16.mxu1 %v5162_v54  ;;  %v6086_v3 = vld [vmem:[#allocation39_spill] sm:$0xff] }
 0x34d   :  { %2123 = vmatprep.subr.bf16.mxu0 %v6047_v7  ;;  %v6087_v7 = vld [vmem:[#allocation40_spill] sm:$0xff] }
 0x34f   :  { %2824 = vmatpush1.bf16.msra.mxu1 %v5167_v63 }
 0x350   :  { %2124 = vmatpush1.bf16.msra.mxu0 %v6050_v11  ;;  %2825 = vmatprep.subr.bf16.mxu1 %v5170_v56 }
 0x351   :  { %2125 = vmatprep.subr.bf16.mxu0 %v6051_v61  ;;  %v6082_v61 = vld [vmem:[#allocation35_spill] sm:$0xff] }
 0x353   :  { %2826 = vmatpush1.bf16.msra.mxu1 %v5175_v28 }
 0x354   :  { %2126 = vmatpush1.bf16.msra.mxu0 %v6054_v62  ;;  %2852 = vmatprep.subr.bf16.mxu1 %v5078_v25  ;;  %v6081_v62 = vld [vmem:[#allocation34_spill] sm:$0xff] }
 0x355   :  { %2127 = vmatprep.subr.bf16.mxu0 %v6055_v52  ;;  %v6078_v52 = vld [vmem:[#allocation30_spill] sm:$0xff] }
 0x356   :  { %2844 = vmatmul.mubr.bf16.vlgmr.msra.gmra.mrb[16].mxu1 %v5230_v0 }
 0x357   :  { %2853 = vmatpush1.bf16.msra.mxu1 %v5082_v24  ;;  %2884 = vmatprep.mubr.bf16.mxu1 %v5967_v1 }
 0x358   :  { %2128 = vmatpush1.bf16.msra.mxu0 %v6058_v32  ;;  %2854 = vmatprep.subr.bf16.mxu1 %v5086_v2  ;;  %v6077_v32 = vld [vmem:[#allocation56_spill] sm:$0xff] }
 0x359   :  { %2129 = vmatprep.subr.bf16.mxu0 %v6059_v30  ;;  %v6075_v30 = vld [vmem:[#allocation55_spill] sm:$0xff] }
 0x35b   :  { %v5321_v49 = vpop.f32.mrb[8].mxu1  ;;  %2855 = vmatpush1.bf16.msra.mxu1 %v5089_v4 }
 0x35c   :  { %2130 = vmatpush1.bf16.msra.mxu0 %v6062_v29  ;;  %v5324_v33 = vpop.f32.mrb[9].mxu1  ;;  %2856 = vmatprep.subr.bf16.mxu1 %v5092_v6  ;;  %v6074_v29 = vld [vmem:[#allocation54_spill] sm:$0xff] }
 0x35d   :  { %2131 = vmatprep.subr.bf16.mxu0 %v6063_v5  ;;  %v1948_v11 = vmax.f32 %v5321_v49, %v5324_v33  ;;  %v1943_v34 = vpop.f32.mrb[10].mxu1  ;;  %v4205_v5 = vld [vmem:[#allocation5 + $0x50] sm:$0xff]   ;;  %v5422_v33 = vld [vmem:[#allocation3 + $0x1a4] ss:$8 sps:$4 sm:$0xff]  }
 0x35e   :  { %v1944_v36 = vpop.f32.mrb[11].mxu1  ;;  %v6088_v34 = vld [vmem:[#allocation41_spill] sm:$0xff]  ;;  %v5413_v49 = vld [vmem:[#allocation3 + $0x194] ss:$8 sps:$4 sm:$0xff]   ;;  %6095 = vst [vmem:[#allocation47_spill] sm:$0xff] %v5422_v33 }
 0x35f   :  { %2857 = vmatpush1.bf16.msra.mxu1 %v5095_v8  ;;  %6093 = vst [vmem:[#allocation45_spill] sm:$0xff] %v5413_v49 }
 0x360   :  { %2132 = vmatpush1.bf16.msra.mxu0 %v6064_v13  ;;  %v4206_v13 = vld [vmem:[#allocation5 + $0x58] sm:$0xff]   ;;  %2858 = vmatprep.subr.bf16.mxu1 %v5098_v10 }
 0x361   :  { %2133 = vmatprep.subr.bf16.mxu0 %v6065_v23  ;;  %v4207_v23 = vld [vmem:[#allocation5 + $0x60] sm:$0xff]  }
 0x363   :  { %2859 = vmatpush1.bf16.msra.mxu1 %v5101_v12 }
 0x364   :  { %2134 = vmatpush1.bf16.msra.mxu0 %v6066_v47  ;;  %2860 = vmatprep.subr.bf16.mxu1 %v5104_v14  ;;  %v6085_v47 = vld [vmem:[#allocation38_spill] sm:$0xff] }
 0x365   :  { %3776 = vmatprep.subr.bf16.mxu0 %v6069_v38 }
 0x367   :  { %2152 = vmatmul.mubr.bf16.vlgmr.msra.gmra.mrb[8].mxu0 %v5230_v0  ;;  %2861 = vmatpush1.bf16.msra.mxu1 %v6070_v44 }
 0x368   :  { %3777 = vmatpush3.bf16.msra.mxu0 %v4203_v37  ;;  %3792 = vmatprep.mubr.msk.bf16.mxu0 %vm4385_vm2, %v6069_v38  ;;  %v6089_v37 = vld [vmem:[#allocation42_spill] sm:$0xff] }
 0x369   :  { %3778 = vmatprep.subr.bf16.mxu0 %v6069_v38  ;;  %2862 = vmatprep.subr.bf16.mxu1 %v6071_v45 }
 0x36b   :  { %2863 = vmatpush1.bf16.msra.mxu1 %v6072_v46 }
 0x36c   :  { %3779 = vmatpush3.bf16.msra.mxu0 %v4204_v39  ;;  %2864 = vmatprep.subr.bf16.mxu1 %v6073_v18 }
 0x36d   :  { %3780 = vmatprep.subr.bf16.mxu0 %v6069_v38 }
 0x36f   :  { %2865 = vmatpush1.bf16.msra.mxu1 %v6074_v29 }
 0x370   :  { %3781 = vmatpush3.bf16.msra.mxu0 %v4205_v5  ;;  %2866 = vmatprep.subr.bf16.mxu1 %v6075_v30 }
 0x371   :  { %3782 = vmatprep.subr.bf16.mxu0 %v6069_v38 }
 0x373   :  { %2867 = vmatpush1.bf16.msra.mxu1 %v6076_v31 }
 0x374   :  { %3783 = vmatpush3.bf16.msra.mxu0 %v4206_v13  ;;  %2893 = vmatprep.subr.bf16.mxu1 %v6077_v32 }
 0x375   :  { %3784 = vmatprep.subr.bf16.mxu0 %v6069_v38 }
 0x376   :  { %2885 = vmatmul.mubr.bf16.vlgmr.msra.gmra.mrb[16].mxu1 %v5040_v57 }
 0x377   :  { %2894 = vmatpush1.bf16.msra.mxu1 %v6078_v52  ;;  %2925 = vmatprep.mubr.bf16.mxu1 %v5967_v1 }
 0x378   :  { %3785 = vmatpush3.bf16.msra.mxu0 %v4207_v23  ;;  %2895 = vmatprep.subr.bf16.mxu1 %v6079_v48 }
 0x379   :  { %3786 = vmatprep.subr.bf16.mxu0 %v6069_v38 }
 0x37b   :  { %2896 = vmatpush1.bf16.msra.mxu1 %v6080_v55 }
 0x37c   :  { %3787 = vmatpush3.bf16.msra.mxu0 %v4208_v40  ;;  %2897 = vmatprep.subr.bf16.mxu1 %v6081_v62 }
 0x37d   :  { %3788 = vmatprep.subr.bf16.mxu0 %v6069_v38 }
 0x37f   :  { %2898 = vmatpush1.bf16.msra.mxu1 %v6082_v61 }
 0x380   :  { %3789 = vmatpush3.bf16.msra.mxu0 %v4209_v41  ;;  %2899 = vmatprep.subr.bf16.mxu1 %v6083_v59  ;;  %v6090_v41 = vld [vmem:[#allocation27_spill] sm:$0xff] }
 0x381   :  { %3790 = vmatprep.subr.bf16.mxu0 %v6069_v38 }
 0x383   :  { %2900 = vmatpush1.bf16.msra.mxu1 %v6084_v21 }
 0x384   :  { %3791 = vmatpush3.bf16.msra.mxu0 %v4210_v42  ;;  %2901 = vmatprep.subr.bf16.mxu1 %v6085_v47 }
 0x385   :  { %2487 = vmatprep.subr.bf16.mxu0 %v6068_v17  ;;  %v5402_v17 = vld [vmem:[#allocation3 + $0x170] ss:$8 sps:$4 sm:$0xff]  }
 0x387   :  { %2902 = vmatpush1.bf16.msra.mxu1 %v6086_v3 }
 0x388   :  { %2903 = vmatprep.subr.bf16.mxu1 %v6087_v7 }
 0x38b   :  { %2904 = vmatpush1.bf16.msra.mxu1 %v6088_v34 }
 0x38c   :  { %2905 = vmatprep.subr.bf16.mxu1 %v6089_v37  ;;  %v5405_v37 = vld [vmem:[#allocation3 + $0x184] ss:$8 sps:$4 sm:$0xff]  }
 0x38d   :  { %6091 = vst [vmem:[#allocation43_spill] sm:$0xff] %v5405_v37 }
 0x38f   :  { %2906 = vmatpush1.bf16.msra.mxu1 %v5279_v9 }
 0x390   :  { %2907 = vmatprep.subr.bf16.mxu1 %v5282_v51 }
 0x393   :  { %2908 = vmatpush1.bf16.msra.mxu1 %v5402_v17 }
 0x394   :  { %2936 = vmatprep.subr.bf16.mxu1 %v5405_v37 }
 0x396   :  { %2926 = vmatmul.mubr.bf16.vlgmr.msra.gmra.mrb[16].mxu1 %v5344_v43 }
 0x397   :  { %2968 = vmatprep.mubr.bf16.mxu1 %v5967_v1 }
 0x43a   :  { %v2153_v36 = vpop.f32.mrb[8].mxu0 }
 0x43b   :  { %v2155_v39 = vpop.f32.mrb[9].mxu0 }
 0x43c   :  { %v2162_v5 = vmax.f32 %v2153_v36, %v2155_v39  ;;  %v2157_v13 = vpop.f32.mrb[10].mxu0  ;;  %v5409_v39 = vld [vmem:[#allocation3 + $0x180] ss:$8 sps:$4 sm:$0xff]  }
 0x43d   :  { %v2158_v23 = vpop.f32.mrb[11].mxu0  ;;  %6092 = vst [vmem:[#allocation44_spill] sm:$0xff] %v5409_v39  ;;  %2937 = vmatpush1.bf16.msra.mxu1 %v5409_v39  ;;  %v5435_v13 = vld [vmem:[#allocation3 + $0x1b0] ss:$8 sps:$4 sm:$0xff]  }
 0x43e   :  { %v2163_v40 = vmax.f32 %v1948_v11, %v2162_v5  ;;  %2938 = vmatprep.subr.bf16.mxu1 %v5413_v49  ;;  %v5427_v11 = vld [vmem:[#allocation3 + $0x1a0] ss:$8 sps:$4 sm:$0xff]   ;;  %v5430_v5 = vld [vmem:[#allocation3 + $0x1b4] ss:$8 sps:$4 sm:$0xff]   ;;  %v5438_v23 = vld [vmem:[#allocation3 + $0x1c4] ss:$8 sps:$4 sm:$0xff]  }
 0x440   :  { %v2164_v42 = vadd.f32 %v6090_v41, %v2163_v40  ;;  %v5443_v40 = vld [vmem:[#allocation3 + $0x1c0] ss:$8 sps:$4 sm:$0xff]  }
 0x442   :  { %v2165_v0 = vmax.f32 %v2164_v42, 0.0  ;;  %v5446_v42 = vld [vmem:[#allocation3 + $0x1d4] ss:$8 sps:$4 sm:$0xff]  }
 0x444   :  { %v2166_v36 = vpack.c.bf16 %v2165_v0, %v2165_v0  ;;  %v5419_v0 = vld [vmem:[#allocation3 + $0x190] ss:$8 sps:$4 sm:$0xff]  }
 0x445   :  { %6094 = vst [vmem:[#allocation46_spill] sm:$0xff] %v5419_v0  ;;  %2939 = vmatpush1.bf16.msra.mxu1 %v5419_v0 }
 0x446   :  { %3793 = vmatmul.mubr.bf16.vlgmr.msra.gmra.mrb[4].mxu0 %v2166_v36  ;;  %2940 = vmatprep.subr.bf16.mxu1 %v5422_v33  ;;  %v5451_v36 = vld [vmem:[#allocation3 + $0x1d0] ss:$8 sps:$4 sm:$0xff]  }
 0x447   :  { %2488 = vmatpush1.bf16.msra.mxu0 %v5046_v15  ;;  %2519 = vmatprep.mubr.bf16.mxu0 %v5967_v1 }
 0x448   :  { %2489 = vmatprep.subr.bf16.mxu0 %v5050_v19 }
 0x449   :  { %2941 = vmatpush1.bf16.msra.mxu1 %v5427_v11 }
 0x44a   :  { %2942 = vmatprep.subr.bf16.mxu1 %v5430_v5 }
 0x44b   :  { %2490 = vmatpush1.bf16.msra.mxu0 %v5053_v60 }
 0x44c   :  { %2491 = vmatprep.subr.bf16.mxu0 %v5056_v58 }
 0x44d   :  { %2943 = vmatpush1.bf16.msra.mxu1 %v5435_v13 }
 0x44e   :  { %2944 = vmatprep.subr.bf16.mxu1 %v5438_v23 }
 0x44f   :  { %2492 = vmatpush1.bf16.msra.mxu0 %v5059_v16 }
 0x450   :  { %2493 = vmatprep.subr.bf16.mxu0 %v5062_v53  ;;  %v5454_v53 = vld [vmem:[#allocation3 + $0x1e4] ss:$8 sps:$4 sm:$0xff]  }
 0x451   :  { %2945 = vmatpush1.bf16.msra.mxu1 %v5443_v40 }
 0x452   :  { %2946 = vmatprep.subr.bf16.mxu1 %v5446_v42 }
 0x453   :  { %2494 = vmatpush1.bf16.msra.mxu0 %v5065_v27  ;;  %v5462_v27 = vld [vmem:[#allocation3 + $0x1f4] ss:$8 sps:$4 sm:$0xff]  }
 0x454   :  { %2495 = vmatprep.subr.bf16.mxu0 %v5068_v26  ;;  %v5459_v26 = vld [vmem:[#allocation3 + $0x1e0] ss:$8 sps:$4 sm:$0xff]  }
 0x455   :  { %2947 = vmatpush1.bf16.msra.mxu1 %v5451_v36 }
 0x456   :  { %2948 = vmatprep.subr.bf16.mxu1 %v5454_v53 }
 0x457   :  { %2496 = vmatpush1.bf16.msra.mxu0 %v5151_v20  ;;  %v5470_v20 = vld [vmem:[#allocation3 + $0x204] ss:$8 sps:$4 sm:$0xff]  }
 0x458   :  { %2497 = vmatprep.subr.bf16.mxu0 %v5154_v35  ;;  %v5467_v35 = vld [vmem:[#allocation3 + $0x1f0] ss:$8 sps:$4 sm:$0xff]  }
 0x459   :  { %2949 = vmatpush1.bf16.msra.mxu1 %v5459_v26 }
 0x45a   :  { %2950 = vmatprep.subr.bf16.mxu1 %v5462_v27 }
 0x45b   :  { %2498 = vmatpush1.bf16.msra.mxu0 %v5159_v50  ;;  %v5478_v50 = vld [vmem:[#allocation3 + $0x200] ss:$8 sps:$4 sm:$0xff]  }
 0x45c   :  { %2499 = vmatprep.subr.bf16.mxu0 %v5162_v54  ;;  %v5474_v54 = vld [vmem:[#allocation2 + $0x24] sm:$0xf] }
 0x45d   :  { %2951 = vmatpush1.bf16.msra.mxu1 %v5467_v35 }
 0x45e   :  { %2981 = vmatprep.subr.bf16.mxu1 %v5470_v20 }
 0x45f   :  { %2500 = vmatpush1.bf16.msra.mxu0 %v5167_v63  ;;  %v5508_v63 = vld [vmem:[#allocation3 + $0x244] ss:$8 sps:$4 sm:$0xff]  }
 0x460   :  { %2501 = vmatprep.subr.bf16.mxu0 %v5170_v56  ;;  %2969 = vmatmul.mubr.bf16.vlgmr.msra.gmra.mrb[16].mxu1 %v5474_v54  ;;  %v5483_v56 = vld [vmem:[#allocation3 + $0x214] ss:$8 sps:$4 sm:$0xff]   ;;  %6096 = vst [vmem:[#allocation48_spill] sm:$0xff] %v5508_v63 }
 0x461   :  { %2982 = vmatpush1.bf16.msra.mxu1 %v5478_v50  ;;  %3013 = vmatprep.mubr.bf16.mxu1 %v5967_v1 }
 0x462   :  { %2983 = vmatprep.subr.bf16.mxu1 %v5483_v56 }
 0x463   :  { %2502 = vmatpush1.bf16.msra.mxu0 %v5175_v28  ;;  %v5492_v28 = vld [vmem:[#allocation3 + $0x224] ss:$8 sps:$4 sm:$0xff]  }
 0x464   :  { %2528 = vmatprep.subr.bf16.mxu0 %v5078_v25  ;;  %v5489_v25 = vld [vmem:[#allocation3 + $0x210] ss:$8 sps:$4 sm:$0xff]  }
 0x465   :  { %2984 = vmatpush1.bf16.msra.mxu1 %v5489_v25 }
 0x466   :  { %2520 = vmatmul.mubr.bf16.vlgmr.msra.gmra.mrb[12].mxu0 %v5040_v57  ;;  %2985 = vmatprep.subr.bf16.mxu1 %v5492_v28  ;;  %v5497_v57 = vld [vmem:[#allocation3 + $0x220] ss:$8 sps:$4 sm:$0xff]  }
 0x467   :  { %2529 = vmatpush1.bf16.msra.mxu0 %v5082_v24  ;;  %2560 = vmatprep.mubr.bf16.mxu0 %v5967_v1  ;;  %v5500_v24 = vld [vmem:[#allocation3 + $0x234] ss:$8 sps:$4 sm:$0xff]  }
 0x468   :  { %2530 = vmatprep.subr.bf16.mxu0 %v5086_v2  ;;  %v5505_v2 = vld [vmem:[#allocation3 + $0x230] ss:$8 sps:$4 sm:$0xff]  }
 0x469   :  { %2986 = vmatpush1.bf16.msra.mxu1 %v5497_v57 }
 0x46a   :  { %2987 = vmatprep.subr.bf16.mxu1 %v5500_v24 }
 0x46b   :  { %2531 = vmatpush1.bf16.msra.mxu0 %v5089_v4  ;;  %v5516_v4 = vld [vmem:[#allocation3 + $0x254] ss:$8 sps:$4 sm:$0xff]  }
 0x46c   :  { %2532 = vmatprep.subr.bf16.mxu0 %v5092_v6  ;;  %v5513_v6 = vld [vmem:[#allocation3 + $0x240] ss:$8 sps:$4 sm:$0xff]   ;;  %6098 = vst [vmem:[#allocation26_spill] sm:$0xff] %v5516_v4 }
 0x46d   :  { %2988 = vmatpush1.bf16.msra.mxu1 %v5505_v2  ;;  %6097 = vst [vmem:[#allocation23_spill] sm:$0xff] %v5513_v6 }
 0x46e   :  { %2989 = vmatprep.subr.bf16.mxu1 %v5508_v63 }
 0x46f   :  { %2533 = vmatpush1.bf16.msra.mxu0 %v5095_v8  ;;  %v5524_v8 = vld [vmem:[#allocation3 + $0x264] ss:$8 sps:$4 sm:$0xff]  }
 0x470   :  { %2534 = vmatprep.subr.bf16.mxu0 %v5098_v10  ;;  %v5521_v10 = vld [vmem:[#allocation3 + $0x250] ss:$8 sps:$4 sm:$0xff]   ;;  %6100 = vst [vmem:[#allocation54_spill] sm:$0xff] %v5524_v8 }
 0x471   :  { %2990 = vmatpush1.bf16.msra.mxu1 %v5513_v6  ;;  %6099 = vst [vmem:[#allocation49_spill] sm:$0xff] %v5521_v10 }
 0x472   :  { %2991 = vmatprep.subr.bf16.mxu1 %v5516_v4 }
 0x473   :  { %2535 = vmatpush1.bf16.msra.mxu0 %v5101_v12  ;;  %v5532_v12 = vld [vmem:[#allocation3 + $0x274] ss:$8 sps:$4 sm:$0xff]  }
 0x474   :  { %2536 = vmatprep.subr.bf16.mxu0 %v5104_v14  ;;  %v5529_v14 = vld [vmem:[#allocation3 + $0x260] ss:$8 sps:$4 sm:$0xff]   ;;  %6102 = vst [vmem:[#allocation29_spill] sm:$0xff] %v5532_v12 }
 0x475   :  { %2992 = vmatpush1.bf16.msra.mxu1 %v5521_v10  ;;  %6101 = vst [vmem:[#allocation55_spill] sm:$0xff] %v5529_v14 }
 0x476   :  { %2993 = vmatprep.subr.bf16.mxu1 %v5524_v8 }
 0x477   :  { %2537 = vmatpush1.bf16.msra.mxu0 %v6070_v44 }
 0x478   :  { %2538 = vmatprep.subr.bf16.mxu0 %v6071_v45  ;;  %v5537_v45 = vld [vmem:[#allocation3 + $0x270] ss:$8 sps:$4 sm:$0xff]  }
 0x479   :  { %2994 = vmatpush1.bf16.msra.mxu1 %v5529_v14  ;;  %6103 = vst [vmem:[#allocation56_spill] sm:$0xff] %v5537_v45 }
 0x47a   :  { %2995 = vmatprep.subr.bf16.mxu1 %v5532_v12 }
 0x47b   :  { %2539 = vmatpush1.bf16.msra.mxu0 %v6072_v46 }
 0x47c   :  { %2540 = vmatprep.subr.bf16.mxu0 %v6073_v18 }
 0x47d   :  { %2996 = vmatpush1.bf16.msra.mxu1 %v5537_v45 }
 0x47e   :  { %3836 = vmatprep.subr.bf16.mxu1 %v6069_v38 }
 0x47f   :  { %2541 = vmatpush1.bf16.msra.mxu0 %v6074_v29 }
 0x480   :  { %2542 = vmatprep.subr.bf16.mxu0 %v6075_v30 }
 0x483   :  { %2543 = vmatpush1.bf16.msra.mxu0 %v6076_v31 }
 0x484   :  { %2569 = vmatprep.subr.bf16.mxu0 %v6077_v32 }
 0x486   :  { %2561 = vmatmul.mubr.bf16.vlgmr.msra.gmra.mrb[12].mxu0 %v6067_v22  ;;  %v6104_v22 = vld [vmem:[#allocation42_spill] sm:$0xff] }
 0x487   :  { %2570 = vmatpush1.bf16.msra.mxu0 %v6078_v52  ;;  %2601 = vmatprep.mubr.bf16.mxu0 %v5967_v1 }
 0x488   :  { %2571 = vmatprep.subr.bf16.mxu0 %v6079_v48 }
 0x48b   :  { %2572 = vmatpush1.bf16.msra.mxu0 %v6080_v55 }
 0x48c   :  { %2573 = vmatprep.subr.bf16.mxu0 %v6081_v62 }
 0x48f   :  { %2574 = vmatpush1.bf16.msra.mxu0 %v6082_v61 }
 0x490   :  { %2575 = vmatprep.subr.bf16.mxu0 %v6083_v59  ;;  %v6105_v59 = vld [vmem:[#allocation32_spill] sm:$0xff] }
 0x493   :  { %2576 = vmatpush1.bf16.msra.mxu0 %v6084_v21 }
 0x494   :  { %2577 = vmatprep.subr.bf16.mxu0 %v6085_v47 }
 0x497   :  { %2578 = vmatpush1.bf16.msra.mxu0 %v6086_v3 }
 0x498   :  { %2579 = vmatprep.subr.bf16.mxu0 %v6087_v7 }
 0x49b   :  { %2580 = vmatpush1.bf16.msra.mxu0 %v6088_v34 }
 0x49c   :  { %2581 = vmatprep.subr.bf16.mxu0 %v6104_v22 }
 0x49f   :  { %2582 = vmatpush1.bf16.msra.mxu0 %v5279_v9 }
 0x4a0   :  { %2583 = vmatprep.subr.bf16.mxu0 %v5282_v51 }
 0x4a3   :  { %2584 = vmatpush1.bf16.msra.mxu0 %v5402_v17 }
 0x4a4   :  { %2612 = vmatprep.subr.bf16.mxu0 %v5405_v37  ;;  %v5572_v37 = vpop.f32.mrb[12].mxu1 }
 0x4a6   :  { %2602 = vmatmul.mubr.bf16.vlgmr.msra.gmra.mrb[12].mxu0 %v6105_v59 }
 0x4a7   :  { %2613 = vmatpush1.bf16.msra.mxu0 %v5409_v39  ;;  %2644 = vmatprep.mubr.bf16.mxu0 %v5967_v1  ;;  %v5575_v39 = vpop.f32.mrb[13].mxu1 }
 0x4a8   :  { %2614 = vmatprep.subr.bf16.mxu0 %v5413_v49 }
 0x4ab   :  { %2615 = vmatpush1.bf16.msra.mxu0 %v5419_v0  ;;  %v2486_v0 = vmax.f32 %v5572_v37, %v5575_v39  ;;  %v4211_v37 = vld [vmem:[#allocation5 + $0x80] sm:$0xff]   ;;  %v4212_v39 = vld [vmem:[#allocation5 + $0x88] sm:$0xff]  }
 0x4ac   :  { %2616 = vmatprep.subr.bf16.mxu0 %v5422_v33  ;;  %v2481_v33 = vpop.f32.mrb[14].mxu1 }
 0x4ad   :  { %v2482_v49 = vpop.f32.mrb[15].mxu1  ;;  %v4214_v33 = vld [vmem:[#allocation5 + $0x98] sm:$0xff]  }
 0x4ae   :  { %v4213_v49 = vld [vmem:[#allocation5 + $0x90] sm:$0xff]  }
 0x4af   :  { %2617 = vmatpush1.bf16.msra.mxu0 %v5427_v11 }
 0x4b0   :  { %2618 = vmatprep.subr.bf16.mxu0 %v5430_v5 }
 0x4b3   :  { %2619 = vmatpush1.bf16.msra.mxu0 %v5435_v13 }
 0x4b4   :  { %2620 = vmatprep.subr.bf16.mxu0 %v5438_v23 }
 0x4b7   :  { %2621 = vmatpush1.bf16.msra.mxu0 %v5443_v40 }
 0x4b8   :  { %2622 = vmatprep.subr.bf16.mxu0 %v5446_v42 }
 0x4bb   :  { %2623 = vmatpush1.bf16.msra.mxu0 %v5451_v36 }
 0x4bc   :  { %2624 = vmatprep.subr.bf16.mxu0 %v5454_v53 }
 0x4bf   :  { %2625 = vmatpush1.bf16.msra.mxu0 %v5459_v26 }
 0x4c0   :  { %2626 = vmatprep.subr.bf16.mxu0 %v5462_v27 }
 0x4c3   :  { %2627 = vmatpush1.bf16.msra.mxu0 %v5467_v35 }
 0x4c4   :  { %2657 = vmatprep.subr.bf16.mxu0 %v5470_v20 }
 0x4c6   :  { %2645 = vmatmul.mubr.bf16.vlgmr.msra.gmra.mrb[12].mxu0 %v5344_v43 }
 0x4c7   :  { %2658 = vmatpush1.bf16.msra.mxu0 %v5478_v50  ;;  %2689 = vmatprep.mubr.bf16.mxu0 %v5967_v1 }
 0x4c8   :  { %2659 = vmatprep.subr.bf16.mxu0 %v5483_v56 }
 0x4cb   :  { %2660 = vmatpush1.bf16.msra.mxu0 %v5489_v25 }
 0x4cc   :  { %2661 = vmatprep.subr.bf16.mxu0 %v5492_v28 }
 0x4cf   :  { %2662 = vmatpush1.bf16.msra.mxu0 %v5497_v57 }
 0x4d0   :  { %2663 = vmatprep.subr.bf16.mxu0 %v5500_v24 }
 0x4d3   :  { %2664 = vmatpush1.bf16.msra.mxu0 %v5505_v2 }
 0x4d4   :  { %2665 = vmatprep.subr.bf16.mxu0 %v5508_v63 }
 0x4d7   :  { %2666 = vmatpush1.bf16.msra.mxu0 %v5513_v6 }
 0x4d8   :  { %2667 = vmatprep.subr.bf16.mxu0 %v5516_v4 }
 0x4db   :  { %2668 = vmatpush1.bf16.msra.mxu0 %v5521_v10 }
 0x4dc   :  { %2669 = vmatprep.subr.bf16.mxu0 %v5524_v8 }
 0x4df   :  { %2670 = vmatpush1.bf16.msra.mxu0 %v5529_v14  ;;  %v5614_v14 = vld [vmem:[#allocation2 + $0x28] sm:$0xf] }
 0x4e0   :  { %2671 = vmatprep.subr.bf16.mxu0 %v5532_v12  ;;  %v4217_v12 = vld [vmem:[#allocation5 + $0xb0] sm:$0xff]   ;;  %3014 = vmatmul.mubr.bf16.vlgmr.msra.gmra.mrb[16].mxu1 %v5614_v14 }
 0x4e1   :  { %3852 = vmatprep.mubr.msk.bf16.mxu1 %vm4385_vm2, %v6069_v38 }
 0x4e3   :  { %2672 = vmatpush1.bf16.msra.mxu0 %v5537_v45  ;;  %v4215_v45 = vld [vmem:[#allocation5 + $0xa0] sm:$0xff]  }
 0x4e4   :  { %3796 = vmatprep.subr.bf16.mxu0 %v6069_v38 }
 0x4e6   :  { %2690 = vmatmul.mubr.bf16.vlgmr.msra.gmra.mrb[12].mxu0 %v5474_v54 }
 0x4e7   :  { %3797 = vmatpush3.bf16.msra.mxu0 %v4211_v37  ;;  %3812 = vmatprep.mubr.msk.bf16.mxu0 %vm4385_vm2, %v6069_v38  ;;  %v4216_v37 = vld [vmem:[#allocation5 + $0xa8] sm:$0xff]  }
 0x4e8   :  { %3798 = vmatprep.subr.bf16.mxu0 %v6069_v38 }
 0x4eb   :  { %3799 = vmatpush3.bf16.msra.mxu0 %v4212_v39  ;;  %v4218_v39 = vld [vmem:[#allocation5 + $0xb8] sm:$0xff]  }
 0x4ec   :  { %3800 = vmatprep.subr.bf16.mxu0 %v6069_v38 }
 0x4ef   :  { %3801 = vmatpush3.bf16.msra.mxu0 %v4213_v49  ;;  %v6106_v49 = vld [vmem:[#allocation9_spill] sm:$0xff] }
 0x4f0   :  { %3802 = vmatprep.subr.bf16.mxu0 %v6069_v38 }
 0x4f3   :  { %3803 = vmatpush3.bf16.msra.mxu0 %v4214_v33 }
 0x4f4   :  { %3804 = vmatprep.subr.bf16.mxu0 %v6069_v38 }
 0x4f7   :  { %3805 = vmatpush3.bf16.msra.mxu0 %v4215_v45 }
 0x4f8   :  { %3806 = vmatprep.subr.bf16.mxu0 %v6069_v38 }
 0x4fb   :  { %3807 = vmatpush3.bf16.msra.mxu0 %v4216_v37 }
 0x4fc   :  { %3808 = vmatprep.subr.bf16.mxu0 %v6069_v38 }
 0x4ff   :  { %3809 = vmatpush3.bf16.msra.mxu0 %v4217_v12 }
 0x500   :  { %3810 = vmatprep.subr.bf16.mxu0 %v6069_v38 }
 0x503   :  { %3811 = vmatpush3.bf16.msra.mxu0 %v4218_v39  ;;  %v6119_v39 = vld [vmem:[#allocation15_spill] sm:$0xff] }
 0x504   :  { %3025 = vmatprep.subr.bf16.mxu0 %v6106_v49  ;;  %v6120_v49 = vld [vmem:[#allocation16_spill] sm:$0xff] }
 0x5b9   :  { %v2691_v45 = vpop.f32.mrb[12].mxu0 }
 0x5ba   :  { %v2693_v33 = vpop.f32.mrb[13].mxu0 }
 0x5bb   :  { %v2700_v37 = vmax.f32 %v2691_v45, %v2693_v33  ;;  %v2695_v8 = vpop.f32.mrb[14].mxu0  ;;  %v6121_v45 = vld [vmem:[#allocation17_spill] sm:$0xff]  ;;  %v6122_v33 = vld [vmem:[#allocation28_spill] sm:$0xff] }
 0x5bc   :  { %v2696_v10 = vpop.f32.mrb[15].mxu0  ;;  %v6107_v8 = vld [vmem:[#allocation10_spill] sm:$0xff] }
 0x5bd   :  { %v2701_v4 = vmax.f32 %v2486_v0, %v2700_v37  ;;  %v6108_v10 = vld [vmem:[#allocation11_spill] sm:$0xff]  ;;  %v6118_v0 = vld [vmem:[#allocation14_spill] sm:$0xff] }
 0x5be   :  { %v6123_v37 = vld [vmem:[#allocation18_spill] sm:$0xff] }
 0x5bf   :  { %v2702_v12 = vadd.f32 %v6090_v41, %v2701_v4  ;;  %v6109_v4 = vld [vmem:[#allocation12_spill] sm:$0xff]  ;;  %v6113_v41 = vld [vmem:[#allocation50_spill] sm:$0xff] }
 0x5c1   :  { %v2703_v6 = vmax.f32 %v2702_v12, 0.0  ;;  %v6124_v12 = vld [vmem:[#allocation21_spill] sm:$0xff] }
 0x5c3   :  { %v2704_v63 = vpack.c.bf16 %v2703_v6, %v2703_v6  ;;  %v6110_v6 = vld [vmem:[#allocation19_spill] sm:$0xff] }
 0x5c5   :  { %3813 = vmatmul.mubr.bf16.vlgmr.msra.gmra.mrb[4].mxu0 %v2704_v63  ;;  %v6111_v63 = vld [vmem:[#allocation20_spill] sm:$0xff] }
 0x5c6   :  { %3026 = vmatpush1.bf16.msra.mxu0 %v5046_v15  ;;  %3057 = vmatprep.mubr.bf16.mxu0 %v5967_v1  ;;  %v6112_v15 = vld [vmem:[#allocation24_spill] sm:$0xff] }
 0x5c7   :  { %3027 = vmatprep.subr.bf16.mxu0 %v5050_v19  ;;  %v6114_v19 = vld [vmem:[#allocation51_spill] sm:$0xff] }
 0x5ca   :  { %3028 = vmatpush1.bf16.msra.mxu0 %v5053_v60  ;;  %v6115_v60 = vld [vmem:[#allocation52_spill] sm:$0xff] }
 0x5cb   :  { %3029 = vmatprep.subr.bf16.mxu0 %v5056_v58  ;;  %v6116_v58 = vld [vmem:[#allocation53_spill] sm:$0xff] }
 0x5ce   :  { %3030 = vmatpush1.bf16.msra.mxu0 %v5059_v16  ;;  %v6117_v16 = vld [vmem:[#allocation13_spill] sm:$0xff] }
 0x5cf   :  { %3031 = vmatprep.subr.bf16.mxu0 %v6107_v8  ;;  %v6125_v8 = vld [vmem:[#allocation22_spill] sm:$0xff] }
 0x5d2   :  { %3032 = vmatpush1.bf16.msra.mxu0 %v6108_v10 }
 0x5d3   :  { %3033 = vmatprep.subr.bf16.mxu0 %v6109_v4  ;;  %v3582_v4 = vld [vmem:[%s5776_s6] ss:$0 sm:$0xff] }
 0x5d6   :  { %3034 = vmatpush1.bf16.msra.mxu0 %v6110_v6 }
 0x5d7   :  { %3035 = vmatprep.subr.bf16.mxu0 %v6111_v63 }
 0x5da   :  { %3036 = vmatpush1.bf16.msra.mxu0 %v6112_v15 }
 0x5db   :  { %3037 = vmatprep.subr.bf16.mxu0 %v6113_v41 }
 0x5de   :  { %3038 = vmatpush1.bf16.msra.mxu0 %v6114_v19 }
 0x5df   :  { %3039 = vmatprep.subr.bf16.mxu0 %v6115_v60 }
 0x5e2   :  { %3040 = vmatpush1.bf16.msra.mxu0 %v6116_v58  ;;  %v3696_v58 = vld [vmem:[%s5778_s8] ss:$0 sm:$0xff] }
 0x5e3   :  { %3066 = vmatprep.subr.bf16.mxu0 %v6117_v16 }
 0x5e5   :  { %3058 = vmatmul.mubr.bf16.vlgmr.msra.gmra.mrb[16].mxu0 %v5344_v43  ;;  %v6126_v43 = vld [vmem:[#allocation25_spill] sm:$0xff] }
 0x5e6   :  { %3067 = vmatpush1.bf16.msra.mxu0 %v6118_v0  ;;  %3098 = vmatprep.mubr.bf16.mxu0 %v5967_v1 }
 0x5e7   :  { %3068 = vmatprep.subr.bf16.mxu0 %v6119_v39 }
 0x5ea   :  { %3069 = vmatpush1.bf16.msra.mxu0 %v6120_v49 }
 0x5eb   :  { %3070 = vmatprep.subr.bf16.mxu0 %v6121_v45 }
 0x5ee   :  { %3071 = vmatpush1.bf16.msra.mxu0 %v6122_v33 }
 0x5ef   :  { %3072 = vmatprep.subr.bf16.mxu0 %v6123_v37 }
 0x5f2   :  { %3073 = vmatpush1.bf16.msra.mxu0 %v6124_v12 }
 0x5f3   :  { %3074 = vmatprep.subr.bf16.mxu0 %v6125_v8 }
 0x5f6   :  { %3075 = vmatpush1.bf16.msra.mxu0 %v6070_v44  ;;  %v6127_v44 = vld [vmem:[#allocation36_spill] sm:$0xff] }
 0x5f7   :  { %3076 = vmatprep.subr.bf16.mxu0 %v6126_v43 }
 0x5fa   :  { %3077 = vmatpush1.bf16.msra.mxu0 %v6072_v46  ;;  %v6128_v46 = vld [vmem:[#allocation43_spill] sm:$0xff] }
 0x5fb   :  { %3078 = vmatprep.subr.bf16.mxu0 %v6073_v18  ;;  %v6129_v18 = vld [vmem:[#allocation44_spill] sm:$0xff] }
 0x5fe   :  { %3079 = vmatpush1.bf16.msra.mxu0 %v6074_v29  ;;  %v6130_v29 = vld [vmem:[#allocation45_spill] sm:$0xff] }
 0x5ff   :  { %3080 = vmatprep.subr.bf16.mxu0 %v6075_v30  ;;  %v6131_v30 = vld [vmem:[#allocation46_spill] sm:$0xff] }
 0x602   :  { %3081 = vmatpush1.bf16.msra.mxu0 %v6076_v31  ;;  %v6132_v31 = vld [vmem:[#allocation47_spill] sm:$0xff] }
 0x603   :  { %3107 = vmatprep.subr.bf16.mxu0 %v6077_v32 }
 0x605   :  { %3099 = vmatmul.mubr.bf16.vlgmr.msra.gmra.mrb[16].mxu0 %v6105_v59  ;;  %v4228_v59 = vld [vmem:[%s5777_s7 + $0x8] sm:$0xff]  }
 0x606   :  { %3108 = vmatpush1.bf16.msra.mxu0 %v6078_v52  ;;  %3139 = vmatprep.mubr.bf16.mxu0 %v5967_v1  ;;  %v4223_v52 = vld [vmem:[#allocation5 + $0xe0] sm:$0xff]  }
 0x607   :  { %3109 = vmatprep.subr.bf16.mxu0 %v6079_v48  ;;  %v4224_v48 = vld [vmem:[#allocation5 + $0xe8] sm:$0xff]  }
 0x60a   :  { %3110 = vmatpush1.bf16.msra.mxu0 %v6080_v55  ;;  %v4225_v55 = vld [vmem:[#allocation5 + $0xf0] sm:$0xff]  }
 0x60b   :  { %3111 = vmatprep.subr.bf16.mxu0 %v6081_v62  ;;  %v4226_v62 = vld [vmem:[#allocation5 + $0xf8] sm:$0xff]  }
 0x60e   :  { %3112 = vmatpush1.bf16.msra.mxu0 %v6082_v61  ;;  %v4227_v61 = vld [vmem:[%s5777_s7] sm:$0xff]  }
 0x60f   :  { %3113 = vmatprep.subr.bf16.mxu0 %v6127_v44  ;;  %3837 = vmatpush3.bf16.msra.mxu1 %v4227_v61 }
 0x610   :  { %3838 = vmatprep.subr.bf16.mxu1 %v6069_v38 }
 0x612   :  { %3114 = vmatpush1.bf16.msra.mxu0 %v6084_v21  ;;  %v4229_v21 = vld [vmem:[%s5777_s7 + $0x10] sm:$0xff]  }
 0x613   :  { %3115 = vmatprep.subr.bf16.mxu0 %v6085_v47  ;;  %3839 = vmatpush3.bf16.msra.mxu1 %v4228_v59  ;;  %v4230_v47 = vld [vmem:[%s5777_s7 + $0x18] sm:$0xff]  }
 0x614   :  { %3840 = vmatprep.subr.bf16.mxu1 %v6069_v38 }
 0x616   :  { %3116 = vmatpush1.bf16.msra.mxu0 %v6086_v3  ;;  %v4231_v3 = vld [vmem:[%s5777_s7 + $0x20] sm:$0xff]  }
 0x617   :  { %3117 = vmatprep.subr.bf16.mxu0 %v6087_v7  ;;  %3841 = vmatpush3.bf16.msra.mxu1 %v4229_v21  ;;  %v4232_v7 = vld [vmem:[%s5777_s7 + $0x28] sm:$0xff]  }
 0x618   :  { %3842 = vmatprep.subr.bf16.mxu1 %v6069_v38 }
 0x61a   :  { %3118 = vmatpush1.bf16.msra.mxu0 %v6088_v34  ;;  %v4233_v34 = vld [vmem:[%s5777_s7 + $0x30] sm:$0xff]  }
 0x61b   :  { %3119 = vmatprep.subr.bf16.mxu0 %v6104_v22  ;;  %3843 = vmatpush3.bf16.msra.mxu1 %v4230_v47 }
 0x61c   :  { %3844 = vmatprep.subr.bf16.mxu1 %v6069_v38 }
 0x61e   :  { %3120 = vmatpush1.bf16.msra.mxu0 %v5279_v9 }
 0x61f   :  { %3121 = vmatprep.subr.bf16.mxu0 %v5282_v51  ;;  %3845 = vmatpush3.bf16.msra.mxu1 %v4231_v3 }
 0x620   :  { %3846 = vmatprep.subr.bf16.mxu1 %v6069_v38 }
 0x622   :  { %3122 = vmatpush1.bf16.msra.mxu0 %v5402_v17  ;;  %v5684_v17 = vpop.f32.mrb[16].mxu1 }
 0x623   :  { %3150 = vmatprep.subr.bf16.mxu0 %v6128_v46  ;;  %3847 = vmatpush3.bf16.msra.mxu1 %v4232_v7 }
 0x624   :  { %3848 = vmatprep.subr.bf16.mxu1 %v6069_v38 }
 0x625   :  { %3140 = vmatmul.mubr.bf16.vlgmr.msra.gmra.mrb[16].mxu0 %v5474_v54  ;;  %v5687_v54 = vpop.f32.mrb[17].mxu1 }
 0x626   :  { %3151 = vmatpush1.bf16.msra.mxu0 %v6129_v18  ;;  %3182 = vmatprep.mubr.bf16.mxu0 %v5967_v1  ;;  %v3024_v9 = vmax.f32 %v5684_v17, %v5687_v54  ;;  %v3019_v51 = vpop.f32.mrb[18].mxu1 }
 0x627   :  { %3152 = vmatprep.subr.bf16.mxu0 %v6130_v29  ;;  %v3020_v32 = vpop.f32.mrb[19].mxu1  ;;  %3849 = vmatpush3.bf16.msra.mxu1 %v4233_v34 }
 0x628   :  { %3850 = vmatprep.subr.bf16.mxu1 %v6069_v38 }
 0x62a   :  { %3153 = vmatpush1.bf16.msra.mxu0 %v6131_v30 }
 0x62b   :  { %3154 = vmatprep.subr.bf16.mxu0 %v6132_v31 }
 0x62e   :  { %3155 = vmatpush1.bf16.msra.mxu0 %v5427_v11 }
 0x62f   :  { %3156 = vmatprep.subr.bf16.mxu0 %v5430_v5 }
 0x632   :  { %3157 = vmatpush1.bf16.msra.mxu0 %v5435_v13 }
 0x633   :  { %3158 = vmatprep.subr.bf16.mxu0 %v5438_v23 }
 0x636   :  { %3159 = vmatpush1.bf16.msra.mxu0 %v5443_v40 }
 0x637   :  { %3160 = vmatprep.subr.bf16.mxu0 %v5446_v42 }
 0x63a   :  { %3161 = vmatpush1.bf16.msra.mxu0 %v5451_v36  ;;  %v4319_v36 = vld [vmem:[%s5774_s4] ss:$0 sm:$0xff] }
 0x63b   :  { %3162 = vmatprep.subr.bf16.mxu0 %v5454_v53  ;;  %v6135_v53 = vld [vmem:[#allocation26_spill] sm:$0xff] }
 0x63e   :  { %3163 = vmatpush1.bf16.msra.mxu0 %v5459_v26  ;;  %v6133_v26 = vld [vmem:[#allocation48_spill] sm:$0xff] }
 0x63f   :  { %3164 = vmatprep.subr.bf16.mxu0 %v5462_v27  ;;  %v6134_v27 = vld [vmem:[#allocation23_spill] sm:$0xff] }
 0x642   :  { %3165 = vmatpush1.bf16.msra.mxu0 %v5467_v35  ;;  %v6140_v35 = vld [vmem:[#allocation56_spill] sm:$0xff] }
 0x643   :  { %3195 = vmatprep.subr.bf16.mxu0 %v5470_v20  ;;  %v6138_v20 = vld [vmem:[#allocation55_spill] sm:$0xff] }
 0x645   :  { %3183 = vmatmul.mubr.bf16.vlgmr.msra.gmra.mrb[16].mxu0 %v5614_v14  ;;  %v6136_v14 = vld [vmem:[#allocation49_spill] sm:$0xff] }
 0x646   :  { %3196 = vmatpush1.bf16.msra.mxu0 %v5478_v50  ;;  %3227 = vmatprep.mubr.bf16.mxu0 %v5967_v1  ;;  %v6137_v1 = vld [vmem:[#allocation54_spill] sm:$0xff]  ;;  %v3194_v50 = vld [vmem:[#allocation2 + $0x2c] sm:$0xf] }
 0x647   :  { %3197 = vmatprep.subr.bf16.mxu0 %v5483_v56  ;;  %v4221_v56 = vld [vmem:[#allocation5 + $0xd0] sm:$0xff]  }
 0x64a   :  { %3198 = vmatpush1.bf16.msra.mxu0 %v5489_v25  ;;  %v6139_v25 = vld [vmem:[#allocation29_spill] sm:$0xff] }
 0x64b   :  { %3199 = vmatprep.subr.bf16.mxu0 %v5492_v28  ;;  %v4222_v28 = vld [vmem:[#allocation5 + $0xd8] sm:$0xff]  }
 0x64e   :  { %3200 = vmatpush1.bf16.msra.mxu0 %v5497_v57 }
 0x64f   :  { %3201 = vmatprep.subr.bf16.mxu0 %v5500_v24  ;;  %v4219_v24 = vld [vmem:[#allocation5 + $0xc0] sm:$0xff]  }
 0x652   :  { %3202 = vmatpush1.bf16.msra.mxu0 %v5505_v2  ;;  %v4220_v2 = vld [vmem:[#allocation5 + $0xc8] sm:$0xff]  }
 0x653   :  { %3203 = vmatprep.subr.bf16.mxu0 %v6133_v26 }
 0x656   :  { %3204 = vmatpush1.bf16.msra.mxu0 %v6134_v27 }
 0x657   :  { %3205 = vmatprep.subr.bf16.mxu0 %v6135_v53 }
 0x65a   :  { %3206 = vmatpush1.bf16.msra.mxu0 %v6136_v14 }
 0x65b   :  { %3207 = vmatprep.subr.bf16.mxu0 %v6137_v1 }
 0x65e   :  { %3208 = vmatpush1.bf16.msra.mxu0 %v6138_v20 }
 0x65f   :  { %3209 = vmatprep.subr.bf16.mxu0 %v6139_v25 }
 0x662   :  { %3210 = vmatpush1.bf16.msra.mxu0 %v6140_v35 }
 0x663   :  { %3816 = vmatprep.subr.bf16.mxu0 %v6069_v38 }
 0x665   :  { %3228 = vmatmul.mubr.bf16.vlgmr.msra.gmra.mrb[16].mxu0 %v3194_v50 }
 0x666   :  { %3817 = vmatpush3.bf16.msra.mxu0 %v4219_v24  ;;  %3832 = vmatprep.mubr.msk.bf16.mxu0 %vm4385_vm2, %v6069_v38 }
 0x667   :  { %3818 = vmatprep.subr.bf16.mxu0 %v6069_v38 }
 0x66a   :  { %3819 = vmatpush3.bf16.msra.mxu0 %v4220_v2 }
 0x66b   :  { %3820 = vmatprep.subr.bf16.mxu0 %v6069_v38 }
 0x66e   :  { %3821 = vmatpush3.bf16.msra.mxu0 %v4221_v56 }
 0x66f   :  { %3822 = vmatprep.subr.bf16.mxu0 %v6069_v38 }
 0x672   :  { %3823 = vmatpush3.bf16.msra.mxu0 %v4222_v28 }
 0x673   :  { %3824 = vmatprep.subr.bf16.mxu0 %v6069_v38 }
 0x676   :  { %3825 = vmatpush3.bf16.msra.mxu0 %v4223_v52 }
 0x677   :  { %3826 = vmatprep.subr.bf16.mxu0 %v6069_v38 }
 0x67a   :  { %3827 = vmatpush3.bf16.msra.mxu0 %v4224_v48 }
 0x67b   :  { %3828 = vmatprep.subr.bf16.mxu0 %v6069_v38 }
 0x67e   :  { %3829 = vmatpush3.bf16.msra.mxu0 %v4225_v55 }
 0x67f   :  { %3830 = vmatprep.subr.bf16.mxu0 %v6069_v38  ;;  %v4234_v38 = vld [vmem:[%s5777_s7 + $0x38] sm:$0xff]  }
 0x680   :  { %3851 = vmatpush3.bf16.msra.mxu1 %v4234_v38 }
 0x682   :  { %3831 = vmatpush3.bf16.msra.mxu0 %v4226_v62 }
 0x738   :  { %v3229_v11 = vpop.f32.mrb[16].mxu0 }
 0x739   :  { %v3231_v5 = vpop.f32.mrb[17].mxu0 }
 0x73a   :  { %v3238_v13 = vmax.f32 %v3229_v11, %v3231_v5  ;;  %v3233_v23 = vpop.f32.mrb[18].mxu0 }
 0x73b   :  { %v3234_v40 = vpop.f32.mrb[19].mxu0 }
 0x73c   :  { %v3239_v42 = vmax.f32 %v3024_v9, %v3238_v13 }
 0x73e   :  { %v3240_v57 = vadd.f32 %v4319_v36, %v3239_v42 }
 0x740   :  { %v3241_v22 = vmax.f32 %v3240_v57, 0.0 }
 0x742   :  { %v3242_v10 = vpack.c.bf16 %v3241_v22, %v3241_v22 }
 0x744   :  { %3833 = vmatmul.mubr.bf16.vlgmr.msra.gmra.mrb[4].mxu0 %v3242_v10 }
 0x817   :  { %v3342_v6 = vpop.f32.mrb[4].mxu0 }
 0x818   :  { %v3890_v63 = vadd.f32 %v3582_v4, %v3342_v6  ;;  %v3834_v15 = vpop.f32.mrb[5].mxu0 }
 0x819   :  { %v3345_v41 = vpop.f32.mrb[6].mxu0 }
 0x81a   :  { %v3349_v19 = vpack.c.bf16 %v3890_v63, %v3890_v63  ;;  %v3835_v60 = vpop.f32.mrb[7].mxu0 }
 0x81c   :  { %3853 = vmatmul.mubr.bf16.vlgmr.msra.gmra.mrb[20].mxu1 %v3349_v19 }
 0x8ef   :  { %v3455_v16 = vpop.f32.mrb[20].mxu1 }
 0x8f0   :  { %v3456_v0 = vadd.f32 %v3696_v58, %v3455_v16  ;;  %v3854_v39 = vpop.f32.mrb[21].mxu1 }
 0x8f1   :  { %v3458_v49 = vpop.f32.mrb[22].mxu1 }
 0x8f2   :  { %3461 = vmax.xlane.f32.xlu0 %v3456_v0  ;;  %v3855_v45 = vpop.f32.mrb[23].mxu1 }
 0x97f   :  { %v3462_v33 = vpop.xlane.xlu0 %3461 }
 0x980   :  { %v3463_v37 = vsub.f32 %v3456_v0, %v3462_v33 }
 0x982   :  { %v3464_v12 = vmul.f32 1.442695, %v3463_v37 }
 0x984   :  { %4235 = vpow2.f32 %v3464_v12 }
 0x98e   :  { %v4236_v8 = vpop.eup %4235 }
 0x98f   :  { %3466 = vadd.xlane.f32.xlu0 %v4236_v8 }
 0xa1c   :  { %v3467_v43 = vpop.xlane.xlu0 %3466 }
 0xa1d   :  { %4237 = vlog2.f32 %v3467_v43 }
 0xa27   :  { %v4238_v44 = vpop.eup %4237 }
 0xa28   :  { %v3469_v46 = vmul.f32 0.6931472, %v4238_v44 }
 0xa2a   :  { %v3470_v18 = vsub.f32 %v3463_v37, %v3469_v46 }
 0xa2c   :  { %3471 = vst [vmem:[%s5779_s9] sm:$0xff] %v3470_v18 }
 0xa2d   :  { %3476 = vsyncpa [#allocation4], 1 }
 0xa2e   :  { %3477 = vsyncpa [#allocation6], 1 }

</bundles_post_ra>
